<compile_context>
chip_gen: v7x
topology: tpu7x:2x2x1
jax: 0.10.0
libtpu: 0.0.40
codegen_flags: <defaults>
</compile_context>

<pallas_src>
import functools
from collections import namedtuple

import jax
import jax.numpy as jnp
from jax import lax
from jax.experimental import pallas as pl
from jax.experimental.pallas import tpu as pltpu


def _cdiv(a, b):
    return -(-a // b)


def _round_up(x, m):
    return _cdiv(x, m) * m


# ----------------------------------------------------------------------------
# Hardware-aware VMEM budget (v5e/v6e: 128 MiB, v7x: 64 MiB).
# ----------------------------------------------------------------------------
def _vmem_capacity_bytes():
    try:
        return int(pltpu.get_tpu_info().vmem_capacity_bytes)
    except Exception:
        # Conservative (v7x-sized) default if the query fails; this only
        # shrinks the Pallas dispatch envelope, it never breaks correctness.
        return 64 * 1024 * 1024


_VMEM_CAP = _vmem_capacity_bytes()
_VMEM_LIMIT = int(min(0.80 * _VMEM_CAP, 100 * 1024 * 1024))    # Mosaic scoped limit
_VMEM_BUDGET = int(min(0.55 * _VMEM_CAP, 0.70 * _VMEM_LIMIT))  # tiling/dispatch budget


# ----------------------------------------------------------------------------
# Fused 3x3 'same' conv (+ folded BN bias) + optional SiLU.
# One grid step = one (batch*row-tile, Cout-tile).
#   x_ref: (1, TH+2, W8, 3*Cin) bf16  column-folded, zero-padded slab tile
#   w_ref: (3, 3*Cin, TN)       bf16  one K=3*Cin weight plane per dy tap
#   b_ref: (1, TN)              f32   folded-BN bias
#   o_ref: (1, TH, W8, TN)            output tile (bf16 or f32)
# ----------------------------------------------------------------------------
def _silu_f32(y):
    return y * (1.0 / (1.0 + jnp.exp(-y)))


def _conv3x3_kernel(x_ref, w_ref, b_ref, o_ref, *, TH, apply_silu):
    _, _, W8, C3 = x_ref.shape
    tn = o_ref.shape[-1]
    acc = jnp.zeros((TH * W8, tn), jnp.float32)
    # Three contiguous dy row-slices -> three large K=3*Cin MXU contractions.
    # W8 is a multiple of 8, so the (TH, W8, C3) -> (TH*W8, C3) reshape is a
    # layout-preserving view (no relayout copies inside the loop).
    for dy in range(3):
        x = x_ref[0, dy:dy + TH].reshape(TH * W8, C3)
        acc = acc + jnp.dot(x, w_ref[dy], preferred_element_type=jnp.float32)
    y = acc + b_ref[...]                                  # f32 epilogue
    if apply_silu:
        y = _silu_f32(y)
    o_ref[...] = y.reshape(1, TH, W8, tn).astype(o_ref.dtype)


# ----------------------------------------------------------------------------
# Tiling plan: pick (Cout tile, H-row tile, grid order) from the chip's VMEM.
# ----------------------------------------------------------------------------
_Plan = namedtuple("_Plan", "tn n_pad th n_h w8 weights_outer")


def _conv_step_vmem(th, w8, c3, tn, out_itemsize):
    slab = (th + 2) * w8 * c3 * 2             # bf16 input slab tile
    wgt = 3 * c3 * tn * 2                     # bf16 weight tile
    bias = tn * 4                             # f32 bias
    out = th * w8 * tn * out_itemsize         # output tile
    acc = th * w8 * tn * 4                    # f32 accumulator
    # x2: double-buffered pipelined operands; 2.5x acc: accumulator plus live
    # epilogue temporaries.  (No per-tap relayout temporaries exist anymore.)
    return 2 * (slab + wgt + bias + out) + int(2.5 * acc)


def _plan_conv(H, W, cin, cout, out_itemsize, force_th=None, force_tn=None):
    c3 = 3 * cin
    w8 = _round_up(W, 8)
    if force_tn is not None:
        tn_candidates = [force_tn]
    elif cout <= 256:
        tn_candidates = [cout]
    else:
        tn_candidates = [256, 128]            # drop to 128 when VMEM is tight (v7x)
    for tn in tn_candidates:
        n_pad = _round_up(cout, tn)
        if force_th is not None:
            th = min(force_th, H)
        else:
            th, n_h = H, 1
            while (_conv_step_vmem(th, w8, c3, tn, out_itemsize) > _VMEM_BUDGET
                   and th > 2):
                n_h *= 2
                th = _cdiv(H, n_h)
            if _conv_step_vmem(th, w8, c3, tn, out_itemsize) > _VMEM_BUDGET:
                continue                      # try a narrower Cout tile
        n_h = _cdiv(H, th)
        th = _cdiv(H, n_h)                    # balanced row tiles
        slab_tile = (th + 2) * w8 * c3 * 2
        wgt_tile = 3 * c3 * tn * 2
        return _Plan(tn, n_pad, th, n_h, w8, wgt_tile > slab_tile)
    return None


# ----------------------------------------------------------------------------
# Pallas wrapper: fused conv3x3(concat([xa, xb], channel)) + bias + SiLU.
# ----------------------------------------------------------------------------
def _conv3x3_pallas(xa, xb, w_hwio, bias, apply_silu, out_dtype, plan):
    B, H, W, Ca = xa.shape
    Cb = xb.shape[-1]
    cin = Ca + Cb
    cout = w_hwio.shape[-1]
    tn, n_pad, th, n_h, w8, weights_outer = plan
    c3 = 3 * cin
    n_tiles = n_pad // tn
    bh = B * n_h
    hp = n_h * th

    # Slab prep: concat + bf16 cast + SAME pad + dx(column)-fold + row tiling.
    # This is slice/elementwise glue XLA fuses into one HBM pass.
    # TODO(synk): write conv outputs directly into a pre-padded, column-folded
    # slab for the next level to remove this per-level slab-prep HBM pass.
    x = jnp.concatenate([xa, xb], axis=-1).astype(jnp.bfloat16)
    x = jnp.pad(x, ((0, 0), (1, 1 + hp - H), (1, 1), (0, 0)))   # (B, hp+2, W+2, cin)
    xcol = jnp.concatenate([x[:, :, dx:dx + W, :] for dx in range(3)], axis=-1)
    if w8 != W:
        xcol = jnp.pad(xcol, ((0, 0), (0, 0), (0, w8 - W), (0, 0)))
    if n_h == 1:
        slab = xcol                                               # (B, th+2, w8, c3)
    else:                                                         # overlapping row tiles
        slab = jnp.concatenate(
            [xcol[:, None, h * th:h * th + th + 2] for h in range(n_h)], axis=1
        ).reshape(bh, th + 2, w8, c3)

    w = w_hwio.astype(jnp.bfloat16).reshape(3, c3, cout)
    b = bias.astype(jnp.float32)
    if n_pad != cout:
        w = jnp.pad(w, ((0, 0), (0, 0), (0, n_pad - cout)))
        b = jnp.pad(b, (0, n_pad - cout))
    b2 = b.reshape(1, n_pad)

    # Grid order: keep the LARGER per-step operand resident across the inner
    # axis (weights for deep embedding convs, the slab for wide fuse levels).
    if weights_outer:
        grid = (n_tiles, bh)
        x_map = lambda j, i: (i, 0, 0, 0)
        w_map = lambda j, i: (0, 0, j)
        b_map = lambda j, i: (0, j)
        o_map = lambda j, i: (i, 0, 0, j)
    else:
        grid = (bh, n_tiles)
        x_map = lambda i, j: (i, 0, 0, 0)
        w_map = lambda i, j: (0, 0, j)
        b_map = lambda i, j: (0, j)
        o_map = lambda i, j: (i, 0, 0, j)

    kernel = functools.partial(_conv3x3_kernel, TH=th, apply_silu=apply_silu)
    out = pl.pallas_call(
        kernel,
        out_shape=jax.ShapeDtypeStruct((bh, th, w8, n_pad), out_dtype),
        grid_spec=pltpu.PrefetchScalarGridSpec(
            num_scalar_prefetch=0,
            grid=grid,
            in_specs=[
                pl.BlockSpec((1, th + 2, w8, c3), x_map),
                pl.BlockSpec((3, c3, tn), w_map),
                pl.BlockSpec((1, tn), b_map),
            ],
            out_specs=pl.BlockSpec((1, th, w8, tn), o_map),
        ),
        compiler_params=pltpu.CompilerParams(
            dimension_semantics=("parallel", "parallel"),
            vmem_limit_bytes=_VMEM_LIMIT),
    )(slab, w, b2)

    out = out.reshape(B, hp, w8, n_pad)
    if hp != H or w8 != W or n_pad != cout:
        out = out[:, :H, :W, :cout]
    return out


# ----------------------------------------------------------------------------
# XLA fallback conv (tiny deep-pyramid levels): bf16 operands, f32 accumulate.
# ----------------------------------------------------------------------------
def _conv_xla(x, w_hwio, bias, apply_silu, out_dtype):
    y = lax.conv_general_dilated(
        x.astype(jnp.bfloat16), w_hwio.astype(jnp.bfloat16),
        window_strides=(1, 1), padding="SAME",
        dimension_numbers=("NHWC", "HWIO", "NHWC"),
        preferred_element_type=jnp.float32)
    y = y + bias.astype(jnp.float32)
    if apply_silu:
        y = _silu_f32(y)
    return y.astype(out_dtype)


def conv_block(xa, xb, w_hwio, bias, apply_silu=True, out_dtype=jnp.bfloat16):
    """Conv(k=3,s=1,bias=False)+BN(folded)+SiLU on concat([xa, xb], channel)."""
    B, H, W, Ca = xa.shape
    Cb = xb.shape[-1]
    cout = w_hwio.shape[-1]
    if H * W >= 64:      # tiny deep-pyramid levels are not worth a Pallas launch
        plan = _plan_conv(H, W, Ca + Cb, cout, jnp.dtype(out_dtype).itemsize)
        if plan is not None:
            return _conv3x3_pallas(xa, xb, w_hwio, bias, apply_silu,
                                   out_dtype, plan)
    return _conv_xla(jnp.concatenate([xa, xb], axis=-1), w_hwio, bias,
                     apply_silu, out_dtype)


def linear_pred(x, w_hwio, bias):
    """1x1 conv with bias (Cout=1) -- kept in XLA (lane width 1, tiny work)."""
    cin, cout = w_hwio.shape[2], w_hwio.shape[3]
    y = jnp.einsum("bhwc,co->bhwo", x.astype(jnp.float32),
                   w_hwio.reshape(cin, cout).astype(jnp.float32))
    return y + bias.astype(jnp.float32)


# ----------------------------------------------------------------------------
# Bilinear resize, matches F.interpolate(mode='bilinear', align_corners=False).
# The pyramid always doubles H and W, so the hot path is a gather-free fixed
# 0.25/0.75 two-tap upsample (shift + interleave), computed in f32.
# TODO(synk): fuse the 2x upsample of the coarse map into the consuming conv
# kernel's slab prep so the full-resolution map never hits HBM.
# ----------------------------------------------------------------------------
def _upsample2x_axis(x, axis):
    n = x.shape[axis]
    prev = jnp.concatenate([lax.slice_in_dim(x, 0, 1, axis=axis),
                            lax.slice_in_dim(x, 0, n - 1, axis=axis)], axis=axis)
    nxt = jnp.concatenate([lax.slice_in_dim(x, 1, n, axis=axis),
                           lax.slice_in_dim(x, n - 1, n, axis=axis)], axis=axis)
    even = 0.25 * prev + 0.75 * x
    odd = 0.75 * x + 0.25 * nxt
    y = jnp.stack([even, odd], axis=axis + 1)
    new_shape = list(x.shape)
    new_shape[axis] = 2 * n
    return y.reshape(new_shape)


def bilinear_resize(x, out_h, out_w):
    B, H, W, C = x.shape
    if (H, W) == (out_h, out_w):
        return x
    x32 = x.astype(jnp.float32)
    if out_h == 2 * H and out_w == 2 * W:                # gather-free fast path
        return _upsample2x_axis(_upsample2x_axis(x32, 1), 2).astype(x.dtype)

    def src_idx(out_size, in_size):                      # general fallback
        o = jnp.arange(out_size, dtype=jnp.float32)
        s = jnp.clip((o + 0.5) * (in_size / out_size) - 0.5, 0.0, in_size - 1)
        lo = jnp.floor(s).astype(jnp.int32)
        hi = jnp.minimum(lo + 1, in_size - 1)
        return lo, hi, s - lo.astype(jnp.float32)

    ylo, yhi, wy = src_idx(out_h, H)
    xlo, xhi, wx = src_idx(out_w, W)
    wx = wx[None, None, :, None]
    wy = wy[None, :, None, None]
    x_yl, x_yh = x32[:, ylo], x32[:, yhi]
    top = x_yl[:, :, xlo] * (1.0 - wx) + x_yl[:, :, xhi] * wx
    bot = x_yh[:, :, xlo] * (1.0 - wx) + x_yh[:, :, xhi] * wx
    return (top * (1.0 - wy) + bot * wy).astype(x.dtype)


# ----------------------------------------------------------------------------
# Parameter init.  The PyTorch `Conv` block is Conv2d(bias=False)+BN+SiLU;
# BatchNorm is folded into the conv (inference semantics).
# ----------------------------------------------------------------------------
def make_conv_params(key, cin, cout, k=3, eps=1e-5):
    k1, k2, k3, k4, k5 = jax.random.split(key, 5)
    w = jax.random.normal(k1, (k, k, cin, cout), jnp.float32) / jnp.sqrt(k * k * cin)
    gamma = 1.0 + 0.1 * jax.random.normal(k2, (cout,), jnp.float32)
    beta = 0.1 * jax.random.normal(k3, (cout,), jnp.float32)
    mean = 0.1 * jax.random.normal(k4, (cout,), jnp.float32)
    var = jnp.abs(jax.random.normal(k5, (cout,), jnp.float32)) + 0.5
    scale = gamma / jnp.sqrt(var + eps)
    return w * scale, beta - mean * scale          # folded weight, folded bias


def make_pred_params(key, cin, cout):
    k1, k2 = jax.random.split(key)
    w = jax.random.normal(k1, (1, 1, cin, cout), jnp.float32) / jnp.sqrt(cin)
    b = 0.1 * jax.random.normal(k2, (cout,), jnp.float32)
    return w, b


def init_head_params(key, in_channels, embedding_dim, output_channels):
    c0c, c1c, c2c, c3c, c4c, c5c = in_channels
    keys = jax.random.split(key, 12)
    p = {}
    p['fuse5'] = make_conv_params(keys[0], c5c * 2, c5c)
    p['fuse4'] = make_conv_params(keys[1], c4c * 2, c4c)
    p['fuse3'] = make_conv_params(keys[2], c3c * 2, c3c)
    p['fuse2'] = make_conv_params(keys[3], c2c * 2, c2c)
    p['fuse1'] = make_conv_params(keys[4], c1c * 2, c1c)
    p['fuse0'] = make_conv_params(keys[5], c0c * 2, c0c)
    p['conv4'] = make_conv_params(keys[6], c5c + c4c, embedding_dim)
    p['conv3'] = make_conv_params(keys[7], c3c + embedding_dim, embedding_dim)
    p['conv2'] = make_conv_params(keys[8], c2c + embedding_dim, embedding_dim)
    p['conv1'] = make_conv_params(keys[9], c1c + embedding_dim, embedding_dim)
    p['conv0'] = make_conv_params(keys[10], c0c + embedding_dim, embedding_dim)
    p['pred'] = make_pred_params(keys[11], embedding_dim, output_channels)
    return p


# ----------------------------------------------------------------------------
# SARBSNetHead forward
# ----------------------------------------------------------------------------
def sarbsnet_head_forward(params, trans_inputs, conv_inputs):
    t_c0, t_c1, t_c2, t_c3, t_c4, t_c5 = trans_inputs
    c0, c1, c2, c3, c4, c5 = conv_inputs

    c5 = conv_block(t_c5, c5, *params['fuse5'])
    c5 = bilinear_resize(c5, c4.shape[1], c4.shape[2])

    c4 = conv_block(t_c4, c4, *params['fuse4'])
    c4 = conv_block(c5, c4, *params['conv4'])
    c4 = bilinear_resize(c4, c3.shape[1], c3.shape[2])

    c3 = conv_block(t_c3, c3, *params['fuse3'])
    c3 = conv_block(c4, c3, *params['conv3'])
    c3 = bilinear_resize(c3, c2.shape[1], c2.shape[2])

    c2 = conv_block(t_c2, c2, *params['fuse2'])
    c2 = conv_block(c3, c2, *params['conv2'])
    c2 = bilinear_resize(c2, c1.shape[1], c1.shape[2])

    c1 = conv_block(t_c1, c1, *params['fuse1'])
    c1 = conv_block(c2, c1, *params['conv1'])
    c1 = bilinear_resize(c1, c0.shape[1], c0.shape[2])

    c0 = conv_block(t_c0, c0, *params['fuse0'])
    c0 = conv_block(c1, c0, *params['conv0'])

    # self.dropout is defined but never applied in forward() -> no-op here.
    return linear_pred(c0, *params['pred'])        # f32 logits, (B, H0, W0, 1)


if __name__ == "__main__":
    in_channels = [4, 8, 16, 32, 64, 128]
    embedding_dim = 32          # small stand-in for the default 768
    output_channels = 1
    B = 2
    sizes = [32, 16, 8, 4, 2, 1]   # H = W per pyramid level c0..c5

    key = jax.random.PRNGKey(0)
    kp, kt, kc, ks = jax.random.split(key, 4)
    params = init_head_params(kp, in_channels, embedding_dim, output_channels)

    tkeys = jax.random.split(kt, 6)
    ckeys = jax.random.split(kc, 6)
    trans_inputs = tuple(
        jax.random.normal(tkeys[i], (B, sizes[i], sizes[i], in_channels[i]),
                          jnp.float32) for i in range(6))
    conv_inputs = tuple(
        jax.random.normal(ckeys[i], (B, sizes[i], sizes[i], in_channels[i]),
                          jnp.float32) for i in range(6))

    # ---- spot-check the fused Pallas conv against an XLA reference (both use
    # bf16 MXU operands + f32 accumulation, so tolerances can be tight).
    def _check(xa, xb, w, b, force_th=None, force_tn=None, tol=2e-2):
        plan = _plan_conv(xa.shape[1], xa.shape[2],
                          xa.shape[-1] + xb.shape[-1], w.shape[-1], 4,
                          force_th=force_th, force_tn=force_tn)
        assert plan is not None
        got = _conv3x3_pallas(xa, xb, w, b, True, jnp.float32, plan)
        ref = _conv_xla(jnp.concatenate([xa, xb], -1), w, b, True, jnp.float32)
        err = float(jnp.max(jnp.abs(got - ref)))
        assert bool(jnp.allclose(got, ref, atol=tol, rtol=tol)), err

    # (a) natural plan (slab-resident grid order), same shape the forward uses.
    w0, b0 = params['fuse0']
    _check(trans_inputs[0], conv_inputs[0], w0, b0)
    # (b) forced H-row tiling + non-multiple-of-8 width (halo + W padding path).
    k1, k2 = jax.random.split(ks)
    xa_t = jax.random.normal(k1, (1, 16, 30, 8), jnp.float32)
    xb_t = jax.random.normal(k2, (1, 16, 30, 8), jnp.float32)
    wt, bt = make_conv_params(jax.random.PRNGKey(7), 16, 16)
    _check(xa_t, xb_t, wt, bt, force_th=8)
    # (c) weights-resident grid order (deep, small-spatial, wide-Cout case).
    k3, k4 = jax.random.split(jax.random.PRNGKey(11))
    xa_w = jax.random.normal(k3, (2, 8, 8, 32), jnp.float32)
    xb_w = jax.random.normal(k4, (2, 8, 8, 32), jnp.float32)
    ww, bw = make_conv_params(jax.random.PRNGKey(13), 64, 512)
    _check(xa_w, xb_w, ww, bw)

    fwd = jax.jit(sarbsnet_head_forward)
    out = jax.block_until_ready(fwd(params, trans_inputs, conv_inputs))
    assert out.shape == (B, sizes[0], sizes[0], output_channels), out.shape
    assert bool(jnp.all(jnp.isfinite(out)))
    print("KERNEL_OK")
</pallas_src>

<mosaic_0001>
module attributes {stable_mosaic.version = 11 : i64} {
  func.func @_conv3x3_kernel(%arg0: i32, %arg1: i32, %arg2: memref<1x34x32x24xbf16, #tpu.memory_space<vmem>>, %arg3: memref<3x24x4xbf16, #tpu.memory_space<vmem>>, %arg4: memref<1x4xf32, #tpu.memory_space<vmem>>, %arg5: memref<1x32x32x4xf32, #tpu.memory_space<vmem>>) attributes {dimension_semantics = [#tpu.dimension_semantics<parallel>, #tpu.dimension_semantics<parallel>], iteration_bounds = array<i64: 2, 1>, scalar_prefetch = 0 : i64, scratch_operands = 0 : i64, tpu.core_type = #tpu.core_type<tc>, window_params = [{transform_indices = @transform_0, window_bounds = array<i64: 1, 34, 32, 24>}, {transform_indices = @transform_1, window_bounds = array<i64: 3, 24, 4>}, {transform_indices = @transform_2, window_bounds = array<i64: 1, 4>}, {transform_indices = @transform_3, window_bounds = array<i64: 1, 32, 32, 4>}]} {
    %cst = arith.constant 0.000000e+00 : f32
    %0 = vector.broadcast %cst : f32 to vector<1024x4xf32>
    %c0 = arith.constant 0 : index
    %c0_0 = arith.constant 0 : index
    %c0_1 = arith.constant 0 : index
    %c0_2 = arith.constant 0 : index
    %1 = vector.load %arg2[%c0, %c0_0, %c0_1, %c0_2] : memref<1x34x32x24xbf16, #tpu.memory_space<vmem>>, vector<1x32x32x24xbf16>
    %2 = vector.shape_cast %1 : vector<1x32x32x24xbf16> to vector<32x32x24xbf16>
    %3 = vector.shape_cast %2 : vector<32x32x24xbf16> to vector<1024x24xbf16>
    %c0_3 = arith.constant 0 : index
    %c0_4 = arith.constant 0 : index
    %c0_5 = arith.constant 0 : index
    %4 = vector.load %arg3[%c0_3, %c0_4, %c0_5] : memref<3x24x4xbf16, #tpu.memory_space<vmem>>, vector<1x24x4xbf16>
    %5 = vector.shape_cast %4 : vector<1x24x4xbf16> to vector<24x4xbf16>
    %cst_6 = arith.constant dense<0.000000e+00> : vector<1024x4xf32>
    %6 = tpu.matmul %3, %5, %cst_6 {dimension_numbers = #tpu.dot_dimension_numbers<[1], [0], [0], [1], [0, 0, 1, 1], [], []>} : vector<1024x24xbf16>, vector<24x4xbf16>, vector<1024x4xf32> -> vector<1024x4xf32>
    %7 = arith.addf %0, %6 : vector<1024x4xf32>
    %c0_7 = arith.constant 0 : index
    %c1 = arith.constant 1 : index
    %c0_8 = arith.constant 0 : index
    %c0_9 = arith.constant 0 : index
    %8 = vector.load %arg2[%c0_7, %c1, %c0_8, %c0_9] : memref<1x34x32x24xbf16, #tpu.memory_space<vmem>>, vector<1x32x32x24xbf16>
    %9 = vector.shape_cast %8 : vector<1x32x32x24xbf16> to vector<32x32x24xbf16>
    %10 = vector.shape_cast %9 : vector<32x32x24xbf16> to vector<1024x24xbf16>
    %c1_10 = arith.constant 1 : index
    %c0_11 = arith.constant 0 : index
    %c0_12 = arith.constant 0 : index
    %11 = vector.load %arg3[%c1_10, %c0_11, %c0_12] : memref<3x24x4xbf16, #tpu.memory_space<vmem>>, vector<1x24x4xbf16>
    %12 = vector.shape_cast %11 : vector<1x24x4xbf16> to vector<24x4xbf16>
    %cst_13 = arith.constant dense<0.000000e+00> : vector<1024x4xf32>
    %13 = tpu.matmul %10, %12, %cst_13 {dimension_numbers = #tpu.dot_dimension_numbers<[1], [0], [0], [1], [0, 0, 1, 1], [], []>} : vector<1024x24xbf16>, vector<24x4xbf16>, vector<1024x4xf32> -> vector<1024x4xf32>
    %14 = arith.addf %7, %13 : vector<1024x4xf32>
    %c0_14 = arith.constant 0 : index
    %c2 = arith.constant 2 : index
    %c0_15 = arith.constant 0 : index
    %c0_16 = arith.constant 0 : index
    %15 = vector.load %arg2[%c0_14, %c2, %c0_15, %c0_16] : memref<1x34x32x24xbf16, #tpu.memory_space<vmem>>, vector<1x32x32x24xbf16>
    %16 = vector.shape_cast %15 : vector<1x32x32x24xbf16> to vector<32x32x24xbf16>
    %17 = vector.shape_cast %16 : vector<32x32x24xbf16> to vector<1024x24xbf16>
    %c2_17 = arith.constant 2 : index
    %c0_18 = arith.constant 0 : index
    %c0_19 = arith.constant 0 : index
    %18 = vector.load %arg3[%c2_17, %c0_18, %c0_19] : memref<3x24x4xbf16, #tpu.memory_space<vmem>>, vector<1x24x4xbf16>
    %19 = vector.shape_cast %18 : vector<1x24x4xbf16> to vector<24x4xbf16>
    %cst_20 = arith.constant dense<0.000000e+00> : vector<1024x4xf32>
    %20 = tpu.matmul %17, %19, %cst_20 {dimension_numbers = #tpu.dot_dimension_numbers<[1], [0], [0], [1], [0, 0, 1, 1], [], []>} : vector<1024x24xbf16>, vector<24x4xbf16>, vector<1024x4xf32> -> vector<1024x4xf32>
    %21 = arith.addf %14, %20 : vector<1024x4xf32>
    %c0_21 = arith.constant 0 : index
    %c0_22 = arith.constant 0 : index
    %22 = vector.load %arg4[%c0_21, %c0_22] : memref<1x4xf32, #tpu.memory_space<vmem>>, vector<1x4xf32>
    %23 = vector.broadcast %22 : vector<1x4xf32> to vector<1024x4xf32>
    %24 = arith.addf %21, %23 : vector<1024x4xf32>
    %cst_23 = arith.constant 0.000000e+00 : f32
    %25 = vector.broadcast %cst_23 : f32 to vector<1024x4xf32>
    %26 = arith.subf %25, %24 : vector<1024x4xf32>
    %27 = math.exp %26 : vector<1024x4xf32>
    %cst_24 = arith.constant 1.000000e+00 : f32
    %28 = vector.broadcast %cst_24 : f32 to vector<1024x4xf32>
    %29 = arith.addf %28, %27 : vector<1024x4xf32>
    %cst_25 = arith.constant 1.000000e+00 : f32
    %30 = vector.broadcast %cst_25 : f32 to vector<1024x4xf32>
    %31 = arith.divf %30, %29 : vector<1024x4xf32>
    %32 = arith.mulf %24, %31 : vector<1024x4xf32>
    %33 = vector.shape_cast %32 : vector<1024x4xf32> to vector<1x32x32x4xf32>
    %c0_26 = arith.constant 0 : index
    %c0_27 = arith.constant 0 : index
    %c0_28 = arith.constant 0 : index
    %c0_29 = arith.constant 0 : index
    %34 = vector.load %arg5[%c0_26, %c0_27, %c0_28, %c0_29] : memref<1x32x32x4xf32, #tpu.memory_space<vmem>>, vector<1x32x32x4xf32>
    tpu.vector_store %arg5[%c0_26, %c0_27, %c0_28, %c0_29], %33 {strides = array<i32>} : memref<1x32x32x4xf32, #tpu.memory_space<vmem>>, vector<1x32x32x4xf32>,
    return
  }
  func.func @transform_0(%arg0: i32, %arg1: i32) -> (i32, i32, i32, i32) {
    %c0_i32 = arith.constant 0 : i32
    %c0_i32_0 = arith.constant 0 : i32
    %c0_i32_1 = arith.constant 0 : i32
    %c0_i32_2 = arith.constant 0 : i32
    return %arg0, %c0_i32, %c0_i32_0, %c0_i32_1 : i32, i32, i32, i32
  }
  func.func @transform_1(%arg0: i32, %arg1: i32) -> (i32, i32, i32) {
    %c0_i32 = arith.constant 0 : i32
    %c0_i32_0 = arith.constant 0 : i32
    %c0_i32_1 = arith.constant 0 : i32
    return %c0_i32, %c0_i32_0, %arg1 : i32, i32, i32
  }
  func.func @transform_2(%arg0: i32, %arg1: i32) -> (i32, i32) {
    %c0_i32 = arith.constant 0 : i32
    %c0_i32_0 = arith.constant 0 : i32
    return %c0_i32, %arg1 : i32, i32
  }
  func.func @transform_3(%arg0: i32, %arg1: i32) -> (i32, i32, i32, i32) {
    %c0_i32 = arith.constant 0 : i32
    %c0_i32_0 = arith.constant 0 : i32
    %c0_i32_1 = arith.constant 0 : i32
    return %arg0, %c0_i32, %c0_i32_0, %arg1 : i32, i32, i32, i32
  }
}

</mosaic_0001>

<bundles_post_ra>
// kernel: tpu_custom_call.1
= control target key start
LH: loop header
LB: loop body
LE: loop exit
PB: predicated region body
PF: predicated region fallthrough
CT: control target
= control target key end

     0   :  { %s7527_s12 = smov 0   ;;  %s7529_s13 = smov 0   ;;  %s9080_s0 = inlined_call_operand.vmem [shape: bf16[2,34,32,24], index: 0, kind: input, shape index: {}]   ;;  %s9081_s1 = inlined_call_operand.vmem [shape: bf16[3,24,4], index: 1, kind: input, shape index: {}]   ;;  %s9082_s2 = inlined_call_operand.vmem [shape: f32[1,4], index: 2, kind: input, shape index: {}]   ;;  %s9083_s3 = inlined_call_operand.vmem [shape: f32[2,32,32,4], index: 3, kind: output, shape index: {}]  }
   0x1   :  { %s7531_s14 = smov 0  }
   0x2 LB: > { %s25_s15 = sadd.s32 1, %s7501_s13  ;;  %p5228_p0 = scmp.ge.s32.totalorder %s7505_s14, 1  ;;  %s7505_s14 = sphi %s7531_s14, %s13_s14   ;;  %s7501_s13 = sphi %s7529_s13, %s9127_s13   ;;  %s7497_s12 = sphi %s7527_s12, %s9126_s12  }
   0x3   : > { %p27_p1 = scmp.ge.s32.totalorder %s25_s15, 2  ;;  %p168_p2 = scmp.lt.s32.totalorder %s7505_s14, 3 }
   0x5   : > { %s9129_s15 = smov (%p27_p1, %s25_s15), 0  ;;  %p169_p3 = pnand %p5228_p0, %p168_p2 }
   0x7   : > { %172 = sbr.rel (%p169_p3) target bundleno = 659 (0x293), region = 32 }
   0xe   : > { %v6771_v0 = vld [vmem:[%s9081_s1 + $0xc] sm:$0xff]   ;;  %vm1009_vm0 = vcmask 1043456   ;;  %v6772_v1 = vld [vmem:[%s9081_s1] sm:$0xff]   ;;  %p202_p4 = scmp.lt.s32.totalorder %s7497_s12, 1  ;;  %v6773_v2 = vld [vmem:[%s9081_s1 + $0x14] ss:$0 sps:$4 sm:$0xff]  }
   0xf   : > { %6086 = vmatprep.subr.bf16.mxu1 %v6771_v0  ;;  %6218 = vmatprep.subr.bf16.mxu0 %v6772_v1  ;;  %v6774_v3 = vld [vmem:[%s9081_s1 + $0x8] ss:$0 sps:$4 sm:$0xff]   ;;  %v1011_v4 = vsel %vm1009_vm0, %v6773_v2, 0  ;;  %v6779_v6 = vld [vmem:[%s9081_s1 + $0x18] sm:$0xff]   ;;  %vm816_vm1 = vcmask 195584   ;;  %vm4988_vm2 = vcmask 31744  }
  0x10   : > { %6087 = vmatpush3.bf16.msra.mxu1 %v6771_v0  ;;  %s9131_s12 = smov (!%p202_p4, %s7497_s12), 1  ;;  %6219 = vmatpush3.bf16.msra.mxu0 %v6772_v1  ;;  %v2080_v5 = vsel %vm1009_vm0, %v6774_v3, 0  ;;  %v6812_v9 = vld [vmem:[%s9081_s1 + $0x20] ss:$0 sps:$4 sm:$0xff]  }
  0x11   : > { %6742 = vmatprep.subr.msk.bf16.mxu1 %vm1009_vm0, %v6773_v2  ;;  %6743 = vmatprep.subr.msk.bf16.mxu0 %vm1009_vm0, %v6774_v3  ;;  %s6746_s24 = smul.u32 544, %s9131_s12  ;;  %v3282_v15 = vsel %vm1009_vm0, %v6812_v9, 0  ;;  %s5887_s7 = sshll.u32 %s9131_s12, 10 }
  0x12   : > { %s8174_s10 = scalar_lea.vmem %s9083_s3, %s5887_s7 }
  0x13   : > { %s7570_s29 = scalar_lea.vmem %s9080_s0, %s6746_s24 }
  0x14   : > { %6089 = vmatpush3.bf16.msra.mxu1 %v1011_v4  ;;  %6221 = vmatpush3.bf16.msra.mxu0 %v2080_v5  ;;  %v6775_v7 = vld [vmem:[%s7570_s29 + $0x10] sm:$0xff]   ;;  %v6776_v8 = vld [vmem:[%s7570_s29] sm:$0xff]   ;;  %v6777_v10 = vld [vmem:[%s7570_s29 + $0x18] sm:$0xff]  }
  0x15   : > { %6482 = vmatprep.subr.bf16.mxu1 %v6772_v1  ;;  %6350 = vmatprep.subr.bf16.mxu0 %v6779_v6  ;;  %v6778_v11 = vld [vmem:[%s7570_s29 + $0x8] sm:$0xff]   ;;  %v6780_v12 = vld [vmem:[%s7570_s29 + $0x20] sm:$0xff]   ;;  %v6781_v13 = vld [vmem:[%s7570_s29 + $0x10] sm:$0xff]  }
  0x16   : > { %6090 = vmatprep.mubr.msk.bf16.mxu1 %vm816_vm1, %v6775_v7  ;;  %6222 = vmatprep.mubr.msk.bf16.mxu0 %vm816_vm1, %v6776_v8  ;;  %v6782_v14 = vld [vmem:[%s7570_s29 + $0x28] sm:$0xff]   ;;  %v6783_v16 = vld [vmem:[%s7570_s29 + $0x18] sm:$0xff]   ;;  %v6784_v17 = vld [vmem:[%s7570_s29 + $0x30] sm:$0xff]  }
  0x17   : > { %6091 = vmatmul.mubr.msk.bf16.vlgmr.msra.gmra.mrb[0].mxu1 %vm816_vm1, %v6777_v10  ;;  %6223 = vmatmul.mubr.msk.bf16.vlgmr.msra.gmra.mrb[0].mxu0 %vm816_vm1, %v6778_v11  ;;  %v6785_v18 = vld [vmem:[%s7570_s29 + $0x20] sm:$0xff]   ;;  %v6786_v19 = vld [vmem:[%s7570_s29 + $0x38] sm:$0xff]   ;;  %v6787_v20 = vld [vmem:[%s7570_s29 + $0x28] sm:$0xff]  }
  0x18   : > { %6484 = vmatpush3.bf16.msra.mxu1 %v6772_v1  ;;  %6351 = vmatpush3.bf16.msra.mxu0 %v6779_v6  ;;  %v6788_v21 = vld [vmem:[%s7570_s29 + $0x40] sm:$0xff]   ;;  %v6789_v22 = vld [vmem:[%s7570_s29 + $0x30] sm:$0xff]   ;;  %v6790_v23 = vld [vmem:[%s7570_s29 + $0x48] sm:$0xff]  }
  0x19   : > { %6094 = vmatprep.mubr.msk.bf16.mxu1 %vm816_vm1, %v6780_v12  ;;  %6226 = vmatprep.mubr.msk.bf16.mxu0 %vm816_vm1, %v6781_v13  ;;  %v6791_v24 = vld [vmem:[%s7570_s29 + $0x38] sm:$0xff]   ;;  %v6792_v25 = vld [vmem:[%s7570_s29 + $0x50] sm:$0xff]   ;;  %v6793_v26 = vld [vmem:[%s7570_s29 + $0x40] sm:$0xff]  }
  0x1a   : > { %6745 = vmatprep.subr.msk.bf16.mxu0 %vm1009_vm0, %v6812_v9  ;;  %6744 = vmatprep.subr.msk.bf16.mxu1 %vm1009_vm0, %v6774_v3  ;;  %v6794_v27 = vld [vmem:[%s7570_s29 + $0x58] sm:$0xff]   ;;  %v6795_v28 = vld [vmem:[%s7570_s29 + $0x48] sm:$0xff]   ;;  %v6796_v29 = vld [vmem:[%s7570_s29 + $0x60] sm:$0xff]  }
  0x1b   : > { %v6797_v30 = vld [vmem:[%s7570_s29 + $0x50] sm:$0xff]   ;;  %v6798_v31 = vld [vmem:[%s7570_s29 + $0x68] sm:$0xff]   ;;  %v6799_v32 = vld [vmem:[%s7570_s29 + $0x58] sm:$0xff]  }
  0x1c   : > { %6485 = vmatpush3.bf16.msra.mxu1 %v2080_v5  ;;  %6353 = vmatpush3.bf16.msra.mxu0 %v3282_v15  ;;  %v6800_v33 = vld [vmem:[%s7570_s29 + $0x70] sm:$0xff]   ;;  %v6801_v34 = vld [vmem:[%s7570_s29 + $0x60] sm:$0xff]   ;;  %v6802_v35 = vld [vmem:[%s7570_s29 + $0x78] sm:$0xff]  }
  0x1d   : > { %v6803_v36 = vld [vmem:[%s7570_s29 + $0x68] sm:$0xff]   ;;  %v6804_v37 = vld [vmem:[%s7570_s29 + $0x80] sm:$0xff]   ;;  %v6805_v38 = vld [vmem:[%s7570_s29 + $0x70] sm:$0xff]  }
  0x1e   : > { %v6806_v39 = vld [vmem:[%s7570_s29 + $0x88] sm:$0xff]   ;;  %v6807_v40 = vld [vmem:[%s7570_s29 + $0x78] sm:$0xff]   ;;  %v6808_v41 = vld [vmem:[%s7570_s29 + $0x90] sm:$0xff]  }
  0x1f   : > { %6095 = vmatmul.mubr.msk.bf16.gmra.mrb[4].mxu1 %vm816_vm1, %v6782_v14  ;;  %6227 = vmatmul.mubr.msk.bf16.gmra.mrb[4].mxu0 %vm816_vm1, %v6783_v16  ;;  %v6809_v42 = vld [vmem:[%s7570_s29 + $0x80] sm:$0xff]   ;;  %v6810_v43 = vld [vmem:[%s7570_s29 + $0x98] sm:$0xff]   ;;  %v6811_v44 = vld [vmem:[%s7570_s29 + $0x88] sm:$0xff]  }
  0x20   : > { %6098 = vmatprep.mubr.msk.bf16.mxu1 %vm816_vm1, %v6784_v17  ;;  %6230 = vmatprep.mubr.msk.bf16.mxu0 %vm816_vm1, %v6785_v18  ;;  %v6813_v45 = vld [vmem:[%s7570_s29 + $0xa0] sm:$0xff]   ;;  %v6814_v46 = vld [vmem:[%s7570_s29 + $0x90] sm:$0xff]   ;;  %v6815_v47 = vld [vmem:[%s7570_s29 + $0xa8] sm:$0xff]  }
  0x21   : > { %v6816_v48 = vld [vmem:[%s7570_s29 + $0x98] sm:$0xff]   ;;  %v6817_v49 = vld [vmem:[%s7570_s29 + $0xb0] sm:$0xff]   ;;  %v6818_v50 = vld [vmem:[%s7570_s29 + $0xa0] sm:$0xff]  }
  0x22   : > { %v6819_v51 = vld [vmem:[%s7570_s29 + $0xb8] sm:$0xff]   ;;  %v6820_v52 = vld [vmem:[%s7570_s29 + $0xa8] sm:$0xff]   ;;  %v6821_v53 = vld [vmem:[%s7570_s29 + $0xc0] sm:$0xff]  }
  0x23   : > { %v6822_v54 = vld [vmem:[%s7570_s29 + $0xb0] sm:$0xff]   ;;  %v6823_v55 = vld [vmem:[%s7570_s29 + $0xc8] sm:$0xff]   ;;  %v6824_v56 = vld [vmem:[%s7570_s29 + $0xb8] sm:$0xff]  }
  0x24   : > { %v6825_v57 = vld [vmem:[%s7570_s29 + $0xd0] sm:$0xff]   ;;  %v6826_v58 = vld [vmem:[%s7570_s29 + $0xc0] sm:$0xff]   ;;  %v6827_v59 = vld [vmem:[%s7570_s29 + $0xd8] sm:$0xff]  }
  0x25   : > { %v6828_v60 = vld [vmem:[%s7570_s29 + $0xc8] sm:$0xff]   ;;  %v6829_v61 = vld [vmem:[%s7570_s29 + $0xe0] sm:$0xff]   ;;  %v6830_v62 = vld [vmem:[%s7570_s29 + $0xd0] sm:$0xff]  }
  0x26   : > { %v6831_v63 = vld [vmem:[%s7570_s29 + $0xe8] sm:$0xff]   ;;  %v6832_v0 = vld [vmem:[%s7570_s29 + $0xd8] sm:$0xff]   ;;  %v6833_v1 = vld [vmem:[%s7570_s29 + $0xf0] sm:$0xff]  }
  0x27   : > { %6099 = vmatmul.mubr.msk.bf16.gmra.mrb[8].mxu1 %vm816_vm1, %v6786_v19  ;;  %6231 = vmatmul.mubr.msk.bf16.gmra.mrb[8].mxu0 %vm816_vm1, %v6787_v20  ;;  %v6834_v2 = vld [vmem:[%s7570_s29 + $0xe0] sm:$0xff]   ;;  %v6835_v3 = vld [vmem:[%s7570_s29 + $0xf8] sm:$0xff]   ;;  %v6836_v4 = vld [vmem:[%s7570_s29 + $0xe8] sm:$0xff]  }
  0x28   : > { %6102 = vmatprep.mubr.msk.bf16.mxu1 %vm816_vm1, %v6788_v21  ;;  %6234 = vmatprep.mubr.msk.bf16.mxu0 %vm816_vm1, %v6789_v22  ;;  %v6837_v5 = vld [vmem:[%s7570_s29 + $0x100] sm:$0xff]   ;;  %v6838_v6 = vld [vmem:[%s7570_s29 + $0xf0] sm:$0xff]   ;;  %v6839_v7 = vld [vmem:[%s7570_s29 + $0x108] sm:$0xff]  }
  0x29   : > { %v6840_v8 = vld [vmem:[%s7570_s29 + $0xf8] sm:$0xff]   ;;  %v6841_v9 = vld [vmem:[%s7570_s29 + $0x110] sm:$0xff]   ;;  %v6842_v10 = vld [vmem:[%s7570_s29 + $0x20] sm:$0xff]  }
  0x2a   : > { %v6843_v11 = vld [vmem:[%s7570_s29 + $0x118] sm:$0xff]   ;;  %v6844_v12 = vld [vmem:[%s7570_s29 + $0x28] sm:$0xff]   ;;  %v6845_v13 = vld [vmem:[%s7570_s29 + $0x120] sm:$0xff]  }
  0x2b   : > { %v6846_v14 = vld [vmem:[%s7570_s29 + $0x30] sm:$0xff]   ;;  %v6847_v15 = vld [vmem:[%s7570_s29 + $0x128] sm:$0xff]   ;;  %v6848_v16 = vld [vmem:[%s7570_s29 + $0x38] sm:$0xff]  }
  0x2c   : > { %v6849_v17 = vld [vmem:[%s7570_s29 + $0x130] sm:$0xff]   ;;  %v6850_v18 = vld [vmem:[%s7570_s29 + $0x40] sm:$0xff]   ;;  %v6851_v19 = vld [vmem:[%s7570_s29 + $0x138] sm:$0xff]  }
  0x2d   : > { %v6852_v20 = vld [vmem:[%s7570_s29 + $0x48] sm:$0xff]   ;;  %v6853_v21 = vld [vmem:[%s7570_s29 + $0x140] sm:$0xff]   ;;  %v6854_v22 = vld [vmem:[%s7570_s29 + $0x50] sm:$0xff]  }
  0x2f   : > { %6103 = vmatmul.mubr.msk.bf16.gmra.mrb[12].mxu1 %vm816_vm1, %v6790_v23  ;;  %6235 = vmatmul.mubr.msk.bf16.gmra.mrb[12].mxu0 %vm816_vm1, %v6791_v24  ;;  %v6855_v23 = vld [vmem:[%s7570_s29 + $0x148] sm:$0xff]   ;;  %v6856_v24 = vld [vmem:[%s7570_s29 + $0x58] sm:$0xff]  }
  0x30   : > { %6106 = vmatprep.mubr.msk.bf16.mxu1 %vm816_vm1, %v6792_v25  ;;  %6238 = vmatprep.mubr.msk.bf16.mxu0 %vm816_vm1, %v6793_v26  ;;  %v6857_v25 = vld [vmem:[%s7570_s29 + $0x150] sm:$0xff]   ;;  %v6858_v26 = vld [vmem:[%s7570_s29 + $0x60] sm:$0xff]  }
  0x37   : > { %6107 = vmatmul.mubr.msk.bf16.gmra.mrb[16].mxu1 %vm816_vm1, %v6794_v27  ;;  %6239 = vmatmul.mubr.msk.bf16.gmra.mrb[16].mxu0 %vm816_vm1, %v6795_v28  ;;  %v6859_v27 = vld [vmem:[%s7570_s29 + $0x158] sm:$0xff]   ;;  %v6860_v28 = vld [vmem:[%s7570_s29 + $0x68] sm:$0xff]  }
  0x38   : > { %6110 = vmatprep.mubr.msk.bf16.mxu1 %vm816_vm1, %v6796_v29  ;;  %6242 = vmatprep.mubr.msk.bf16.mxu0 %vm816_vm1, %v6797_v30  ;;  %v6861_v29 = vld [vmem:[%s7570_s29 + $0x160] sm:$0xff]   ;;  %v6862_v30 = vld [vmem:[%s7570_s29 + $0x70] sm:$0xff]  }
  0x3f   : > { %6111 = vmatmul.mubr.msk.bf16.gmra.mrb[20].mxu1 %vm816_vm1, %v6798_v31  ;;  %6243 = vmatmul.mubr.msk.bf16.gmra.mrb[20].mxu0 %vm816_vm1, %v6799_v32  ;;  %v6863_v31 = vld [vmem:[%s7570_s29 + $0x168] sm:$0xff]   ;;  %v6864_v32 = vld [vmem:[%s7570_s29 + $0x78] sm:$0xff]  }
  0x40   : > { %6114 = vmatprep.mubr.msk.bf16.mxu1 %vm816_vm1, %v6800_v33  ;;  %6246 = vmatprep.mubr.msk.bf16.mxu0 %vm816_vm1, %v6801_v34  ;;  %v6865_v33 = vld [vmem:[%s7570_s29 + $0x170] sm:$0xff]   ;;  %v6866_v34 = vld [vmem:[%s7570_s29 + $0x80] sm:$0xff]  }
  0x47   : > { %6115 = vmatmul.mubr.msk.bf16.gmra.mrb[24].mxu1 %vm816_vm1, %v6802_v35  ;;  %6247 = vmatmul.mubr.msk.bf16.gmra.mrb[24].mxu0 %vm816_vm1, %v6803_v36  ;;  %v6867_v35 = vld [vmem:[%s7570_s29 + $0x178] sm:$0xff]   ;;  %v6868_v36 = vld [vmem:[%s7570_s29 + $0x88] sm:$0xff]  }
  0x48   : > { %6118 = vmatprep.mubr.msk.bf16.mxu1 %vm816_vm1, %v6804_v37  ;;  %6250 = vmatprep.mubr.msk.bf16.mxu0 %vm816_vm1, %v6805_v38  ;;  %v6869_v37 = vld [vmem:[%s7570_s29 + $0x180] sm:$0xff]   ;;  %v6870_v38 = vld [vmem:[%s7570_s29 + $0x90] sm:$0xff]  }
  0x4f   : > { %6119 = vmatmul.mubr.msk.bf16.gmra.mrb[28].mxu1 %vm816_vm1, %v6806_v39  ;;  %6251 = vmatmul.mubr.msk.bf16.gmra.mrb[28].mxu0 %vm816_vm1, %v6807_v40  ;;  %v6871_v39 = vld [vmem:[%s7570_s29 + $0x188] sm:$0xff]   ;;  %v6872_v40 = vld [vmem:[%s7570_s29 + $0x98] sm:$0xff]  }
  0x50   : > { %6122 = vmatprep.mubr.msk.bf16.mxu1 %vm816_vm1, %v6808_v41  ;;  %6254 = vmatprep.mubr.msk.bf16.mxu0 %vm816_vm1, %v6809_v42  ;;  %v6873_v41 = vld [vmem:[%s7570_s29 + $0x190] sm:$0xff]   ;;  %v6874_v42 = vld [vmem:[%s7570_s29 + $0xa0] sm:$0xff]  }
  0x57   : > { %6123 = vmatmul.mubr.msk.bf16.gmra.mrb[32].mxu1 %vm816_vm1, %v6810_v43  ;;  %6255 = vmatmul.mubr.msk.bf16.gmra.mrb[32].mxu0 %vm816_vm1, %v6811_v44  ;;  %v6875_v43 = vld [vmem:[%s7570_s29 + $0x198] sm:$0xff]   ;;  %v6876_v44 = vld [vmem:[%s7570_s29 + $0xa8] sm:$0xff]  }
  0x58   : > { %6126 = vmatprep.mubr.msk.bf16.mxu1 %vm816_vm1, %v6813_v45  ;;  %6258 = vmatprep.mubr.msk.bf16.mxu0 %vm816_vm1, %v6814_v46  ;;  %v6877_v45 = vld [vmem:[%s7570_s29 + $0x1a0] sm:$0xff]   ;;  %v6878_v46 = vld [vmem:[%s7570_s29 + $0xb0] sm:$0xff]  }
  0x5f   : > { %6127 = vmatmul.mubr.msk.bf16.gmra.mrb[36].mxu1 %vm816_vm1, %v6815_v47  ;;  %6259 = vmatmul.mubr.msk.bf16.gmra.mrb[36].mxu0 %vm816_vm1, %v6816_v48  ;;  %v6879_v47 = vld [vmem:[%s7570_s29 + $0x1a8] sm:$0xff]   ;;  %v6880_v48 = vld [vmem:[%s7570_s29 + $0xb8] sm:$0xff]  }
  0x60   : > { %6130 = vmatprep.mubr.msk.bf16.mxu1 %vm816_vm1, %v6817_v49  ;;  %6262 = vmatprep.mubr.msk.bf16.mxu0 %vm816_vm1, %v6818_v50  ;;  %v6881_v49 = vld [vmem:[%s7570_s29 + $0x1b0] sm:$0xff]   ;;  %v6882_v50 = vld [vmem:[%s7570_s29 + $0xc0] sm:$0xff]  }
  0x67   : > { %6131 = vmatmul.mubr.msk.bf16.gmra.mrb[40].mxu1 %vm816_vm1, %v6819_v51  ;;  %6263 = vmatmul.mubr.msk.bf16.gmra.mrb[40].mxu0 %vm816_vm1, %v6820_v52  ;;  %v6883_v51 = vld [vmem:[%s7570_s29 + $0x1b8] sm:$0xff]   ;;  %v6884_v52 = vld [vmem:[%s7570_s29 + $0xc8] sm:$0xff]  }
  0x68   : > { %6134 = vmatprep.mubr.msk.bf16.mxu1 %vm816_vm1, %v6821_v53  ;;  %6266 = vmatprep.mubr.msk.bf16.mxu0 %vm816_vm1, %v6822_v54  ;;  %v6885_v53 = vld [vmem:[%s7570_s29 + $0x1c0] sm:$0xff]   ;;  %v6886_v54 = vld [vmem:[%s7570_s29 + $0xd0] sm:$0xff]  }
  0x6f   : > { %6135 = vmatmul.mubr.msk.bf16.gmra.mrb[44].mxu1 %vm816_vm1, %v6823_v55  ;;  %6267 = vmatmul.mubr.msk.bf16.gmra.mrb[44].mxu0 %vm816_vm1, %v6824_v56 }
  0x70   : > { %6138 = vmatprep.mubr.msk.bf16.mxu1 %vm816_vm1, %v6825_v57  ;;  %6270 = vmatprep.mubr.msk.bf16.mxu0 %vm816_vm1, %v6826_v58  ;;  %v6887_v57 = vld [vmem:[%s7570_s29 + $0x1c8] sm:$0xff]  }
  0x77   : > { %6139 = vmatmul.mubr.msk.bf16.gmra.mrb[48].mxu1 %vm816_vm1, %v6827_v59  ;;  %6271 = vmatmul.mubr.msk.bf16.gmra.mrb[48].mxu0 %vm816_vm1, %v6828_v60  ;;  %v6888_v59 = vld [vmem:[%s7570_s29 + $0xd8] sm:$0xff]   ;;  %v6889_v60 = vld [vmem:[%s7570_s29 + $0x1d0] sm:$0xff]  }
  0x78   : > { %6142 = vmatprep.mubr.msk.bf16.mxu1 %vm816_vm1, %v6829_v61  ;;  %6274 = vmatprep.mubr.msk.bf16.mxu0 %vm816_vm1, %v6830_v62  ;;  %v6890_v62 = vld [vmem:[%s7570_s29 + $0xe0] sm:$0xff]  }
  0x7f   : > { %6143 = vmatmul.mubr.msk.bf16.gmra.mrb[52].mxu1 %vm816_vm1, %v6831_v63  ;;  %6275 = vmatmul.mubr.msk.bf16.gmra.mrb[52].mxu0 %vm816_vm1, %v6832_v0 }
  0x80   : > { %6146 = vmatprep.mubr.msk.bf16.mxu1 %vm816_vm1, %v6833_v1  ;;  %6278 = vmatprep.mubr.msk.bf16.mxu0 %vm816_vm1, %v6834_v2  ;;  %v6891_v1 = vld [vmem:[%s7570_s29 + $0x1d8] sm:$0xff]  }
  0x87   : > { %6147 = vmatmul.mubr.msk.bf16.gmra.mrb[56].mxu1 %vm816_vm1, %v6835_v3  ;;  %6279 = vmatmul.mubr.msk.bf16.gmra.mrb[56].mxu0 %vm816_vm1, %v6836_v4  ;;  %v6892_v3 = vld [vmem:[%s7570_s29 + $0xe8] sm:$0xff]   ;;  %v6893_v4 = vld [vmem:[%s7570_s29 + $0x1e0] sm:$0xff]  }
  0x88   : > { %6150 = vmatprep.mubr.msk.bf16.mxu1 %vm816_vm1, %v6837_v5  ;;  %6282 = vmatprep.mubr.msk.bf16.mxu0 %vm816_vm1, %v6838_v6  ;;  %v6894_v6 = vld [vmem:[%s7570_s29 + $0xf0] sm:$0xff]  }
  0x8f   : > { %6151 = vmatmul.mubr.msk.bf16.gmra.mrb[60].mxu1 %vm816_vm1, %v6839_v7  ;;  %6283 = vmatmul.mubr.msk.bf16.gmra.mrb[60].mxu0 %vm816_vm1, %v6840_v8 }
  0x90   : > { %6154 = vmatprep.mubr.msk.bf16.mxu1 %vm816_vm1, %v6841_v9  ;;  %6354 = vmatprep.mubr.msk.bf16.mxu0 %vm816_vm1, %v6842_v10  ;;  %v6895_v9 = vld [vmem:[%s7570_s29 + $0x1e8] sm:$0xff]  }
  0x97   : > { %6155 = vmatmul.mubr.msk.bf16.gmra.mrb[64].mxu1 %vm816_vm1, %v6843_v11  ;;  %6355 = vmatmul.mubr.msk.bf16.vlgmr.msra.gmra.mrb[0].mxu0 %vm816_vm1, %v6844_v12  ;;  %v6896_v11 = vld [vmem:[%s7570_s29 + $0xf8] sm:$0xff]   ;;  %v6897_v12 = vld [vmem:[%s7570_s29 + $0x1f0] sm:$0xff]  }
  0x98   : > { %6158 = vmatprep.mubr.msk.bf16.mxu1 %vm816_vm1, %v6845_v13  ;;  %6358 = vmatprep.mubr.msk.bf16.mxu0 %vm816_vm1, %v6846_v14  ;;  %v6898_v14 = vld [vmem:[%s7570_s29 + $0x100] sm:$0xff]  }
  0x9f   : > { %6159 = vmatmul.mubr.msk.bf16.gmra.mrb[68].mxu1 %vm816_vm1, %v6847_v15  ;;  %6359 = vmatmul.mubr.msk.bf16.gmra.mrb[4].mxu0 %vm816_vm1, %v6848_v16 }
  0xa0   : > { %6162 = vmatprep.mubr.msk.bf16.mxu1 %vm816_vm1, %v6849_v17  ;;  %6362 = vmatprep.mubr.msk.bf16.mxu0 %vm816_vm1, %v6850_v18  ;;  %v6899_v17 = vld [vmem:[%s7570_s29 + $0x1f8] sm:$0xff]  }
  0xa7   : > { %6163 = vmatmul.mubr.msk.bf16.gmra.mrb[72].mxu1 %vm816_vm1, %v6851_v19  ;;  %6363 = vmatmul.mubr.msk.bf16.gmra.mrb[8].mxu0 %vm816_vm1, %v6852_v20  ;;  %v6900_v19 = vld [vmem:[%s7570_s29 + $0x108] sm:$0xff]   ;;  %v6901_v20 = vld [vmem:[%s7570_s29 + $0x200] sm:$0xff]  }
  0xa8   : > { %6166 = vmatprep.mubr.msk.bf16.mxu1 %vm816_vm1, %v6853_v21  ;;  %6366 = vmatprep.mubr.msk.bf16.mxu0 %vm816_vm1, %v6854_v22  ;;  %v6902_v22 = vld [vmem:[%s7570_s29 + $0x110] sm:$0xff]  }
  0xaf   : > { %6167 = vmatmul.mubr.msk.bf16.gmra.mrb[76].mxu1 %vm816_vm1, %v6855_v23  ;;  %6367 = vmatmul.mubr.msk.bf16.gmra.mrb[12].mxu0 %vm816_vm1, %v6856_v24 }
  0xb0   : > { %6170 = vmatprep.mubr.msk.bf16.mxu1 %vm816_vm1, %v6857_v25  ;;  %6370 = vmatprep.mubr.msk.bf16.mxu0 %vm816_vm1, %v6858_v26  ;;  %v6903_v25 = vld [vmem:[%s7570_s29 + $0x208] sm:$0xff]  }
  0xb7   : > { %6171 = vmatmul.mubr.msk.bf16.gmra.mrb[80].mxu1 %vm816_vm1, %v6859_v27  ;;  %6371 = vmatmul.mubr.msk.bf16.gmra.mrb[16].mxu0 %vm816_vm1, %v6860_v28  ;;  %v6904_v27 = vld [vmem:[%s7570_s29 + $0x118] sm:$0xff]   ;;  %v6905_v28 = vld [vmem:[%s7570_s29 + $0x100] sm:$0xff]  }
  0xb8   : > { %6174 = vmatprep.mubr.msk.bf16.mxu1 %vm816_vm1, %v6861_v29  ;;  %6374 = vmatprep.mubr.msk.bf16.mxu0 %vm816_vm1, %v6862_v30  ;;  %v6906_v30 = vld [vmem:[%s7570_s29 + $0x120] sm:$0xff]  }
  0xbf   : > { %6175 = vmatmul.mubr.msk.bf16.gmra.mrb[84].mxu1 %vm816_vm1, %v6863_v31  ;;  %6375 = vmatmul.mubr.msk.bf16.gmra.mrb[20].mxu0 %vm816_vm1, %v6864_v32 }
  0xc0   : > { %6178 = vmatprep.mubr.msk.bf16.mxu1 %vm816_vm1, %v6865_v33  ;;  %6378 = vmatprep.mubr.msk.bf16.mxu0 %vm816_vm1, %v6866_v34  ;;  %v6907_v33 = vld [vmem:[%s7570_s29 + $0x108] sm:$0xff]  }
  0xc7   : > { %6179 = vmatmul.mubr.msk.bf16.gmra.mrb[88].mxu1 %vm816_vm1, %v6867_v35  ;;  %6379 = vmatmul.mubr.msk.bf16.gmra.mrb[24].mxu0 %vm816_vm1, %v6868_v36  ;;  %v6908_v35 = vld [vmem:[%s7570_s29 + $0x128] sm:$0xff]   ;;  %v6909_v36 = vld [vmem:[%s7570_s29 + $0x110] sm:$0xff]  }
  0xc8   : > { %6182 = vmatprep.mubr.msk.bf16.mxu1 %vm816_vm1, %v6869_v37  ;;  %6382 = vmatprep.mubr.msk.bf16.mxu0 %vm816_vm1, %v6870_v38  ;;  %v6910_v38 = vld [vmem:[%s7570_s29 + $0x130] sm:$0xff]  }
  0xcf   : > { %6183 = vmatmul.mubr.msk.bf16.gmra.mrb[92].mxu1 %vm816_vm1, %v6871_v39  ;;  %6383 = vmatmul.mubr.msk.bf16.gmra.mrb[28].mxu0 %vm816_vm1, %v6872_v40 }
  0xd0   : > { %6186 = vmatprep.mubr.msk.bf16.mxu1 %vm816_vm1, %v6873_v41  ;;  %6386 = vmatprep.mubr.msk.bf16.mxu0 %vm816_vm1, %v6874_v42  ;;  %v6911_v41 = vld [vmem:[%s7570_s29 + $0x118] sm:$0xff]  }
  0xd7   : > { %6187 = vmatmul.mubr.msk.bf16.gmra.mrb[96].mxu1 %vm816_vm1, %v6875_v43  ;;  %6387 = vmatmul.mubr.msk.bf16.gmra.mrb[32].mxu0 %vm816_vm1, %v6876_v44  ;;  %v6912_v43 = vld [vmem:[%s7570_s29 + $0x138] sm:$0xff]   ;;  %v6913_v44 = vld [vmem:[%s7570_s29 + $0x120] sm:$0xff]  }
  0xd8   : > { %6190 = vmatprep.mubr.msk.bf16.mxu1 %vm816_vm1, %v6877_v45  ;;  %6390 = vmatprep.mubr.msk.bf16.mxu0 %vm816_vm1, %v6878_v46  ;;  %v6914_v46 = vld [vmem:[%s7570_s29 + $0x140] sm:$0xff]  }
  0xdf   : > { %6191 = vmatmul.mubr.msk.bf16.gmra.mrb[100].mxu1 %vm816_vm1, %v6879_v47  ;;  %6391 = vmatmul.mubr.msk.bf16.gmra.mrb[36].mxu0 %vm816_vm1, %v6880_v48 }
  0xe0   : > { %6194 = vmatprep.mubr.msk.bf16.mxu1 %vm816_vm1, %v6881_v49  ;;  %6394 = vmatprep.mubr.msk.bf16.mxu0 %vm816_vm1, %v6882_v50  ;;  %v6915_v49 = vld [vmem:[%s7570_s29 + $0x128] sm:$0xff]  }
  0xe7   : > { %6195 = vmatmul.mubr.msk.bf16.gmra.mrb[104].mxu1 %vm816_vm1, %v6883_v51  ;;  %6395 = vmatmul.mubr.msk.bf16.gmra.mrb[40].mxu0 %vm816_vm1, %v6884_v52  ;;  %v6916_v51 = vld [vmem:[%s7570_s29 + $0x148] sm:$0xff]   ;;  %v6917_v52 = vld [vmem:[%s7570_s29 + $0x130] sm:$0xff]  }
  0xe8   : > { %6198 = vmatprep.mubr.msk.bf16.mxu1 %vm816_vm1, %v6885_v53  ;;  %6398 = vmatprep.mubr.msk.bf16.mxu0 %vm816_vm1, %v6886_v54  ;;  %v6918_v54 = vld [vmem:[%s7570_s29 + $0x150] sm:$0xff]  }
  0xea   : > { %v7798_v55 = vpop.f32.mrb[0].mxu1 }
  0xeb   : > { %v7800_v56 = vpop.f32.mrb[1].mxu1 }
  0xec   : > { %v7803_v58 = vpop.f32.mrb[2].mxu1 }
  0xed   : > { %v7807_v61 = vpop.f32.mrb[3].mxu1 }
  0xef   : > { %6199 = vmatmul.mubr.msk.bf16.gmra.mrb[108].mxu1 %vm816_vm1, %v6887_v57  ;;  %6399 = vmatmul.mubr.msk.bf16.gmra.mrb[44].mxu0 %vm816_vm1, %v6888_v59 }
  0xf0   : > { %6202 = vmatprep.mubr.msk.bf16.mxu1 %vm816_vm1, %v6889_v60  ;;  %6402 = vmatprep.mubr.msk.bf16.mxu0 %vm816_vm1, %v6890_v62  ;;  %v6919_v60 = vld [vmem:[%s7570_s29 + $0x138] sm:$0xff]  }
  0xf2   : > { %v7814_v63 = vpop.f32.mrb[4].mxu1 }
  0xf3   : > { %v7816_v0 = vpop.f32.mrb[5].mxu1 }
  0xf4   : > { %v7819_v2 = vpop.f32.mrb[6].mxu1 }
  0xf5   : > { %v7823_v5 = vpop.f32.mrb[7].mxu1 }
  0xf7   : > { %6203 = vmatmul.mubr.msk.bf16.gmra.mrb[112].mxu1 %vm816_vm1, %v6891_v1  ;;  %6403 = vmatmul.mubr.msk.bf16.gmra.mrb[48].mxu0 %vm816_vm1, %v6892_v3  ;;  %v6920_v1 = vld [vmem:[%s7570_s29 + $0x158] sm:$0xff]   ;;  %v6921_v3 = vld [vmem:[%s7570_s29 + $0x140] sm:$0xff]  }
  0xf8   : > { %6206 = vmatprep.mubr.msk.bf16.mxu1 %vm816_vm1, %v6893_v4  ;;  %6406 = vmatprep.mubr.msk.bf16.mxu0 %vm816_vm1, %v6894_v6  ;;  %v6922_v6 = vld [vmem:[%s7570_s29 + $0x160] sm:$0xff]  }
  0xfa   : > { %v7830_v7 = vpop.f32.mrb[8].mxu1 }
  0xfb   : > { %v7832_v8 = vpop.f32.mrb[9].mxu1 }
  0xfc   : > { %v7835_v10 = vpop.f32.mrb[10].mxu1 }
  0xfd   : > { %v7839_v13 = vpop.f32.mrb[11].mxu1 }
  0xff   : > { %6207 = vmatmul.mubr.msk.bf16.gmra.mrb[116].mxu1 %vm816_vm1, %v6895_v9  ;;  %6407 = vmatmul.mubr.msk.bf16.gmra.mrb[52].mxu0 %vm816_vm1, %v6896_v11 }
 0x100   : > { %6210 = vmatprep.mubr.msk.bf16.mxu1 %vm816_vm1, %v6897_v12  ;;  %6410 = vmatprep.mubr.msk.bf16.mxu0 %vm816_vm1, %v6898_v14  ;;  %v6923_v12 = vld [vmem:[%s7570_s29 + $0x148] sm:$0xff]  }
 0x102   : > { %v7846_v15 = vpop.f32.mrb[12].mxu1 }
 0x103   : > { %v7848_v16 = vpop.f32.mrb[13].mxu1 }
 0x104   : > { %v7851_v18 = vpop.f32.mrb[14].mxu1 }
 0x105   : > { %v7855_v21 = vpop.f32.mrb[15].mxu1 }
 0x107   : > { %6211 = vmatmul.mubr.msk.bf16.gmra.mrb[120].mxu1 %vm816_vm1, %v6899_v17  ;;  %6411 = vmatmul.mubr.msk.bf16.gmra.mrb[56].mxu0 %vm816_vm1, %v6900_v19  ;;  %v6924_v17 = vld [vmem:[%s7570_s29 + $0x168] sm:$0xff]   ;;  %v6925_v19 = vld [vmem:[%s7570_s29 + $0x150] sm:$0xff]  }
 0x108   : > { %6214 = vmatprep.mubr.msk.bf16.mxu1 %vm816_vm1, %v6901_v20  ;;  %6414 = vmatprep.mubr.msk.bf16.mxu0 %vm816_vm1, %v6902_v22  ;;  %v6926_v22 = vld [vmem:[%s7570_s29 + $0x170] sm:$0xff]  }
 0x10a   : > { %v7862_v23 = vpop.f32.mrb[16].mxu1 }
 0x10b   : > { %v7864_v24 = vpop.f32.mrb[17].mxu1 }
 0x10c   : > { %v7867_v26 = vpop.f32.mrb[18].mxu1 }
 0x10d   : > { %v7871_v29 = vpop.f32.mrb[19].mxu1 }
 0x10f   : > { %6215 = vmatmul.mubr.msk.bf16.gmra.mrb[124].mxu1 %vm816_vm1, %v6903_v25  ;;  %6415 = vmatmul.mubr.msk.bf16.gmra.mrb[60].mxu0 %vm816_vm1, %v6904_v27 }
 0x110   : > { %6286 = vmatprep.mubr.msk.bf16.mxu1 %vm816_vm1, %v6905_v28  ;;  %6418 = vmatprep.mubr.msk.bf16.mxu0 %vm816_vm1, %v6906_v30  ;;  %v6927_v28 = vld [vmem:[%s7570_s29 + $0x158] sm:$0xff]  }
 0x112   : > { %v7878_v31 = vpop.f32.mrb[20].mxu1 }
 0x113   : > { %v7880_v32 = vpop.f32.mrb[21].mxu1 }
 0x114   : > { %v7883_v34 = vpop.f32.mrb[22].mxu1 }
 0x115   : > { %v7887_v37 = vpop.f32.mrb[23].mxu1 }
 0x117   : > { %6287 = vmatmul.mubr.msk.bf16.vlgmr.msra.gmra.mrb[64].mxu1 %vm816_vm1, %v6907_v33  ;;  %6419 = vmatmul.mubr.msk.bf16.gmra.mrb[64].mxu0 %vm816_vm1, %v6908_v35  ;;  %v6928_v33 = vld [vmem:[%s7570_s29 + $0x178] sm:$0xff]   ;;  %v6929_v35 = vld [vmem:[%s7570_s29 + $0x160] sm:$0xff]  }
 0x118   : > { %6290 = vmatprep.mubr.msk.bf16.mxu1 %vm816_vm1, %v6909_v36  ;;  %6422 = vmatprep.mubr.msk.bf16.mxu0 %vm816_vm1, %v6910_v38  ;;  %v6930_v38 = vld [vmem:[%s7570_s29 + $0x180] sm:$0xff]  }
 0x11a   : > { %v7894_v39 = vpop.f32.mrb[24].mxu1 }
 0x11b   : > { %v7896_v40 = vpop.f32.mrb[25].mxu1 }
 0x11c   : > { %v7899_v42 = vpop.f32.mrb[26].mxu1 }
 0x11d   : > { %v7903_v45 = vpop.f32.mrb[27].mxu1 }
 0x11f   : > { %6291 = vmatmul.mubr.msk.bf16.gmra.mrb[68].mxu1 %vm816_vm1, %v6911_v41  ;;  %6423 = vmatmul.mubr.msk.bf16.gmra.mrb[68].mxu0 %vm816_vm1, %v6912_v43 }
 0x120   : > { %6294 = vmatprep.mubr.msk.bf16.mxu1 %vm816_vm1, %v6913_v44  ;;  %6426 = vmatprep.mubr.msk.bf16.mxu0 %vm816_vm1, %v6914_v46  ;;  %v6931_v44 = vld [vmem:[%s7570_s29 + $0x168] sm:$0xff]  }
 0x122   : > { %v7910_v47 = vpop.f32.mrb[28].mxu1 }
 0x123   : > { %v7912_v48 = vpop.f32.mrb[29].mxu1 }
 0x124   : > { %v7915_v50 = vpop.f32.mrb[30].mxu1 }
 0x125   : > { %v7919_v53 = vpop.f32.mrb[31].mxu1 }
 0x127   : > { %6295 = vmatmul.mubr.msk.bf16.gmra.mrb[72].mxu1 %vm816_vm1, %v6915_v49  ;;  %6427 = vmatmul.mubr.msk.bf16.gmra.mrb[72].mxu0 %vm816_vm1, %v6916_v51  ;;  %v6932_v49 = vld [vmem:[%s7570_s29 + $0x188] sm:$0xff]   ;;  %v6933_v51 = vld [vmem:[%s7570_s29 + $0x170] sm:$0xff]  }
 0x128   : > { %6298 = vmatprep.mubr.msk.bf16.mxu1 %vm816_vm1, %v6917_v52  ;;  %6430 = vmatprep.mubr.msk.bf16.mxu0 %vm816_vm1, %v6918_v54  ;;  %v6934_v54 = vld [vmem:[%s7570_s29 + $0x190] sm:$0xff]  }
 0x12a   : > { %v7926_v57 = vpop.f32.mrb[32].mxu1 }
 0x12b   : > { %v7928_v59 = vpop.f32.mrb[33].mxu1 }
 0x12c   : > { %v7931_v62 = vpop.f32.mrb[34].mxu1 }
 0x12d   : > { %v7935_v4 = vpop.f32.mrb[35].mxu1 }
 0x12f   : > { %6299 = vmatmul.mubr.msk.bf16.gmra.mrb[76].mxu1 %vm816_vm1, %v6919_v60  ;;  %6431 = vmatmul.mubr.msk.bf16.gmra.mrb[76].mxu0 %vm816_vm1, %v6920_v1 }
 0x130   : > { %6302 = vmatprep.mubr.msk.bf16.mxu1 %vm816_vm1, %v6921_v3  ;;  %6434 = vmatprep.mubr.msk.bf16.mxu0 %vm816_vm1, %v6922_v6  ;;  %v6935_v3 = vld [vmem:[%s7570_s29 + $0x178] sm:$0xff]  }
 0x132   : > { %v7942_v9 = vpop.f32.mrb[36].mxu1 }
 0x133   : > { %v7944_v11 = vpop.f32.mrb[37].mxu1 }
 0x134   : > { %v7947_v14 = vpop.f32.mrb[38].mxu1 }
 0x135   : > { %v7951_v20 = vpop.f32.mrb[39].mxu1 }
 0x137   : > { %6303 = vmatmul.mubr.msk.bf16.gmra.mrb[80].mxu1 %vm816_vm1, %v6923_v12  ;;  %6435 = vmatmul.mubr.msk.bf16.gmra.mrb[80].mxu0 %vm816_vm1, %v6924_v17  ;;  %v6936_v12 = vld [vmem:[%s7570_s29 + $0x198] sm:$0xff]   ;;  %v6937_v17 = vld [vmem:[%s7570_s29 + $0x180] sm:$0xff]  }
 0x138   : > { %6306 = vmatprep.mubr.msk.bf16.mxu1 %vm816_vm1, %v6925_v19  ;;  %6438 = vmatprep.mubr.msk.bf16.mxu0 %vm816_vm1, %v6926_v22  ;;  %v6938_v22 = vld [vmem:[%s7570_s29 + $0x1a0] sm:$0xff]  }
 0x13a   : > { %v7958_v25 = vpop.f32.mrb[40].mxu1 }
 0x13b   : > { %v7960_v27 = vpop.f32.mrb[41].mxu1 }
 0x13c   : > { %v7963_v30 = vpop.f32.mrb[42].mxu1 }
 0x13d   : > { %v7967_v36 = vpop.f32.mrb[43].mxu1 }
 0x13e   : > { %9084 = vst [vmem:[#allocation2_spill] sm:$0xff] %v7967_v36 }
 0x13f   : > { %6307 = vmatmul.mubr.msk.bf16.gmra.mrb[84].mxu1 %vm816_vm1, %v6927_v28  ;;  %6439 = vmatmul.mubr.msk.bf16.gmra.mrb[84].mxu0 %vm816_vm1, %v6928_v33 }
 0x140   : > { %6310 = vmatprep.mubr.msk.bf16.mxu1 %vm816_vm1, %v6929_v35  ;;  %6442 = vmatprep.mubr.msk.bf16.mxu0 %vm816_vm1, %v6930_v38  ;;  %v6939_v35 = vld [vmem:[%s7570_s29 + $0x188] sm:$0xff]  }
 0x142   : > { %v7974_v41 = vpop.f32.mrb[44].mxu1 }
 0x143   : > { %9085 = vst [vmem:[#allocation3_spill] sm:$0xff] %v7974_v41  ;;  %v7976_v43 = vpop.f32.mrb[45].mxu1 }
 0x144   : > { %9086 = vst [vmem:[#allocation4_spill] sm:$0xff] %v7976_v43  ;;  %v7979_v46 = vpop.f32.mrb[46].mxu1 }
 0x145   : > { %9087 = vst [vmem:[#allocation5_spill] sm:$0xff] %v7979_v46  ;;  %v7983_v52 = vpop.f32.mrb[47].mxu1 }
 0x146   : > { %9088 = vst [vmem:[#allocation6_spill] sm:$0xff] %v7983_v52  ;;  %v6958_v52 = vld [vmem:[%s7570_s29 + $0x1f0] sm:$0xff]  }
 0x147   : > { %6311 = vmatmul.mubr.msk.bf16.gmra.mrb[88].mxu1 %vm816_vm1, %v6931_v44  ;;  %6443 = vmatmul.mubr.msk.bf16.gmra.mrb[88].mxu0 %vm816_vm1, %v6932_v49  ;;  %v6940_v44 = vld [vmem:[%s7570_s29 + $0x1a8] sm:$0xff]   ;;  %v6941_v49 = vld [vmem:[%s7570_s29 + $0x190] sm:$0xff]  }
 0x148   : > { %6314 = vmatprep.mubr.msk.bf16.mxu1 %vm816_vm1, %v6933_v51  ;;  %6446 = vmatprep.mubr.msk.bf16.mxu0 %vm816_vm1, %v6934_v54  ;;  %v6942_v54 = vld [vmem:[%s7570_s29 + $0x1b0] sm:$0xff]  }
 0x14a   : > { %v7990_v60 = vpop.f32.mrb[48].mxu1 }
 0x14b   : > { %9089 = vst [vmem:[#allocation7_spill] sm:$0xff] %v7990_v60  ;;  %v7992_v1 = vpop.f32.mrb[49].mxu1  ;;  %v6957_v60 = vld [vmem:[%s7570_s29 + $0x1d0] sm:$0xff]  }
 0x14c   : > { %9090 = vst [vmem:[#allocation8_spill] sm:$0xff] %v7992_v1  ;;  %v7995_v6 = vpop.f32.mrb[50].mxu1 }
 0x14d   : > { %9091 = vst [vmem:[#allocation9_spill] sm:$0xff] %v7995_v6  ;;  %v7999_v19 = vpop.f32.mrb[51].mxu1 }
 0x14e   : > { %9092 = vst [vmem:[#allocation10_spill] sm:$0xff] %v7999_v19 }
 0x14f   : > { %6315 = vmatmul.mubr.msk.bf16.gmra.mrb[92].mxu1 %vm816_vm1, %v6935_v3  ;;  %6447 = vmatmul.mubr.msk.bf16.gmra.mrb[92].mxu0 %vm816_vm1, %v6936_v12 }
 0x150   : > { %6318 = vmatprep.mubr.msk.bf16.mxu1 %vm816_vm1, %v6937_v17  ;;  %6450 = vmatprep.mubr.msk.bf16.mxu0 %vm816_vm1, %v6938_v22  ;;  %v6943_v17 = vld [vmem:[%s7570_s29 + $0x198] sm:$0xff]  }
 0x152   : > { %v8006_v28 = vpop.f32.mrb[52].mxu1 }
 0x153   : > { %9093 = vst [vmem:[#allocation11_spill] sm:$0xff] %v8006_v28  ;;  %v8008_v33 = vpop.f32.mrb[53].mxu1 }
 0x154   : > { %9094 = vst [vmem:[#allocation12_spill] sm:$0xff] %v8008_v33  ;;  %v8011_v38 = vpop.f32.mrb[54].mxu1  ;;  %v6953_v33 = vld [vmem:[%s7570_s29 + $0x1c0] sm:$0xff]  }
 0x155   : > { %9095 = vst [vmem:[#allocation13_spill] sm:$0xff] %v8011_v38  ;;  %v8015_v51 = vpop.f32.mrb[55].mxu1  ;;  %v6945_v38 = vld [vmem:[%s7570_s29 + $0x1a0] sm:$0xff]  }
 0x156   : > { %9096 = vst [vmem:[#allocation14_spill] sm:$0xff] %v8015_v51  ;;  %v6944_v51 = vld [vmem:[%s7570_s29 + $0x1b8] sm:$0xff]  }
 0x157   : > { %6319 = vmatmul.mubr.msk.bf16.gmra.mrb[96].mxu1 %vm816_vm1, %v6939_v35  ;;  %6451 = vmatmul.mubr.msk.bf16.gmra.mrb[96].mxu0 %vm816_vm1, %v6940_v44  ;;  %v6946_v44 = vld [vmem:[%s7570_s29 + $0x1c0] sm:$0xff]  }
 0x158   : > { %6322 = vmatprep.mubr.msk.bf16.mxu1 %vm816_vm1, %v6941_v49  ;;  %6454 = vmatprep.mubr.msk.bf16.mxu0 %vm816_vm1, %v6942_v54 }
 0x15a   : > { %v8022_v3 = vpop.f32.mrb[56].mxu1 }
 0x15b   : > { %9097 = vst [vmem:[#allocation15_spill] sm:$0xff] %v8022_v3  ;;  %v8024_v12 = vpop.f32.mrb[57].mxu1  ;;  %v6949_v3 = vld [vmem:[%s7570_s29 + $0x1b0] sm:$0xff]  }
 0x15c   : > { %9098 = vst [vmem:[#allocation16_spill] sm:$0xff] %v8024_v12  ;;  %v8027_v22 = vpop.f32.mrb[58].mxu1 }
 0x15d   : > { %9099 = vst [vmem:[#allocation17_spill] sm:$0xff] %v8027_v22  ;;  %v8031_v35 = vpop.f32.mrb[59].mxu1  ;;  %v6947_v22 = vld [vmem:[%s7570_s29 + $0x1a8] sm:$0xff]  }
 0x15e   : > { %9100 = vst [vmem:[#allocation18_spill] sm:$0xff] %v8031_v35  ;;  %v6948_v35 = vld [vmem:[%s7570_s29 + $0x1c8] sm:$0xff]  }
 0x15f   : > { %6323 = vmatmul.mubr.msk.bf16.gmra.mrb[100].mxu1 %vm816_vm1, %v6943_v17  ;;  %6455 = vmatmul.mubr.msk.bf16.gmra.mrb[100].mxu0 %vm816_vm1, %v6944_v51  ;;  %v6950_v51 = vld [vmem:[%s7570_s29 + $0x1d0] sm:$0xff]  }
 0x160   : > { %6326 = vmatprep.mubr.msk.bf16.mxu1 %vm816_vm1, %v6945_v38  ;;  %6458 = vmatprep.mubr.msk.bf16.mxu0 %vm816_vm1, %v6946_v44  ;;  %v8057_v44 = vld [vmem:[%s9082_s2] ss:$0 sm:$0xff] }
 0x162   : > { %v8038_v49 = vpop.f32.mrb[60].mxu1 }
 0x163   : > { %9101 = vst [vmem:[#allocation19_spill] sm:$0xff] %v8038_v49  ;;  %v8040_v54 = vpop.f32.mrb[61].mxu1 }
 0x164   : > { %9102 = vst [vmem:[#allocation20_spill] sm:$0xff] %v8040_v54  ;;  %v8043_v12 = vpop.f32.mrb[62].mxu1 }
 0x165   : > { %9103 = vst [vmem:[#allocation21_spill] sm:$0xff] %v8043_v12  ;;  %v8047_v17 = vpop.f32.mrb[63].mxu1  ;;  %v6951_v12 = vld [vmem:[%s7570_s29 + $0x1b8] sm:$0xff]  }
 0x166   : > { %9104 = vst [vmem:[#allocation22_spill] sm:$0xff] %v8047_v17  ;;  %v6952_v17 = vld [vmem:[%s7570_s29 + $0x1d8] sm:$0xff]  }
 0x167   : > { %6327 = vmatmul.mubr.msk.bf16.gmra.mrb[104].mxu1 %vm816_vm1, %v6947_v22  ;;  %6459 = vmatmul.mubr.msk.bf16.gmra.mrb[104].mxu0 %vm816_vm1, %v6948_v35  ;;  %v6954_v35 = vld [vmem:[%s7570_s29 + $0x1e0] sm:$0xff]  }
 0x168   : > { %6330 = vmatprep.mubr.msk.bf16.mxu1 %vm816_vm1, %v6949_v3  ;;  %6462 = vmatprep.mubr.msk.bf16.mxu0 %vm816_vm1, %v6950_v51 }
 0x16a   : > { %v6356_v38 = vpop.f32.mrb[0].mxu0 }
 0x16b   : > { %v6486_v54 = vadd.f32 %v6356_v38, %v7798_v55  ;;  %v3318_v49 = vpop.f32.mrb[1].mxu0  ;;  %v6955_v38 = vld [vmem:[%s7570_s29 + $0x1c8] sm:$0xff]  }
 0x16c   : > { %v6487_v22 = vadd.f32 %v3318_v49, %v7800_v56  ;;  %v6357_v28 = vpop.f32.mrb[2].mxu0 }
 0x16d   : > { %v8066_v3 = vadd.f32 %v6486_v54, %v8057_v44  ;;  %v6488_v51 = vadd.f32 %v6357_v28, %v7803_v58  ;;  %v3321_v19 = vpop.f32.mrb[3].mxu0 }
 0x16e   : > { %v8070_v6 = vadd.f32 %v6487_v22, %v8057_v44  ;;  %v6489_v1 = vadd.f32 %v3321_v19, %v7807_v61 }
 0x16f   : > { %6331 = vmatmul.mubr.msk.bf16.gmra.mrb[108].mxu1 %vm816_vm1, %v6951_v12  ;;  %v4094_v55 = vsub.f32 0.0, %v8066_v3  ;;  %v8076_v56 = vadd.f32 %v6488_v51, %v8057_v44  ;;  %6463 = vmatmul.mubr.msk.bf16.gmra.mrb[108].mxu0 %vm816_vm1, %v6952_v17  ;;  %v6956_v51 = vld [vmem:[%s7570_s29 + $0x1e8] sm:$0xff]  }
 0x170   : > { %6334 = vmatprep.mubr.msk.bf16.mxu1 %vm816_vm1, %v6953_v33  ;;  %v4092_v58 = vsub.f32 0.0, %v8070_v6  ;;  %v8082_v28 = vadd.f32 %v6489_v1, %v8057_v44  ;;  %6466 = vmatprep.mubr.msk.bf16.mxu0 %vm816_vm1, %v6954_v35 }
 0x171   : > { %v4224_v61 = vmul.f32 1.442695, %v4094_v55  ;;  %v4095_v19 = vsub.f32 0.0, %v8076_v56 }
 0x172   : > { %v4220_v12 = vmul.f32 1.442695, %v4092_v58  ;;  %v4093_v49 = vsub.f32 0.0, %v8082_v28  ;;  %v6360_v54 = vpop.f32.mrb[4].mxu0 }
 0x173   : > { %6969 = vpow2.f32 %v4224_v61  ;;  %v4226_v17 = vmul.f32 1.442695, %v4095_v19  ;;  %v6490_v33 = vadd.f32 %v6360_v54, %v7814_v63  ;;  %v3334_v22 = vpop.f32.mrb[5].mxu0 }
 0x174   : > { %6971 = vpow2.f32 %v4220_v12  ;;  %v4222_v1 = vmul.f32 1.442695, %v4093_v49  ;;  %v6491_v35 = vadd.f32 %v3334_v22, %v7816_v0  ;;  %v6361_v55 = vpop.f32.mrb[6].mxu0  ;;  %v6960_v22 = vld [vmem:[%s7570_s29 + $0x1f8] sm:$0xff]  }
 0x175   : > { %6973 = vpow2.f32 %v4226_v17  ;;  %v8094_v58 = vadd.f32 %v6490_v33, %v8057_v44  ;;  %v6492_v46 = vadd.f32 %v6361_v55, %v7819_v2  ;;  %v3337_v43 = vpop.f32.mrb[7].mxu0  ;;  %v6962_v55 = vld [vmem:[%s7570_s29 + $0x200] sm:$0xff]  }
 0x176   : > { %6975 = vpow2.f32 %v4222_v1  ;;  %v8098_v63 = vadd.f32 %v6491_v35, %v8057_v44  ;;  %v6493_v61 = vadd.f32 %v3337_v43, %v7823_v5 }
 0x177   : > { %6335 = vmatmul.mubr.msk.bf16.gmra.mrb[112].mxu1 %vm816_vm1, %v6955_v38  ;;  %v4098_v0 = vsub.f32 0.0, %v8094_v58  ;;  %v8104_v19 = vadd.f32 %v6492_v46, %v8057_v44  ;;  %6467 = vmatmul.mubr.msk.bf16.gmra.mrb[112].mxu0 %vm816_vm1, %v6956_v51  ;;  %v6959_v38 = vld [vmem:[%s7570_s29 + $0x1d8] sm:$0xff]   ;;  %v6961_v51 = vld [vmem:[%s7570_s29 + $0x1e0] sm:$0xff]  }
 0x178   : > { %6338 = vmatprep.mubr.msk.bf16.mxu1 %vm816_vm1, %v6957_v60  ;;  %v4096_v2 = vsub.f32 0.0, %v8098_v63  ;;  %v8110_v12 = vadd.f32 %v6493_v61, %v8057_v44  ;;  %6470 = vmatprep.mubr.msk.bf16.mxu0 %vm816_vm1, %v6958_v52 }
 0x179   : > { %v4232_v5 = vmul.f32 1.442695, %v4098_v0  ;;  %v4099_v43 = vsub.f32 0.0, %v8104_v19 }
 0x17a   : > { %v4228_v49 = vmul.f32 1.442695, %v4096_v2  ;;  %v4097_v46 = vsub.f32 0.0, %v8110_v12  ;;  %v6364_v54 = vpop.f32.mrb[8].mxu0 }
 0x17b   : > { %6977 = vpow2.f32 %v4232_v5  ;;  %v4234_v17 = vmul.f32 1.442695, %v4099_v43  ;;  %v6494_v60 = vadd.f32 %v6364_v54, %v7830_v7  ;;  %v3350_v33 = vpop.f32.mrb[9].mxu0 }
 0x17c   : > { %6979 = vpow2.f32 %v4228_v49  ;;  %v4230_v1 = vmul.f32 1.442695, %v4097_v46  ;;  %v6495_v52 = vadd.f32 %v3350_v33, %v7832_v8  ;;  %v6365_v35 = vpop.f32.mrb[10].mxu0 }
 0x17d   : > { %v6970_v61 = vpop.eup %6969  ;;  %6981 = vpow2.f32 %v4234_v17  ;;  %v8122_v0 = vadd.f32 %v6494_v60, %v8057_v44  ;;  %v6496_v2 = vadd.f32 %v6365_v35, %v7835_v10  ;;  %v3353_v5 = vpop.f32.mrb[11].mxu0  ;;  %v6963_v35 = vld [vmem:[%s7570_s29 + $0x1e8] sm:$0xff]  }
 0x17e   : > { %v6972_v43 = vpop.eup %6971  ;;  %v4478_v41 = vadd.f32 1.0, %v6970_v61  ;;  %6983 = vpow2.f32 %v4230_v1  ;;  %v8126_v7 = vadd.f32 %v6495_v52, %v8057_v44  ;;  %v6497_v49 = vadd.f32 %v3353_v5, %v7839_v13 }
 0x17f   : > { %6339 = vmatmul.mubr.msk.bf16.gmra.mrb[116].mxu1 %vm816_vm1, %v6959_v38  ;;  %v6974_v8 = vpop.eup %6973  ;;  %v4476_v46 = vadd.f32 1.0, %v6972_v43  ;;  %v4102_v54 = vsub.f32 0.0, %v8122_v0  ;;  %v8132_v17 = vadd.f32 %v6496_v2, %v8057_v44  ;;  %6471 = vmatmul.mubr.msk.bf16.gmra.mrb[116].mxu0 %vm816_vm1, %v6960_v22  ;;  %v6964_v43 = vld [vmem:[%s7570_s29 + $0x208] sm:$0xff]  }
 0x180   : > { %6342 = vmatprep.mubr.msk.bf16.mxu1 %vm816_vm1, %v6961_v51  ;;  %v6976_v10 = vpop.eup %6975  ;;  %6985 = vrcp.f32 %v4478_v41  ;;  %v4479_v60 = vadd.f32 1.0, %v6974_v8  ;;  %v4100_v33 = vsub.f32 0.0, %v8126_v7  ;;  %v8138_v13 = vadd.f32 %v6497_v49, %v8057_v44  ;;  %6474 = vmatprep.mubr.msk.bf16.mxu0 %vm816_vm1, %v6962_v55  ;;  %v6965_v49 = vld [vmem:[%s7570_s29 + $0x1f0] sm:$0xff]  }
 0x181   : > { %6987 = vrcp.f32 %v4476_v46  ;;  %v4477_v38 = vadd.f32 1.0, %v6976_v10  ;;  %v4240_v1 = vmul.f32 1.442695, %v4102_v54  ;;  %v4103_v22 = vsub.f32 0.0, %v8132_v17  ;;  %v6966_v54 = vld [vmem:[%s7570_s29 + $0x210] sm:$0xff]  }
 0x182   : > { %6989 = vrcp.f32 %v4479_v60  ;;  %v4236_v51 = vmul.f32 1.442695, %v4100_v33  ;;  %v4101_v41 = vsub.f32 0.0, %v8138_v13  ;;  %v6368_v52 = vpop.f32.mrb[12].mxu0 }
 0x183   : > { %6991 = vrcp.f32 %v4477_v38  ;;  %v4242_v61 = vmul.f32 1.442695, %v4103_v22  ;;  %v6498_v2 = vadd.f32 %v6368_v52, %v7846_v15  ;;  %v3366_v5 = vpop.f32.mrb[13].mxu0 }
 0x184   : > { %6993 = vpow2.f32 %v4240_v1  ;;  %v4238_v55 = vmul.f32 1.442695, %v4101_v41  ;;  %v6499_v8 = vadd.f32 %v3366_v5, %v7848_v16  ;;  %v6369_v46 = vpop.f32.mrb[14].mxu0 }
 0x185   : > { %v6978_v10 = vpop.eup %6977  ;;  %6995 = vpow2.f32 %v4236_v51  ;;  %v8150_v60 = vadd.f32 %v6498_v2, %v8057_v44  ;;  %v6500_v33 = vadd.f32 %v6369_v46, %v7851_v18  ;;  %v3369_v38 = vpop.f32.mrb[15].mxu0 }
 0x186   : > { %v6980_v22 = vpop.eup %6979  ;;  %v4482_v15 = vadd.f32 1.0, %v6978_v10  ;;  %6997 = vpow2.f32 %v4242_v61  ;;  %v8154_v52 = vadd.f32 %v6499_v8, %v8057_v44  ;;  %v6501_v1 = vadd.f32 %v3369_v38, %v7855_v21 }
 0x187   : > { %6343 = vmatmul.mubr.msk.bf16.gmra.mrb[120].mxu1 %vm816_vm1, %v6963_v35  ;;  %v6982_v16 = vpop.eup %6981  ;;  %v4480_v41 = vadd.f32 1.0, %v6980_v22  ;;  %6999 = vpow2.f32 %v4238_v55  ;;  %v4106_v51 = vsub.f32 0.0, %v8150_v60  ;;  %v8161_v2 = vadd.f32 %v6500_v33, %v8057_v44  ;;  %6475 = vmatmul.mubr.msk.bf16.gmra.mrb[120].mxu0 %vm816_vm1, %v6964_v43 }
 0x188   : > { %6346 = vmatprep.mubr.msk.bf16.mxu1 %vm816_vm1, %v6965_v49  ;;  %v6984_v18 = vpop.eup %6983  ;;  %7001 = vrcp.f32 %v4482_v15  ;;  %v4483_v61 = vadd.f32 1.0, %v6982_v16  ;;  %v4104_v21 = vsub.f32 0.0, %v8154_v52  ;;  %v8167_v35 = vadd.f32 %v6501_v1, %v8057_v44  ;;  %6478 = vmatprep.mubr.msk.bf16.mxu0 %vm816_vm1, %v6966_v54  ;;  %v6967_v54 = vld [vmem:[%s7570_s29 + $0x1f8] sm:$0xff]  }
 0x189   : > { %7003 = vrcp.f32 %v4480_v41  ;;  %v4481_v5 = vadd.f32 1.0, %v6984_v18  ;;  %v4248_v55 = vmul.f32 1.442695, %v4106_v51  ;;  %v4107_v8 = vsub.f32 0.0, %v8161_v2  ;;  %v6968_v16 = vld [vmem:[%s7570_s29 + $0x218] sm:$0xff]  }
 0x18a   : > { %v6986_v43 = vpop.eup %6985  ;;  %7005 = vrcp.f32 %v4483_v61  ;;  %v4244_v49 = vmul.f32 1.442695, %v4104_v21  ;;  %v4105_v46 = vsub.f32 0.0, %v8167_v35  ;;  %v6372_v10 = vpop.f32.mrb[16].mxu0 }
 0x18b   : > { %v6988_v33 = vpop.eup %6987  ;;  %v4862_v38 = vmul.f32 %v6986_v43, %v8066_v3  ;;  %7007 = vrcp.f32 %v4481_v5  ;;  %v4250_v22 = vmul.f32 1.442695, %v4107_v8  ;;  %v6502_v15 = vadd.f32 %v6372_v10, %v7862_v23  ;;  %v3382_v1 = vpop.f32.mrb[17].mxu0 }
 0x18c   : > { %v6990_v41 = vpop.eup %6989  ;;  %v4860_v51 = vmul.f32 %v6988_v33, %v8070_v6  ;;  %7009 = vpow2.f32 %v4248_v55  ;;  %v4246_v18 = vmul.f32 1.442695, %v4105_v46  ;;  %v6503_v61 = vadd.f32 %v3382_v1, %v7864_v24  ;;  %v6373_v21 = vpop.f32.mrb[18].mxu0 }
 0x18d   : > { %v6992_v36 = vpop.eup %6991  ;;  %4991 = vst.msk [vmem:[%s8174_s10 + $0x10] sm:$0xff] %vm4988_vm2, %v4862_v38  ;;  %v4863_v3 = vmul.f32 %v6990_v41, %v8076_v56  ;;  %7011 = vpow2.f32 %v4244_v49  ;;  %v8187_v23 = vadd.f32 %v6502_v15, %v8057_v44  ;;  %v6504_v5 = vadd.f32 %v6373_v21, %v7867_v26  ;;  %v3385_v8 = vpop.f32.mrb[19].mxu0 }
 0x18e   : > { %v6994_v6 = vpop.eup %6993  ;;  %4989 = vst.msk [vmem:[%s8174_s10] sm:$0xff] %vm4988_vm2, %v4860_v51  ;;  %v4861_v24 = vmul.f32 %v6992_v36, %v8082_v28  ;;  %7013 = vpow2.f32 %v4250_v22  ;;  %v8194_v55 = vadd.f32 %v6503_v61, %v8057_v44  ;;  %v6505_v43 = vadd.f32 %v3385_v8, %v7871_v29 }
 0x18f   : > { %6347 = vmatmul.mubr.msk.bf16.gmra.mrb[124].mxu1 %vm816_vm1, %v6967_v54  ;;  %v6996_v56 = vpop.eup %6995  ;;  %4992 = vst.msk [vmem:[%s8174_s10 + $0x18] sm:$0xff] %vm4988_vm2, %v4863_v3  ;;  %v4486_v49 = vadd.f32 1.0, %v6994_v6  ;;  %7015 = vpow2.f32 %v4246_v18  ;;  %v4110_v26 = vsub.f32 0.0, %v8187_v23  ;;  %v8202_v46 = vadd.f32 %v6504_v5, %v8057_v44  ;;  %6479 = vmatmul.mubr.msk.bf16.gmra.mrb[124].mxu0 %vm816_vm1, %v6968_v16 }
 0x190   : > { %v6998_v36 = vpop.eup %6997  ;;  %4990 = vst.msk [vmem:[%s8174_s10 + $0x8] sm:$0xff] %vm4988_vm2, %v4861_v24  ;;  %v4484_v28 = vadd.f32 1.0, %v6996_v56  ;;  %v4108_v29 = vsub.f32 0.0, %v8194_v55  ;;  %v8209_v10 = vadd.f32 %v6505_v43, %v8057_v44 }
 0x191   : > { %v7000_v54 = vpop.eup %6999  ;;  %7017 = vrcp.f32 %v4486_v49  ;;  %v4487_v33 = vadd.f32 1.0, %v6998_v36  ;;  %v4256_v38 = vmul.f32 1.442695, %v4110_v26  ;;  %v4111_v22 = vsub.f32 0.0, %v8202_v46 }
 0x192   : > { %v7002_v15 = vpop.eup %7001  ;;  %7019 = vrcp.f32 %v4484_v28  ;;  %v4485_v1 = vadd.f32 1.0, %v7000_v54  ;;  %v4252_v41 = vmul.f32 1.442695, %v4108_v29  ;;  %v4109_v16 = vsub.f32 0.0, %v8209_v10  ;;  %v6376_v51 = vpop.f32.mrb[20].mxu0 }
 0x193   : > { %v7004_v18 = vpop.eup %7003  ;;  %v4866_v61 = vmul.f32 %v7002_v15, %v8094_v58  ;;  %7021 = vrcp.f32 %v4487_v33  ;;  %v4258_v21 = vmul.f32 1.442695, %v4111_v22  ;;  %v6506_v3 = vadd.f32 %v6376_v51, %v7878_v31  ;;  %v3398_v5 = vpop.f32.mrb[21].mxu0 }
 0x194   : > { %v7006_v8 = vpop.eup %7005  ;;  %v4864_v6 = vmul.f32 %v7004_v18, %v8098_v63  ;;  %7023 = vrcp.f32 %v4485_v1  ;;  %v4254_v24 = vmul.f32 1.442695, %v4109_v16  ;;  %v6507_v43 = vadd.f32 %v3398_v5, %v7880_v32  ;;  %v6377_v56 = vpop.f32.mrb[22].mxu0 }
 0x195   : > { %v7008_v49 = vpop.eup %7007  ;;  %4995 = vst.msk [vmem:[%s8174_s10 + $0x30] sm:$0xff] %vm4988_vm2, %v4866_v61  ;;  %v4867_v58 = vmul.f32 %v7006_v8, %v8104_v19  ;;  %7025 = vpow2.f32 %v4256_v38  ;;  %v8221_v26 = vadd.f32 %v6506_v3, %v8057_v44  ;;  %v6508_v31 = vadd.f32 %v6377_v56, %v7883_v34  ;;  %v3401_v36 = vpop.f32.mrb[23].mxu0 }
 0x196   : > { %v7010_v63 = vpop.eup %7009  ;;  %4993 = vst.msk [vmem:[%s8174_s10 + $0x20] sm:$0xff] %vm4988_vm2, %v4864_v6  ;;  %v4865_v32 = vmul.f32 %v7008_v49, %v8110_v12  ;;  %7027 = vpow2.f32 %v4252_v41  ;;  %v8228_v28 = vadd.f32 %v6507_v43, %v8057_v44  ;;  %v6509_v29 = vadd.f32 %v3401_v36, %v7887_v37 }
 0x197   : > { %v7012_v19 = vpop.eup %7011  ;;  %4996 = vst.msk [vmem:[%s8174_s10 + $0x38] sm:$0xff] %vm4988_vm2, %v4867_v58  ;;  %v4490_v54 = vadd.f32 1.0, %v7010_v63  ;;  %7029 = vpow2.f32 %v4258_v21  ;;  %v4114_v33 = vsub.f32 0.0, %v8221_v26  ;;  %v8235_v34 = vadd.f32 %v6508_v31, %v8057_v44 }
 0x198   : > { %v7014_v38 = vpop.eup %7013  ;;  %4994 = vst.msk [vmem:[%s8174_s10 + $0x28] sm:$0xff] %vm4988_vm2, %v4865_v32  ;;  %v4488_v12 = vadd.f32 1.0, %v7012_v19  ;;  %7031 = vpow2.f32 %v4254_v24  ;;  %v4112_v22 = vsub.f32 0.0, %v8228_v28  ;;  %v8241_v15 = vadd.f32 %v6509_v29, %v8057_v44 }
 0x199   : > { %v7016_v37 = vpop.eup %7015  ;;  %7033 = vrcp.f32 %v4490_v54  ;;  %v4491_v1 = vadd.f32 1.0, %v7014_v38  ;;  %v4264_v41 = vmul.f32 1.442695, %v4114_v33  ;;  %v4115_v16 = vsub.f32 0.0, %v8235_v34 }
 0x19a   : > { %7035 = vrcp.f32 %v4488_v12  ;;  %v4489_v51 = vadd.f32 1.0, %v7016_v37  ;;  %v4260_v18 = vmul.f32 1.442695, %v4112_v22  ;;  %v4113_v61 = vsub.f32 0.0, %v8241_v15  ;;  %v6380_v21 = vpop.f32.mrb[24].mxu0 }
 0x19b   : > { %v7018_v3 = vpop.eup %7017  ;;  %7037 = vrcp.f32 %v4491_v1  ;;  %v4266_v5 = vmul.f32 1.442695, %v4115_v16  ;;  %v6510_v8 = vadd.f32 %v6380_v21, %v7894_v39  ;;  %v3414_v6 = vpop.f32.mrb[25].mxu0 }
 0x19c   : > { %v7020_v24 = vpop.eup %7019  ;;  %v4870_v43 = vmul.f32 %v7018_v3, %v8122_v0  ;;  %7039 = vrcp.f32 %v4489_v51  ;;  %v4262_v56 = vmul.f32 1.442695, %v4113_v61  ;;  %v6511_v49 = vadd.f32 %v3414_v6, %v7896_v40  ;;  %v6381_v58 = vpop.f32.mrb[26].mxu0 }
 0x19d   : > { %v7022_v31 = vpop.eup %7021  ;;  %v4868_v36 = vmul.f32 %v7020_v24, %v8126_v7  ;;  %7041 = vpow2.f32 %v4264_v41  ;;  %v8250_v63 = vadd.f32 %v6510_v8, %v8057_v44  ;;  %v6512_v39 = vadd.f32 %v6381_v58, %v7899_v42  ;;  %v3417_v32 = vpop.f32.mrb[27].mxu0 }
 0x19e   : > { %v7024_v29 = vpop.eup %7023  ;;  %4999 = vst.msk [vmem:[%s8174_s10 + $0x50] sm:$0xff] %vm4988_vm2, %v4870_v43  ;;  %v4871_v0 = vmul.f32 %v7022_v31, %v8132_v17  ;;  %7043 = vpow2.f32 %v4260_v18  ;;  %v8257_v40 = vadd.f32 %v6511_v49, %v8057_v44  ;;  %v6513_v7 = vadd.f32 %v3417_v32, %v7903_v45 }
 0x19f   : > { %v7026_v19 = vpop.eup %7025  ;;  %4997 = vst.msk [vmem:[%s8174_s10 + $0x40] sm:$0xff] %vm4988_vm2, %v4868_v36  ;;  %v4869_v54 = vmul.f32 %v7024_v29, %v8138_v13  ;;  %7045 = vpow2.f32 %v4266_v5  ;;  %v4118_v42 = vsub.f32 0.0, %v8250_v63  ;;  %v8265_v33 = vadd.f32 %v6512_v39, %v8057_v44 }
 0x1a0   : > { %v7028_v38 = vpop.eup %7027  ;;  %5000 = vst.msk [vmem:[%s8174_s10 + $0x58] sm:$0xff] %vm4988_vm2, %v4871_v0  ;;  %v4494_v17 = vadd.f32 1.0, %v7026_v19  ;;  %7047 = vpow2.f32 %v4262_v56  ;;  %v4116_v12 = vsub.f32 0.0, %v8257_v40  ;;  %v8271_v45 = vadd.f32 %v6513_v7, %v8057_v44 }
 0x1a1   : > { %v7030_v22 = vpop.eup %7029  ;;  %4998 = vst.msk [vmem:[%s8174_s10 + $0x48] sm:$0xff] %vm4988_vm2, %v4869_v54  ;;  %v4492_v13 = vadd.f32 1.0, %v7028_v38  ;;  %v4272_v37 = vmul.f32 1.442695, %v4118_v42  ;;  %v4119_v1 = vsub.f32 0.0, %v8265_v33 }
 0x1a2   : > { %v7032_v41 = vpop.eup %7031  ;;  %7049 = vrcp.f32 %v4494_v17  ;;  %v4495_v16 = vadd.f32 1.0, %v7030_v22  ;;  %v4268_v51 = vmul.f32 1.442695, %v4116_v12  ;;  %v4117_v18 = vsub.f32 0.0, %v8271_v45  ;;  %v6384_v61 = vpop.f32.mrb[28].mxu0 }
 0x1a3   : > { %v7034_v21 = vpop.eup %7033  ;;  %7051 = vrcp.f32 %v4492_v13  ;;  %v4493_v3 = vadd.f32 1.0, %v7032_v41  ;;  %v4274_v5 = vmul.f32 1.442695, %v4119_v1  ;;  %v6514_v8 = vadd.f32 %v6384_v61, %v7910_v47  ;;  %v3430_v6 = vpop.f32.mrb[29].mxu0 }
 0x1a4   : > { %v7036_v24 = vpop.eup %7035  ;;  %v4874_v43 = vmul.f32 %v7034_v21, %v8150_v60  ;;  %7053 = vrcp.f32 %v4495_v16  ;;  %v4270_v56 = vmul.f32 1.442695, %v4117_v18  ;;  %v6515_v49 = vadd.f32 %v3430_v6, %v7912_v48  ;;  %v6385_v58 = vpop.f32.mrb[30].mxu0 }
 0x1a5   : > { %v7038_v31 = vpop.eup %7037  ;;  %v4872_v36 = vmul.f32 %v7036_v24, %v8154_v52  ;;  %7055 = vrcp.f32 %v4493_v3  ;;  %v8282_v39 = vadd.f32 %v6514_v8, %v8057_v44  ;;  %v6516_v47 = vadd.f32 %v6385_v58, %v7915_v50  ;;  %v3433_v32 = vpop.f32.mrb[31].mxu0 }
 0x1a6   : > { %v7040_v29 = vpop.eup %7039  ;;  %5003 = vst.msk [vmem:[%s8174_s10 + $0x70] sm:$0xff] %vm4988_vm2, %v4874_v43  ;;  %v4875_v60 = vmul.f32 %v7038_v31, %v8161_v2  ;;  %7057 = vpow2.f32 %v4272_v37  ;;  %v8289_v48 = vadd.f32 %v6515_v49, %v8057_v44  ;;  %v6517_v52 = vadd.f32 %v3433_v32, %v7919_v53 }
 0x1a7   : > { %v7042_v0 = vpop.eup %7041  ;;  %5001 = vst.msk [vmem:[%s8174_s10 + $0x60] sm:$0xff] %vm4988_vm2, %v4872_v36  ;;  %v4873_v7 = vmul.f32 %v7040_v29, %v8167_v35  ;;  %7059 = vpow2.f32 %v4268_v51  ;;  %v4122_v50 = vsub.f32 0.0, %v8282_v39  ;;  %v8297_v19 = vadd.f32 %v6516_v47, %v8057_v44 }
 0x1a8   : > { %v7044_v54 = vpop.eup %7043  ;;  %5004 = vst.msk [vmem:[%s8174_s10 + $0x78] sm:$0xff] %vm4988_vm2, %v4875_v60  ;;  %v4498_v2 = vadd.f32 1.0, %v7042_v0  ;;  %7061 = vpow2.f32 %v4274_v5  ;;  %v4120_v42 = vsub.f32 0.0, %v8289_v48  ;;  %v8303_v53 = vadd.f32 %v6517_v52, %v8057_v44 }
 0x1a9   : > { %v7046_v38 = vpop.eup %7045  ;;  %5002 = vst.msk [vmem:[%s8174_s10 + $0x68] sm:$0xff] %vm4988_vm2, %v4873_v7  ;;  %v4496_v35 = vadd.f32 1.0, %v7044_v54  ;;  %7063 = vpow2.f32 %v4270_v56  ;;  %v4123_v17 = vsub.f32 0.0, %v8297_v19  ;;  %v4280_v13 = vmul.f32 1.442695, %v4122_v50 }
 0x1aa   : > { %v7048_v12 = vpop.eup %7047  ;;  %7065 = vrcp.f32 %v4498_v2  ;;  %v4499_v22 = vadd.f32 1.0, %v7046_v38  ;;  %v4121_v37 = vsub.f32 0.0, %v8303_v53  ;;  %v6388_v1 = vpop.f32.mrb[32].mxu0  ;;  %v4276_v16 = vmul.f32 1.442695, %v4120_v42 }
 0x1ab   : > { %7067 = vrcp.f32 %v4496_v35  ;;  %v4497_v41 = vadd.f32 1.0, %v7048_v12  ;;  %v6518_v51 = vadd.f32 %v6388_v1, %v7926_v57  ;;  %v3446_v18 = vpop.f32.mrb[33].mxu0  ;;  %v4282_v21 = vmul.f32 1.442695, %v4123_v17 }
 0x1ac   : > { %v7050_v61 = vpop.eup %7049  ;;  %7069 = vrcp.f32 %v4499_v22  ;;  %v4278_v3 = vmul.f32 1.442695, %v4121_v37  ;;  %v6519_v5 = vadd.f32 %v3446_v18, %v7928_v59  ;;  %v6389_v8 = vpop.f32.mrb[34].mxu0 }
 0x1ad   : > { %v7052_v6 = vpop.eup %7051  ;;  %v4878_v24 = vmul.f32 %v7050_v61, %v8187_v23  ;;  %7071 = vrcp.f32 %v4497_v41  ;;  %v8313_v43 = vadd.f32 %v6518_v51, %v8057_v44  ;;  %v6520_v56 = vadd.f32 %v6389_v8, %v7931_v62  ;;  %v3449_v57 = vpop.f32.mrb[35].mxu0 }
 0x1ae   : > { %v7054_v49 = vpop.eup %7053  ;;  %v4876_v58 = vmul.f32 %v7052_v6, %v8194_v55  ;;  %7073 = vpow2.f32 %v4280_v13  ;;  %v8318_v31 = vadd.f32 %v6519_v5, %v8057_v44  ;;  %v6521_v59 = vadd.f32 %v3449_v57, %v7935_v4 }
 0x1af   : > { %v7056_v36 = vpop.eup %7055  ;;  %5007 = vst.msk [vmem:[%s8174_s10 + $0x90] sm:$0xff] %vm4988_vm2, %v4878_v24  ;;  %v4879_v23 = vmul.f32 %v7054_v49, %v8202_v46  ;;  %7075 = vpow2.f32 %v4276_v16  ;;  %v4126_v62 = vsub.f32 0.0, %v8313_v43  ;;  %v8326_v47 = vadd.f32 %v6520_v56, %v8057_v44 }
 0x1b0   : > { %v7058_v55 = vpop.eup %7057  ;;  %5005 = vst.msk [vmem:[%s8174_s10 + $0x80] sm:$0xff] %vm4988_vm2, %v4876_v58  ;;  %v4877_v32 = vmul.f32 %v7056_v36, %v8209_v10  ;;  %7077 = vpow2.f32 %v4282_v21  ;;  %v4124_v4 = vsub.f32 0.0, %v8318_v31  ;;  %v8333_v29 = vadd.f32 %v6521_v59, %v8057_v44 }
 0x1b1   : > { %v7060_v60 = vpop.eup %7059  ;;  %5008 = vst.msk [vmem:[%s8174_s10 + $0x98] sm:$0xff] %vm4988_vm2, %v4879_v23  ;;  %v4502_v46 = vadd.f32 1.0, %v7058_v55  ;;  %7079 = vpow2.f32 %v4278_v3  ;;  %v4288_v52 = vmul.f32 1.442695, %v4126_v62  ;;  %v4127_v0 = vsub.f32 0.0, %v8326_v47 }
 0x1b2   : > { %v7062_v7 = vpop.eup %7061  ;;  %5006 = vst.msk [vmem:[%s8174_s10 + $0x88] sm:$0xff] %vm4988_vm2, %v4877_v32  ;;  %v4500_v50 = vadd.f32 1.0, %v7060_v60  ;;  %v4284_v54 = vmul.f32 1.442695, %v4124_v4  ;;  %v4125_v10 = vsub.f32 0.0, %v8333_v29  ;;  %v6392_v2 = vpop.f32.mrb[36].mxu0 }
 0x1b3   : > { %v7064_v42 = vpop.eup %7063  ;;  %7081 = vrcp.f32 %v4502_v46  ;;  %v4503_v38 = vadd.f32 1.0, %v7062_v7  ;;  %v4290_v35 = vmul.f32 1.442695, %v4127_v0  ;;  %v6522_v17 = vadd.f32 %v6392_v2, %v7942_v9  ;;  %v3462_v12 = vpop.f32.mrb[37].mxu0 }
 0x1b4   : > { %v7066_v22 = vpop.eup %7065  ;;  %7083 = vrcp.f32 %v4500_v50  ;;  %v4501_v13 = vadd.f32 1.0, %v7064_v42  ;;  %v4286_v37 = vmul.f32 1.442695, %v4125_v10  ;;  %v6523_v1 = vadd.f32 %v3462_v12, %v7944_v11  ;;  %v6393_v41 = vpop.f32.mrb[38].mxu0 }
 0x1b5   : > { %v7068_v16 = vpop.eup %7067  ;;  %v4882_v51 = vmul.f32 %v7066_v22, %v8221_v26  ;;  %7085 = vrcp.f32 %v4503_v38  ;;  %v8345_v18 = vadd.f32 %v6522_v17, %v8057_v44  ;;  %v6524_v61 = vadd.f32 %v6393_v41, %v7947_v14  ;;  %v3465_v9 = vpop.f32.mrb[39].mxu0 }
 0x1b6   : > { %v7070_v21 = vpop.eup %7069  ;;  %v4880_v3 = vmul.f32 %v7068_v16, %v8228_v28  ;;  %7087 = vrcp.f32 %v4501_v13  ;;  %v8350_v5 = vadd.f32 %v6523_v1, %v8057_v44  ;;  %v6525_v11 = vadd.f32 %v3465_v9, %v7951_v20 }
 0x1b7   : > { %v7072_v8 = vpop.eup %7071  ;;  %5011 = vst.msk [vmem:[%s8174_s10 + $0xb0] sm:$0xff] %vm4988_vm2, %v4882_v51  ;;  %v4883_v26 = vmul.f32 %v7070_v21, %v8235_v34  ;;  %7089 = vpow2.f32 %v4288_v52  ;;  %v4130_v14 = vsub.f32 0.0, %v8345_v18  ;;  %v8358_v6 = vadd.f32 %v6524_v61, %v8057_v44 }
 0x1b8   : > { %v7074_v28 = vpop.eup %7073  ;;  %5009 = vst.msk [vmem:[%s8174_s10 + $0xa0] sm:$0xff] %vm4988_vm2, %v4880_v3  ;;  %v4881_v24 = vmul.f32 %v7072_v8, %v8241_v15  ;;  %7091 = vpow2.f32 %v4284_v54  ;;  %v4128_v20 = vsub.f32 0.0, %v8350_v5  ;;  %v8365_v56 = vadd.f32 %v6525_v11, %v8057_v44 }
 0x1b9   : > { %v7076_v57 = vpop.eup %7075  ;;  %5012 = vst.msk [vmem:[%s8174_s10 + $0xb8] sm:$0xff] %vm4988_vm2, %v4883_v26  ;;  %v4506_v34 = vadd.f32 1.0, %v7074_v28  ;;  %7093 = vpow2.f32 %v4290_v35  ;;  %v4131_v49 = vsub.f32 0.0, %v8358_v6  ;;  %v4296_v36 = vmul.f32 1.442695, %v4130_v14 }
 0x1ba   : > { %v7078_v58 = vpop.eup %7077  ;;  %5010 = vst.msk [vmem:[%s8174_s10 + $0xa8] sm:$0xff] %vm4988_vm2, %v4881_v24  ;;  %v4504_v59 = vadd.f32 1.0, %v7076_v57  ;;  %7095 = vpow2.f32 %v4286_v37  ;;  %v4129_v15 = vsub.f32 0.0, %v8365_v56  ;;  %v6396_v23 = vpop.f32.mrb[40].mxu0  ;;  %v4292_v32 = vmul.f32 1.442695, %v4128_v20 }
 0x1bb   : > { %v7080_v62 = vpop.eup %7079  ;;  %7097 = vrcp.f32 %v4506_v34  ;;  %v4507_v55 = vadd.f32 1.0, %v7078_v58  ;;  %v6526_v4 = vadd.f32 %v6396_v23, %v7958_v25  ;;  %v3478_v60 = vpop.f32.mrb[41].mxu0  ;;  %v4298_v52 = vmul.f32 1.442695, %v4131_v49  ;;  %v9107_v49 = vld [vmem:[#allocation4_spill] sm:$0xff] }
 0x1bc   : > { %7099 = vrcp.f32 %v4504_v59  ;;  %v4505_v46 = vadd.f32 1.0, %v7080_v62  ;;  %v6527_v0 = vadd.f32 %v3478_v60, %v7960_v27  ;;  %v6397_v7 = vpop.f32.mrb[42].mxu0  ;;  %v4294_v54 = vmul.f32 1.442695, %v4129_v15  ;;  %v9105_v27 = vld [vmem:[#allocation2_spill] sm:$0xff]  ;;  %v9108_v62 = vld [vmem:[#allocation5_spill] sm:$0xff] }
 0x1bd   : > { %v7082_v50 = vpop.eup %7081  ;;  %7101 = vrcp.f32 %v4507_v55  ;;  %v8376_v10 = vadd.f32 %v6526_v4, %v8057_v44  ;;  %v6528_v2 = vadd.f32 %v6397_v7, %v7963_v30  ;;  %v3481_v42 = vpop.f32.mrb[43].mxu0 }
 0x1be   : > { %v7084_v38 = vpop.eup %7083  ;;  %v4886_v25 = vmul.f32 %v7082_v50, %v8250_v63  ;;  %7103 = vrcp.f32 %v4505_v46  ;;  %v8381_v35 = vadd.f32 %v6527_v0, %v8057_v44  ;;  %v6529_v17 = vadd.f32 %v3481_v42, %v9105_v27 }
 0x1bf   : > { %v7086_v12 = vpop.eup %7085  ;;  %v4884_v22 = vmul.f32 %v7084_v38, %v8257_v40  ;;  %7105 = vpow2.f32 %v4296_v36  ;;  %v4134_v13 = vsub.f32 0.0, %v8376_v10  ;;  %v8387_v30 = vadd.f32 %v6528_v2, %v8057_v44 }
 0x1c0   : > { %v7088_v37 = vpop.eup %7087  ;;  %5015 = vst.msk [vmem:[%s8174_s10 + $0xd0] sm:$0xff] %vm4988_vm2, %v4886_v25  ;;  %v4887_v63 = vmul.f32 %v7086_v12, %v8265_v33  ;;  %7107 = vpow2.f32 %v4292_v32  ;;  %v4132_v1 = vsub.f32 0.0, %v8381_v35  ;;  %v8394_v41 = vadd.f32 %v6529_v17, %v8057_v44  ;;  %v8428_v25 = vld [vmem:[%s9082_s2] ss:$0 sm:$0xff] }
 0x1c1   : > { %v7090_v40 = vpop.eup %7089  ;;  %5013 = vst.msk [vmem:[%s8174_s10 + $0xc0] sm:$0xff] %vm4988_vm2, %v4884_v22  ;;  %v4885_v16 = vmul.f32 %v7088_v37, %v8271_v45  ;;  %7109 = vpow2.f32 %v4298_v52  ;;  %v4304_v51 = vmul.f32 1.442695, %v4134_v13  ;;  %v4135_v61 = vsub.f32 0.0, %v8387_v30  ;;  %v9106_v45 = vld [vmem:[#allocation3_spill] sm:$0xff]  ;;  %v9109_v52 = vld [vmem:[#allocation6_spill] sm:$0xff] }
 0x1c2   : > { %v7092_v9 = vpop.eup %7091  ;;  %5016 = vst.msk [vmem:[%s8174_s10 + $0xd8] sm:$0xff] %vm4988_vm2, %v4887_v63  ;;  %v4510_v33 = vadd.f32 1.0, %v7090_v40  ;;  %7111 = vpow2.f32 %v4294_v54  ;;  %v4300_v21 = vmul.f32 1.442695, %v4132_v1  ;;  %v4133_v3 = vsub.f32 0.0, %v8394_v41  ;;  %v6400_v11 = vpop.f32.mrb[44].mxu0 }
 0x1c3   : > { %v7094_v8 = vpop.eup %7093  ;;  %5014 = vst.msk [vmem:[%s8174_s10 + $0xc8] sm:$0xff] %vm4988_vm2, %v4885_v16  ;;  %v4508_v26 = vadd.f32 1.0, %v7092_v9  ;;  %7113 = vpow2.f32 %v4304_v51  ;;  %v4306_v14 = vmul.f32 1.442695, %v4135_v61  ;;  %v6530_v28 = vadd.f32 %v6400_v11, %v9106_v45  ;;  %v3494_v24 = vpop.f32.mrb[45].mxu0 }
 0x1c4   : > { %v7096_v20 = vpop.eup %7095  ;;  %7115 = vrcp.f32 %v4510_v33  ;;  %v4511_v57 = vadd.f32 1.0, %v7094_v8  ;;  %v4302_v34 = vmul.f32 1.442695, %v4133_v3  ;;  %v6531_v58 = vadd.f32 %v3494_v24, %v9107_v49  ;;  %v6401_v59 = vpop.f32.mrb[46].mxu0  ;;  %v9111_v3 = vld [vmem:[#allocation8_spill] sm:$0xff] }
 0x1c5   : > { %v7098_v36 = vpop.eup %7097  ;;  %7117 = vrcp.f32 %v4508_v26  ;;  %v4509_v15 = vadd.f32 1.0, %v7096_v20  ;;  %v8408_v23 = vadd.f32 %v6530_v28, %v8057_v44  ;;  %v6532_v55 = vadd.f32 %v6401_v59, %v9108_v62  ;;  %v3497_v32 = vpop.f32.mrb[47].mxu0  ;;  %v9112_v28 = vld [vmem:[#allocation9_spill] sm:$0xff] }
 0x1c6   : > { %v7100_v4 = vpop.eup %7099  ;;  %v4890_v60 = vmul.f32 %v7098_v36, %v8282_v39  ;;  %7119 = vrcp.f32 %v4511_v57  ;;  %v8413_v46 = vadd.f32 %v6531_v58, %v8057_v44  ;;  %v6533_v0 = vadd.f32 %v3497_v32, %v9109_v52  ;;  %v9113_v58 = vld [vmem:[#allocation10_spill] sm:$0xff] }
 0x1c7   : > { %v7102_v7 = vpop.eup %7101  ;;  %v4888_v50 = vmul.f32 %v7100_v4, %v8289_v48  ;;  %7121 = vrcp.f32 %v4509_v15  ;;  %v4138_v54 = vsub.f32 0.0, %v8408_v23  ;;  %v8419_v2 = vadd.f32 %v6532_v55, %v8057_v44 }
 0x1c8   : > { %v7104_v42 = vpop.eup %7103  ;;  %5019 = vst.msk [vmem:[%s8174_s10 + $0xf0] sm:$0xff] %vm4988_vm2, %v4890_v60  ;;  %v4891_v39 = vmul.f32 %v7102_v7, %v8297_v19  ;;  %7123 = vpow2.f32 %v4300_v21  ;;  %v4136_v38 = vsub.f32 0.0, %v8413_v46  ;;  %v8431_v48 = vadd.f32 %v8428_v25, %v6533_v0 }
 0x1c9   : > { %v7106_v27 = vpop.eup %7105  ;;  %5017 = vst.msk [vmem:[%s8174_s10 + $0xe0] sm:$0xff] %vm4988_vm2, %v4888_v50  ;;  %v4889_v44 = vmul.f32 %v7104_v42, %v8303_v53  ;;  %7125 = vpow2.f32 %v4306_v14  ;;  %v4312_v17 = vmul.f32 1.442695, %v4138_v54  ;;  %v4139_v19 = vsub.f32 0.0, %v8419_v2  ;;  %v9110_v53 = vld [vmem:[#allocation7_spill] sm:$0xff] }
 0x1ca   : > { %v7108_v12 = vpop.eup %7107  ;;  %5020 = vst.msk [vmem:[%s8174_s10 + $0xf8] sm:$0xff] %vm4988_vm2, %v4891_v39  ;;  %v4514_v22 = vadd.f32 1.0, %v7106_v27  ;;  %7127 = vpow2.f32 %v4302_v34  ;;  %v4308_v13 = vmul.f32 1.442695, %v4136_v38  ;;  %v4137_v37 = vsub.f32 0.0, %v8431_v48  ;;  %v6404_v63 = vpop.f32.mrb[48].mxu0 }
 0x1cb   : > { %v7110_v1 = vpop.eup %7109  ;;  %5018 = vst.msk [vmem:[%s8174_s10 + $0xe8] sm:$0xff] %vm4988_vm2, %v4889_v44  ;;  %v4512_v40 = vadd.f32 1.0, %v7108_v12  ;;  %7129 = vpow2.f32 %v4312_v17  ;;  %v4314_v16 = vmul.f32 1.442695, %v4139_v19  ;;  %v6534_v51 = vadd.f32 %v6404_v63, %v9110_v53  ;;  %v3510_v61 = vpop.f32.mrb[49].mxu0  ;;  %v9114_v17 = vld [vmem:[#allocation11_spill] sm:$0xff] }
 0x1cc   : > { %v7112_v9 = vpop.eup %7111  ;;  %7131 = vrcp.f32 %v4514_v22  ;;  %v4515_v33 = vadd.f32 1.0, %v7110_v1  ;;  %v4310_v21 = vmul.f32 1.442695, %v4137_v37  ;;  %v6535_v11 = vadd.f32 %v3510_v61, %v9111_v3  ;;  %v6405_v8 = vpop.f32.mrb[50].mxu0  ;;  %v9115_v37 = vld [vmem:[#allocation12_spill] sm:$0xff] }
 0x1cd   : > { %v7114_v26 = vpop.eup %7113  ;;  %7133 = vrcp.f32 %v4512_v40  ;;  %v4513_v14 = vadd.f32 1.0, %v7112_v9  ;;  %v8445_v45 = vadd.f32 %v8428_v25, %v6534_v51  ;;  %v6536_v24 = vadd.f32 %v6405_v8, %v9112_v28  ;;  %v3513_v20 = vpop.f32.mrb[51].mxu0  ;;  %v9116_v51 = vld [vmem:[#allocation13_spill] sm:$0xff] }
 0x1ce   : > { %v7116_v57 = vpop.eup %7115  ;;  %7135 = vrcp.f32 %v4515_v33  ;;  %v4518_v34 = vadd.f32 1.0, %v7114_v26  ;;  %v8449_v49 = vadd.f32 %v8428_v25, %v6535_v11  ;;  %v6537_v59 = vadd.f32 %v3513_v20, %v9113_v58  ;;  %v9117_v11 = vld [vmem:[#allocation14_spill] sm:$0xff] }
 0x1cf   : > { %v7118_v36 = vpop.eup %7117  ;;  %v4894_v15 = vmul.f32 %v7116_v57, %v8313_v43  ;;  %7137 = vrcp.f32 %v4513_v14  ;;  %v4142_v62 = vsub.f32 0.0, %v8445_v45  ;;  %v8455_v55 = vadd.f32 %v8428_v25, %v6536_v24 }
 0x1d0   : > { %v7120_v32 = vpop.eup %7119  ;;  %v4892_v4 = vmul.f32 %v7118_v36, %v8318_v31  ;;  %7139 = vrcp.f32 %v4518_v34  ;;  %v4140_v60 = vsub.f32 0.0, %v8449_v49  ;;  %v8460_v52 = vadd.f32 %v8428_v25, %v6537_v59 }
 0x1d1   : > { %v7122_v0 = vpop.eup %7121  ;;  %5023 = vst.msk [vmem:[%s8174_s10 + $0x110] sm:$0xff] %vm4988_vm2, %v4894_v15  ;;  %v4895_v43 = vmul.f32 %v7120_v32, %v8326_v47  ;;  %7141 = vpow2.f32 %v4308_v13  ;;  %v4320_v7 = vmul.f32 1.442695, %v4142_v62  ;;  %v4143_v50 = vsub.f32 0.0, %v8455_v55 }
 0x1d2   : > { %v7124_v54 = vpop.eup %7123  ;;  %5021 = vst.msk [vmem:[%s8174_s10 + $0x100] sm:$0xff] %vm4988_vm2, %v4892_v4  ;;  %v4893_v31 = vmul.f32 %v7122_v0, %v8333_v29  ;;  %7143 = vpow2.f32 %v4314_v16  ;;  %v4316_v42 = vmul.f32 1.442695, %v4140_v60  ;;  %v4141_v39 = vsub.f32 0.0, %v8460_v52  ;;  %v6408_v38 = vpop.f32.mrb[52].mxu0 }
 0x1d3   : > { %v7126_v27 = vpop.eup %7125  ;;  %5024 = vst.msk [vmem:[%s8174_s10 + $0x118] sm:$0xff] %vm4988_vm2, %v4895_v43  ;;  %v4516_v44 = vadd.f32 1.0, %v7124_v54  ;;  %7145 = vpow2.f32 %v4310_v21  ;;  %v4322_v47 = vmul.f32 1.442695, %v4143_v50  ;;  %v6538_v19 = vadd.f32 %v6408_v38, %v9114_v17  ;;  %v3526_v12 = vpop.f32.mrb[53].mxu0  ;;  %v9120_v17 = vld [vmem:[#allocation17_spill] sm:$0xff] }
 0x1d4   : > { %v7128_v22 = vpop.eup %7127  ;;  %5022 = vst.msk [vmem:[%s8174_s10 + $0x108] sm:$0xff] %vm4988_vm2, %v4893_v31  ;;  %v4519_v13 = vadd.f32 1.0, %v7126_v27  ;;  %7147 = vpow2.f32 %v4320_v7  ;;  %v4318_v29 = vmul.f32 1.442695, %v4141_v39  ;;  %v6539_v63 = vadd.f32 %v3526_v12, %v9115_v37  ;;  %v6409_v1 = vpop.f32.mrb[54].mxu0  ;;  %v9118_v7 = vld [vmem:[#allocation15_spill] sm:$0xff] }
 0x1d5   : > { %v7130_v40 = vpop.eup %7129  ;;  %7149 = vrcp.f32 %v4516_v44  ;;  %v4517_v16 = vadd.f32 1.0, %v7128_v22  ;;  %v8477_v53 = vadd.f32 %v8428_v25, %v6538_v19  ;;  %v6540_v61 = vadd.f32 %v6409_v1, %v9116_v51  ;;  %v3529_v9 = vpop.f32.mrb[55].mxu0  ;;  %v9119_v39 = vld [vmem:[#allocation16_spill] sm:$0xff]  ;;  %v9121_v37 = vld [vmem:[#allocation18_spill] sm:$0xff] }
 0x1d6   : > { %v7132_v33 = vpop.eup %7131  ;;  %7151 = vrcp.f32 %v4519_v13  ;;  %v4522_v21 = vadd.f32 1.0, %v7130_v40  ;;  %v8481_v3 = vadd.f32 %v8428_v25, %v6539_v63  ;;  %v6541_v8 = vadd.f32 %v3529_v9, %v9117_v11 }
 0x1d7   : > { %v7134_v26 = vpop.eup %7133  ;;  %v4898_v14 = vmul.f32 %v7132_v33, %v8345_v18  ;;  %7153 = vrcp.f32 %v4517_v16  ;;  %v4146_v28 = vsub.f32 0.0, %v8477_v53  ;;  %v8487_v24 = vadd.f32 %v8428_v25, %v6540_v61 }
 0x1d8   : > { %v7136_v20 = vpop.eup %7135  ;;  %v4896_v57 = vmul.f32 %v7134_v26, %v8350_v5  ;;  %7155 = vrcp.f32 %v4522_v21  ;;  %v4144_v34 = vsub.f32 0.0, %v8481_v3  ;;  %v8492_v58 = vadd.f32 %v8428_v25, %v6541_v8 }
 0x1d9   : > { %v7138_v59 = vpop.eup %7137  ;;  %5027 = vst.msk [vmem:[%s8174_s10 + $0x130] sm:$0xff] %vm4988_vm2, %v4898_v14  ;;  %v4899_v18 = vmul.f32 %v7136_v20, %v8358_v6  ;;  %7157 = vpow2.f32 %v4316_v42  ;;  %v4328_v36 = vmul.f32 1.442695, %v4146_v28  ;;  %v4147_v15 = vsub.f32 0.0, %v8487_v24 }
 0x1da   : > { %v7140_v62 = vpop.eup %7139  ;;  %5025 = vst.msk [vmem:[%s8174_s10 + $0x120] sm:$0xff] %vm4988_vm2, %v4896_v57  ;;  %v4897_v5 = vmul.f32 %v7138_v59, %v8365_v56  ;;  %7159 = vpow2.f32 %v4322_v47  ;;  %v4324_v32 = vmul.f32 1.442695, %v4144_v34  ;;  %v4145_v4 = vsub.f32 0.0, %v8492_v58  ;;  %v6412_v60 = vpop.f32.mrb[56].mxu0 }
 0x1db   : > { %v7142_v0 = vpop.eup %7141  ;;  %5028 = vst.msk [vmem:[%s8174_s10 + $0x138] sm:$0xff] %vm4988_vm2, %v4899_v18  ;;  %v4902_v6 = vmul.f32 %v7140_v62, %v8376_v10  ;;  %7161 = vpow2.f32 %v4318_v29  ;;  %v4330_v43 = vmul.f32 1.442695, %v4147_v15  ;;  %v6542_v50 = vadd.f32 %v6412_v60, %v9118_v7  ;;  %v3542_v54 = vpop.f32.mrb[57].mxu0  ;;  %v9124_v7 = vld [vmem:[#allocation21_spill] sm:$0xff] }
 0x1dc   : > { %v7144_v31 = vpop.eup %7143  ;;  %5026 = vst.msk [vmem:[%s8174_s10 + $0x128] sm:$0xff] %vm4988_vm2, %v4897_v5  ;;  %v4520_v56 = vadd.f32 1.0, %v7142_v0  ;;  %7163 = vpow2.f32 %v4328_v36  ;;  %v4326_v42 = vmul.f32 1.442695, %v4145_v4  ;;  %v6543_v38 = vadd.f32 %v3542_v54, %v9119_v39  ;;  %v6413_v27 = vpop.f32.mrb[58].mxu0  ;;  %v9122_v36 = vld [vmem:[#allocation19_spill] sm:$0xff] }
 0x1dd   : > { %v7146_v44 = vpop.eup %7145  ;;  %5031 = vst.msk [vmem:[%s8174_s10 + $0x150] sm:$0xff] %vm4988_vm2, %v4902_v6  ;;  %v4523_v47 = vadd.f32 1.0, %v7144_v31  ;;  %7165 = vpow2.f32 %v4324_v32  ;;  %v8512_v10 = vadd.f32 %v8428_v25, %v6542_v50  ;;  %v6544_v19 = vadd.f32 %v6413_v27, %v9120_v17  ;;  %v3545_v12 = vpop.f32.mrb[59].mxu0  ;;  %v9123_v4 = vld [vmem:[#allocation20_spill] sm:$0xff]  ;;  %v9125_v39 = vld [vmem:[#allocation22_spill] sm:$0xff] }
 0x1de   : > { %v7148_v22 = vpop.eup %7147  ;;  %7167 = vrcp.f32 %v4520_v56  ;;  %v4521_v13 = vadd.f32 1.0, %v7146_v44  ;;  %v8516_v29 = vadd.f32 %v8428_v25, %v6543_v38  ;;  %v6545_v63 = vadd.f32 %v3545_v12, %v9121_v37 }
 0x1df   : > { %v7150_v1 = vpop.eup %7149  ;;  %7169 = vrcp.f32 %v4523_v47  ;;  %v4526_v40 = vadd.f32 1.0, %v7148_v22  ;;  %v4150_v16 = vsub.f32 0.0, %v8512_v10  ;;  %v8521_v51 = vadd.f32 %v8428_v25, %v6544_v19 }
 0x1e0   : > { %v7152_v61 = vpop.eup %7151  ;;  %v4900_v9 = vmul.f32 %v7150_v1, %v8381_v35  ;;  %7171 = vrcp.f32 %v4521_v13  ;;  %v4148_v33 = vsub.f32 0.0, %v8516_v29  ;;  %v8526_v21 = vadd.f32 %v8428_v25, %v6545_v63 }
 0x1e1   : > { %v7154_v11 = vpop.eup %7153  ;;  %v4903_v8 = vmul.f32 %v7152_v61, %v8387_v30  ;;  %7173 = vrcp.f32 %v4526_v40  ;;  %v4336_v26 = vmul.f32 1.442695, %v4150_v16  ;;  %v4151_v14 = vsub.f32 0.0, %v8521_v51 }
 0x1e2   : > { %v7156_v28 = vpop.eup %7155  ;;  %5029 = vst.msk [vmem:[%s8174_s10 + $0x140] sm:$0xff] %vm4988_vm2, %v4900_v9  ;;  %v4901_v35 = vmul.f32 %v7154_v11, %v8394_v41  ;;  %7175 = vpow2.f32 %v4330_v43  ;;  %v4332_v20 = vmul.f32 1.442695, %v4148_v33  ;;  %v4149_v57 = vsub.f32 0.0, %v8526_v21  ;;  %v6416_v34 = vpop.f32.mrb[60].mxu0 }
 0x1e3   : > { %v7158_v59 = vpop.eup %7157  ;;  %5032 = vst.msk [vmem:[%s8174_s10 + $0x158] sm:$0xff] %vm4988_vm2, %v4903_v8  ;;  %v4906_v30 = vmul.f32 %v7156_v28, %v8408_v23  ;;  %7177 = vpow2.f32 %v4326_v42  ;;  %v4338_v18 = vmul.f32 1.442695, %v4151_v14  ;;  %v6546_v15 = vadd.f32 %v6416_v34, %v9122_v36  ;;  %v3558_v62 = vpop.f32.mrb[61].mxu0 }
 0x1e4   : > { %v7160_v5 = vpop.eup %7159  ;;  %5030 = vst.msk [vmem:[%s8174_s10 + $0x148] sm:$0xff] %vm4988_vm2, %v4901_v35  ;;  %v4524_v41 = vadd.f32 1.0, %v7158_v59  ;;  %7179 = vpow2.f32 %v4336_v26  ;;  %v4334_v32 = vmul.f32 1.442695, %v4149_v57  ;;  %v6547_v60 = vadd.f32 %v3558_v62, %v9123_v4  ;;  %v6417_v0 = vpop.f32.mrb[62].mxu0 }
 0x1e5   : > { %v7162_v6 = vpop.eup %7161  ;;  %5035 = vst.msk [vmem:[%s8174_s10 + $0x170] sm:$0xff] %vm4988_vm2, %v4906_v30  ;;  %v4527_v43 = vadd.f32 1.0, %v7160_v5  ;;  %7181 = vpow2.f32 %v4332_v20  ;;  %v8544_v23 = vadd.f32 %v8428_v25, %v6546_v15  ;;  %v6548_v50 = vadd.f32 %v6417_v0, %v9124_v7  ;;  %v3561_v54 = vpop.f32.mrb[63].mxu0 }
 0x1e6   : > { %v7164_v31 = vpop.eup %7163  ;;  %7183 = vrcp.f32 %v4524_v41  ;;  %v4525_v56 = vadd.f32 1.0, %v7162_v6  ;;  %v8548_v42 = vadd.f32 %v8428_v25, %v6547_v60  ;;  %v6549_v38 = vadd.f32 %v3561_v54, %v9125_v39 }
 0x1e7   : > { %v7166_v27 = vpop.eup %7165  ;;  %7185 = vrcp.f32 %v4527_v43  ;;  %v4530_v44 = vadd.f32 1.0, %v7164_v31  ;;  %v4154_v47 = vsub.f32 0.0, %v8544_v23  ;;  %v8553_v17 = vadd.f32 %v8428_v25, %v6548_v50 }
 0x1e8   : > { %v7168_v19 = vpop.eup %7167  ;;  %7187 = vrcp.f32 %v4525_v56  ;;  %v4528_v12 = vadd.f32 1.0, %v7166_v27  ;;  %v4152_v22 = vsub.f32 0.0, %v8548_v42  ;;  %v8557_v13 = vadd.f32 %v8428_v25, %v6549_v38 }
 0x1e9   : > { %v7170_v37 = vpop.eup %7169  ;;  %v4904_v63 = vmul.f32 %v7168_v19, %v8413_v46  ;;  %7189 = vrcp.f32 %v4530_v44  ;;  %v4344_v1 = vmul.f32 1.442695, %v4154_v47  ;;  %v4155_v40 = vsub.f32 0.0, %v8553_v17 }
 0x1ea   : > { %v6288_v16 = vpop.f32.mrb[64].mxu1  ;;  %v7172_v61 = vpop.eup %7171  ;;  %v4907_v9 = vmul.f32 %v7170_v37, %v8419_v2  ;;  %7191 = vrcp.f32 %v4528_v12  ;;  %v4340_v33 = vmul.f32 1.442695, %v4152_v22  ;;  %v4153_v11 = vsub.f32 0.0, %v8557_v13 }
 0x1eb   : > { %v6420_v8 = vpop.f32.mrb[64].mxu0  ;;  %v2372_v26 = vpop.f32.mrb[65].mxu1  ;;  %5033 = vst.msk [vmem:[%s8174_s10 + $0x160] sm:$0xff] %vm4988_vm2, %v4904_v63  ;;  %v4905_v46 = vmul.f32 %v7172_v61, %v8431_v48  ;;  %7193 = vpow2.f32 %v4338_v18  ;;  %v4346_v28 = vmul.f32 1.442695, %v4155_v40 }
 0x1ec   : > { %v7174_v14 = vpop.eup %7173  ;;  %v6550_v35 = vadd.f32 %v6420_v8, %v6288_v16  ;;  %v3574_v20 = vpop.f32.mrb[65].mxu0  ;;  %5036 = vst.msk [vmem:[%s8174_s10 + $0x178] sm:$0xff] %vm4988_vm2, %v4907_v9  ;;  %7195 = vpow2.f32 %v4334_v32  ;;  %v4342_v59 = vmul.f32 1.442695, %v4153_v11 }
 0x1ed   : > { %v6289_v57 = vpop.f32.mrb[66].mxu1  ;;  %v7176_v34 = vpop.eup %7175  ;;  %v4910_v2 = vmul.f32 %v7174_v14, %v8445_v45  ;;  %v6551_v30 = vadd.f32 %v3574_v20, %v2372_v26  ;;  %5034 = vst.msk [vmem:[%s8174_s10 + $0x168] sm:$0xff] %vm4988_vm2, %v4905_v46  ;;  %7197 = vpow2.f32 %v4344_v1 }
 0x1ee   : > { %v6421_v36 = vpop.f32.mrb[66].mxu0  ;;  %v2375_v15 = vpop.f32.mrb[67].mxu1  ;;  %v4531_v48 = vadd.f32 1.0, %v7176_v34  ;;  %v8572_v18 = vadd.f32 %v8428_v25, %v6550_v35  ;;  %7199 = vpow2.f32 %v4340_v33 }
 0x1ef   : > { %v7178_v62 = vpop.eup %7177  ;;  %v6552_v5 = vadd.f32 %v6421_v36, %v6289_v57  ;;  %v3577_v41 = vpop.f32.mrb[67].mxu0  ;;  %5039 = vst.msk [vmem:[%s8174_s10 + $0x190] sm:$0xff] %vm4988_vm2, %v4910_v2  ;;  %v8577_v45 = vadd.f32 %v8428_v25, %v6551_v30 }
 0x1f0   : > { %v7180_v4 = vpop.eup %7179  ;;  %v4529_v60 = vadd.f32 1.0, %v7178_v62  ;;  %v6553_v32 = vadd.f32 %v3577_v41, %v2375_v15  ;;  %7201 = vrcp.f32 %v4531_v48  ;;  %v4158_v43 = vsub.f32 0.0, %v8572_v18 }
 0x1f1   : > { %v7182_v0 = vpop.eup %7181  ;;  %v4534_v6 = vadd.f32 1.0, %v7180_v4  ;;  %v8581_v7 = vadd.f32 %v8428_v25, %v6552_v5  ;;  %v4156_v31 = vsub.f32 0.0, %v8577_v45 }
 0x1f2   : > { %v7184_v50 = vpop.eup %7183  ;;  %7203 = vrcp.f32 %v4529_v60  ;;  %v4532_v54 = vadd.f32 1.0, %v7182_v0  ;;  %v8585_v56 = vadd.f32 %v8428_v25, %v6553_v32  ;;  %v4352_v27 = vmul.f32 1.442695, %v4158_v43  ;;  %v6292_v47 = vpop.f32.mrb[68].mxu1 }
 0x1f3   : > { %v7186_v39 = vpop.eup %7185  ;;  %v4908_v38 = vmul.f32 %v7184_v50, %v8449_v49  ;;  %7205 = vrcp.f32 %v4534_v6  ;;  %v4159_v44 = vsub.f32 0.0, %v8581_v7  ;;  %v4348_v22 = vmul.f32 1.442695, %v4156_v31  ;;  %v6424_v63 = vpop.f32.mrb[68].mxu0 }
 0x1f4   : > { %v7188_v19 = vpop.eup %7187  ;;  %v4911_v12 = vmul.f32 %v7186_v39, %v8455_v55  ;;  %7207 = vrcp.f32 %v4532_v54  ;;  %v4157_v37 = vsub.f32 0.0, %v8585_v56  ;;  %v2388_v1 = vpop.f32.mrb[69].mxu1  ;;  %v6554_v61 = vadd.f32 %v6424_v63, %v6292_v47 }
 0x1f5   : > { %v7190_v40 = vpop.eup %7189  ;;  %5037 = vst.msk [vmem:[%s8174_s10 + $0x180] sm:$0xff] %vm4988_vm2, %v4908_v38  ;;  %v4909_v49 = vmul.f32 %v7188_v19, %v8460_v52  ;;  %7209 = vpow2.f32 %v4346_v28  ;;  %v4354_v16 = vmul.f32 1.442695, %v4159_v44  ;;  %v3590_v9 = vpop.f32.mrb[69].mxu0 }
 0x1f6   : > { %v6293_v33 = vpop.f32.mrb[70].mxu1  ;;  %v7192_v11 = vpop.eup %7191  ;;  %5040 = vst.msk [vmem:[%s8174_s10 + $0x198] sm:$0xff] %vm4988_vm2, %v4911_v12  ;;  %v4914_v55 = vmul.f32 %v7190_v40, %v8477_v53  ;;  %7211 = vpow2.f32 %v4342_v59  ;;  %v4350_v8 = vmul.f32 1.442695, %v4157_v37  ;;  %v6555_v26 = vadd.f32 %v3590_v9, %v2388_v1 }
 0x1f7   : > { %v6425_v14 = vpop.f32.mrb[70].mxu0  ;;  %v2391_v46 = vpop.f32.mrb[71].mxu1  ;;  %5038 = vst.msk [vmem:[%s8174_s10 + $0x188] sm:$0xff] %vm4988_vm2, %v4909_v49  ;;  %v4912_v52 = vmul.f32 %v7192_v11, %v8481_v3  ;;  %7213 = vpow2.f32 %v4352_v27  ;;  %v8601_v28 = vadd.f32 %v8428_v25, %v6554_v61 }
 0x1f8   : > { %v7194_v35 = vpop.eup %7193  ;;  %v6556_v20 = vadd.f32 %v6425_v14, %v6293_v33  ;;  %v3593_v57 = vpop.f32.mrb[71].mxu0  ;;  %5043 = vst.msk [vmem:[%s8174_s10 + $0x1b0] sm:$0xff] %vm4988_vm2, %v4914_v55  ;;  %7215 = vpow2.f32 %v4348_v22  ;;  %v8606_v2 = vadd.f32 %v8428_v25, %v6555_v26 }
 0x1f9   : > { %v7196_v34 = vpop.eup %7195  ;;  %v4535_v53 = vadd.f32 1.0, %v7194_v35  ;;  %v6557_v59 = vadd.f32 %v3593_v57, %v2391_v46  ;;  %5041 = vst.msk [vmem:[%s8174_s10 + $0x1a0] sm:$0xff] %vm4988_vm2, %v4912_v52  ;;  %7217 = vpow2.f32 %v4354_v16  ;;  %v4162_v3 = vsub.f32 0.0, %v8601_v28 }
 0x1fa   : > { %v7198_v30 = vpop.eup %7197  ;;  %v4533_v36 = vadd.f32 1.0, %v7196_v34  ;;  %v8612_v15 = vadd.f32 %v8428_v25, %v6556_v20  ;;  %v4160_v5 = vsub.f32 0.0, %v8606_v2  ;;  %v6296_v6 = vpop.f32.mrb[72].mxu1 }
 0x1fb   : > { %v7200_v62 = vpop.eup %7199  ;;  %7219 = vrcp.f32 %v4535_v53  ;;  %v4538_v48 = vadd.f32 1.0, %v7198_v30  ;;  %v8616_v41 = vadd.f32 %v8428_v25, %v6557_v59  ;;  %v4360_v32 = vmul.f32 1.442695, %v4162_v3  ;;  %v6428_v39 = vpop.f32.mrb[72].mxu0 }
 0x1fc   : > { %v7202_v4 = vpop.eup %7201  ;;  %7221 = vrcp.f32 %v4533_v36  ;;  %v4536_v60 = vadd.f32 1.0, %v7200_v62  ;;  %v4163_v0 = vsub.f32 0.0, %v8612_v15  ;;  %v4356_v54 = vmul.f32 1.442695, %v4160_v5  ;;  %v2404_v38 = vpop.f32.mrb[73].mxu1 }
 0x1fd   : > { %v7204_v43 = vpop.eup %7203  ;;  %v4915_v50 = vmul.f32 %v7202_v4, %v8487_v24  ;;  %7223 = vrcp.f32 %v4538_v48  ;;  %v4161_v31 = vsub.f32 0.0, %v8616_v41  ;;  %v6558_v19 = vadd.f32 %v6428_v39, %v6296_v6  ;;  %v3606_v12 = vpop.f32.mrb[73].mxu0 }
 0x1fe   : > { %v7206_v27 = vpop.eup %7205  ;;  %v4913_v44 = vmul.f32 %v7204_v43, %v8492_v58  ;;  %7225 = vrcp.f32 %v4536_v60  ;;  %v4362_v47 = vmul.f32 1.442695, %v4163_v0  ;;  %v6297_v22 = vpop.f32.mrb[74].mxu1  ;;  %v6559_v1 = vadd.f32 %v3606_v12, %v2404_v38 }
 0x1ff   : > { %v7208_v37 = vpop.eup %7207  ;;  %5044 = vst.msk [vmem:[%s8174_s10 + $0x1b8] sm:$0xff] %vm4988_vm2, %v4915_v50  ;;  %v4918_v24 = vmul.f32 %v7206_v27, %v8512_v10  ;;  %7227 = vpow2.f32 %v4350_v8  ;;  %v4358_v63 = vmul.f32 1.442695, %v4161_v31  ;;  %v6429_v40 = vpop.f32.mrb[74].mxu0  ;;  %v8629_v61 = vadd.f32 %v8428_v25, %v6558_v19 }
 0x200   : > { %v2407_v49 = vpop.f32.mrb[75].mxu1  ;;  %v7210_v16 = vpop.eup %7209  ;;  %5042 = vst.msk [vmem:[%s8174_s10 + $0x1a8] sm:$0xff] %vm4988_vm2, %v4913_v44  ;;  %v4916_v58 = vmul.f32 %v7208_v37, %v8516_v29  ;;  %7229 = vpow2.f32 %v4360_v32  ;;  %v6560_v9 = vadd.f32 %v6429_v40, %v6297_v22  ;;  %v8634_v55 = vadd.f32 %v8428_v25, %v6559_v1 }
 0x201   : > { %v3609_v33 = vpop.f32.mrb[75].mxu0  ;;  %v7212_v11 = vpop.eup %7211  ;;  %5047 = vst.msk [vmem:[%s8174_s10 + $0x1d0] sm:$0xff] %vm4988_vm2, %v4918_v24  ;;  %v4539_v10 = vadd.f32 1.0, %v7210_v16  ;;  %7231 = vpow2.f32 %v4356_v54  ;;  %v4166_v29 = vsub.f32 0.0, %v8629_v61 }
 0x202   : > { %v6561_v8 = vadd.f32 %v3609_v33, %v2407_v49  ;;  %v7214_v26 = vpop.eup %7213  ;;  %5045 = vst.msk [vmem:[%s8174_s10 + $0x1c0] sm:$0xff] %vm4988_vm2, %v4916_v58  ;;  %v4537_v14 = vadd.f32 1.0, %v7212_v11  ;;  %7233 = vpow2.f32 %v4362_v47  ;;  %v8640_v46 = vadd.f32 %v8428_v25, %v6560_v9  ;;  %v6300_v36 = vpop.f32.mrb[76].mxu1 }
 0x203   : > { %v7216_v35 = vpop.eup %7215  ;;  %7235 = vrcp.f32 %v4539_v10  ;;  %v4542_v52 = vadd.f32 1.0, %v7214_v26  ;;  %v4164_v20 = vsub.f32 0.0, %v8634_v55  ;;  %v4368_v59 = vmul.f32 1.442695, %v4166_v29  ;;  %v6432_v4 = vpop.f32.mrb[76].mxu0 }
 0x204   : > { %v8644_v57 = vadd.f32 %v8428_v25, %v6561_v8  ;;  %v7218_v34 = vpop.eup %7217  ;;  %7237 = vrcp.f32 %v4537_v14  ;;  %v4540_v53 = vadd.f32 1.0, %v7216_v35  ;;  %v4167_v30 = vsub.f32 0.0, %v8640_v46  ;;  %v2420_v60 = vpop.f32.mrb[77].mxu1 }
 0x205   : > { %v7220_v3 = vpop.eup %7219  ;;  %7239 = vrcp.f32 %v4542_v52  ;;  %v4543_v62 = vadd.f32 1.0, %v7218_v34  ;;  %v4364_v48 = vmul.f32 1.442695, %v4164_v20  ;;  %v6562_v43 = vadd.f32 %v6432_v4, %v6300_v36  ;;  %v3622_v50 = vpop.f32.mrb[77].mxu0 }
 0x206   : > { %v4165_v5 = vsub.f32 0.0, %v8644_v57  ;;  %v7222_v32 = vpop.eup %7221  ;;  %v4919_v0 = vmul.f32 %v7220_v3, %v8521_v51  ;;  %7241 = vrcp.f32 %v4540_v53  ;;  %v4370_v6 = vmul.f32 1.442695, %v4167_v30  ;;  %v6301_v54 = vpop.f32.mrb[78].mxu1 }
 0x207   : > { %v7224_v31 = vpop.eup %7223  ;;  %v4917_v39 = vmul.f32 %v7222_v32, %v8526_v21  ;;  %7243 = vrcp.f32 %v4543_v62  ;;  %v6563_v27 = vadd.f32 %v3622_v50, %v2420_v60  ;;  %v6433_v44 = vpop.f32.mrb[78].mxu0  ;;  %v8654_v12 = vadd.f32 %v8428_v25, %v6562_v43 }
 0x208   : > { %v4366_v38 = vmul.f32 1.442695, %v4165_v5  ;;  %v2423_v47 = vpop.f32.mrb[79].mxu1  ;;  %v7226_v19 = vpop.eup %7225  ;;  %5048 = vst.msk [vmem:[%s8174_s10 + $0x1d8] sm:$0xff] %vm4988_vm2, %v4919_v0  ;;  %v4922_v51 = vmul.f32 %v7224_v31, %v8544_v23  ;;  %7245 = vpow2.f32 %v4358_v63  ;;  %v6564_v22 = vadd.f32 %v6433_v44, %v6301_v54 }
 0x209   : > { %v3625_v37 = vpop.f32.mrb[79].mxu0  ;;  %v7228_v24 = vpop.eup %7227  ;;  %5046 = vst.msk [vmem:[%s8174_s10 + $0x1c8] sm:$0xff] %vm4988_vm2, %v4917_v39  ;;  %v4920_v21 = vmul.f32 %v7226_v19, %v8548_v42  ;;  %7247 = vpow2.f32 %v4368_v59  ;;  %v8660_v1 = vadd.f32 %v8428_v25, %v6563_v27  ;;  %v4170_v63 = vsub.f32 0.0, %v8654_v12 }
 0x20a   : > { %v6565_v40 = vadd.f32 %v3625_v37, %v2423_v47  ;;  %v7230_v49 = vpop.eup %7229  ;;  %5051 = vst.msk [vmem:[%s8174_s10 + $0x1f0] sm:$0xff] %vm4988_vm2, %v4922_v51  ;;  %v4541_v23 = vadd.f32 1.0, %v7228_v24  ;;  %7249 = vpow2.f32 %v4364_v48  ;;  %v8666_v16 = vadd.f32 %v8428_v25, %v6564_v22  ;;  %v6304_v14 = vpop.f32.mrb[80].mxu1 }
 0x20b   : > { %v7232_v58 = vpop.eup %7231  ;;  %5049 = vst.msk [vmem:[%s8174_s10 + $0x1e0] sm:$0xff] %vm4988_vm2, %v4920_v21  ;;  %v4546_v9 = vadd.f32 1.0, %v7230_v49  ;;  %7251 = vpow2.f32 %v4370_v6  ;;  %v4168_v42 = vsub.f32 0.0, %v8660_v1  ;;  %v4376_v8 = vmul.f32 1.442695, %v4170_v63  ;;  %v6436_v34 = vpop.f32.mrb[80].mxu0 }
 0x20c   : > { %v8672_v33 = vadd.f32 %v8428_v25, %v6565_v40  ;;  %v7234_v11 = vpop.eup %7233  ;;  %7253 = vrcp.f32 %v4541_v23  ;;  %v4544_v10 = vadd.f32 1.0, %v7232_v58  ;;  %v4171_v26 = vsub.f32 0.0, %v8666_v16  ;;  %v2436_v53 = vpop.f32.mrb[81].mxu1 }
 0x20d   : > { %v7236_v29 = vpop.eup %7235  ;;  %7255 = vrcp.f32 %v4546_v9  ;;  %v4547_v35 = vadd.f32 1.0, %v7234_v11  ;;  %v4372_v52 = vmul.f32 1.442695, %v4168_v42  ;;  %v6566_v3 = vadd.f32 %v6436_v34, %v6304_v14  ;;  %v3638_v62 = vpop.f32.mrb[81].mxu0 }
 0x20e   : > { %v4169_v20 = vsub.f32 0.0, %v8672_v33  ;;  %v7238_v59 = vpop.eup %7237  ;;  %v4923_v30 = vmul.f32 %v7236_v29, %v8553_v17  ;;  %7257 = vrcp.f32 %v4544_v10  ;;  %v4378_v36 = vmul.f32 1.442695, %v4171_v26  ;;  %v6305_v48 = vpop.f32.mrb[82].mxu1 }
 0x20f   : > { %v7240_v5 = vpop.eup %7239  ;;  %v4921_v4 = vmul.f32 %v7238_v59, %v8557_v13  ;;  %7259 = vrcp.f32 %v4547_v35  ;;  %v6567_v32 = vadd.f32 %v3638_v62, %v2436_v53  ;;  %v6437_v0 = vpop.f32.mrb[82].mxu0  ;;  %v8682_v50 = vadd.f32 %v8428_v25, %v6566_v3 }
 0x210   : > { %v4374_v60 = vmul.f32 1.442695, %v4169_v20  ;;  %v2439_v6 = vpop.f32.mrb[83].mxu1  ;;  %v7242_v43 = vpop.eup %7241  ;;  %5052 = vst.msk [vmem:[%s8174_s10 + $0x1f8] sm:$0xff] %vm4988_vm2, %v4923_v30  ;;  %v4926_v17 = vmul.f32 %v7240_v5, %v8572_v18  ;;  %7261 = vpow2.f32 %v4366_v38  ;;  %v6568_v54 = vadd.f32 %v6437_v0, %v6305_v48 }
 0x211   : > { %v3641_v31 = vpop.f32.mrb[83].mxu0  ;;  %v7244_v39 = vpop.eup %7243  ;;  %5050 = vst.msk [vmem:[%s8174_s10 + $0x1e8] sm:$0xff] %vm4988_vm2, %v4921_v4  ;;  %v4924_v13 = vmul.f32 %v7242_v43, %v8577_v45  ;;  %7263 = vpow2.f32 %v4376_v8  ;;  %v8688_v27 = vadd.f32 %v8428_v25, %v6567_v32  ;;  %v4174_v38 = vsub.f32 0.0, %v8682_v50 }
 0x212   : > { %v6569_v44 = vadd.f32 %v3641_v31, %v2439_v6  ;;  %v7246_v47 = vpop.eup %7245  ;;  %5055 = vst.msk [vmem:[%s8174_s10 + $0x210] sm:$0xff] %vm4988_vm2, %v4926_v17  ;;  %v4927_v18 = vmul.f32 %v7244_v39, %v8581_v7  ;;  %7265 = vpow2.f32 %v4372_v52  ;;  %v8695_v19 = vadd.f32 %v8428_v25, %v6568_v54  ;;  %v6308_v49 = vpop.f32.mrb[84].mxu1 }
 0x213   : > { %v7248_v51 = vpop.eup %7247  ;;  %5053 = vst.msk [vmem:[%s8174_s10 + $0x200] sm:$0xff] %vm4988_vm2, %v4924_v13  ;;  %v4545_v45 = vadd.f32 1.0, %v7246_v47  ;;  %7267 = vpow2.f32 %v4378_v36  ;;  %v4172_v22 = vsub.f32 0.0, %v8688_v27  ;;  %v4384_v21 = vmul.f32 1.442695, %v4174_v38  ;;  %v6440_v42 = vpop.f32.mrb[84].mxu0 }
 0x214   : > { %v8701_v37 = vadd.f32 %v8428_v25, %v6569_v44  ;;  %v7250_v24 = vpop.eup %7249  ;;  %5056 = vst.msk [vmem:[%s8174_s10 + $0x218] sm:$0xff] %vm4988_vm2, %v4927_v18  ;;  %v4550_v7 = vadd.f32 1.0, %v7248_v51  ;;  %7269 = vpow2.f32 %v4374_v60  ;;  %v4175_v40 = vsub.f32 0.0, %v8695_v19  ;;  %v2452_v11 = vpop.f32.mrb[85].mxu1 }
 0x215   : > { %v7252_v23 = vpop.eup %7251  ;;  %7271 = vrcp.f32 %v4545_v45  ;;  %v4548_v63 = vadd.f32 1.0, %v7250_v24  ;;  %v4380_v58 = vmul.f32 1.442695, %v4172_v22  ;;  %v6570_v14 = vadd.f32 %v6440_v42, %v6308_v49  ;;  %v3654_v29 = vpop.f32.mrb[85].mxu0 }
 0x216   : > { %v4173_v9 = vsub.f32 0.0, %v8701_v37  ;;  %v7254_v10 = vpop.eup %7253  ;;  %7273 = vrcp.f32 %v4550_v7  ;;  %v4551_v8 = vadd.f32 1.0, %v7252_v23  ;;  %v4386_v26 = vmul.f32 1.442695, %v4175_v40  ;;  %v6309_v35 = vpop.f32.mrb[86].mxu1 }
 0x217   : > { %v7256_v52 = vpop.eup %7255  ;;  %v4925_v20 = vmul.f32 %v7254_v10, %v8585_v56  ;;  %7275 = vrcp.f32 %v4548_v63  ;;  %v6571_v53 = vadd.f32 %v3654_v29, %v2452_v11  ;;  %v6441_v59 = vpop.f32.mrb[86].mxu0  ;;  %v8710_v62 = vadd.f32 %v8428_v25, %v6570_v14  ;;  %v8739_v14 = vld [vmem:[%s9082_s2] ss:$0 sm:$0xff] }
 0x218   : > { %v4382_v34 = vmul.f32 1.442695, %v4173_v9  ;;  %v2455_v30 = vpop.f32.mrb[87].mxu1  ;;  %v7258_v36 = vpop.eup %7257  ;;  %v4930_v3 = vmul.f32 %v7256_v52, %v8601_v28  ;;  %7277 = vrcp.f32 %v4551_v8  ;;  %v6572_v48 = vadd.f32 %v6441_v59, %v6309_v35 }
 0x219   : > { %v3657_v5 = vpop.f32.mrb[87].mxu0  ;;  %v7260_v4 = vpop.eup %7259  ;;  %5054 = vst.msk [vmem:[%s8174_s10 + $0x208] sm:$0xff] %vm4988_vm2, %v4925_v20  ;;  %v4928_v56 = vmul.f32 %v7258_v36, %v8606_v2  ;;  %7279 = vpow2.f32 %v4384_v21  ;;  %v8716_v60 = vadd.f32 %v8428_v25, %v6571_v53  ;;  %v4178_v6 = vsub.f32 0.0, %v8710_v62 }
 0x21a   : > { %v6573_v32 = vadd.f32 %v3657_v5, %v2455_v30  ;;  %v7262_v0 = vpop.eup %7261  ;;  %5059 = vst.msk [vmem:[%s8174_s10 + $0x230] sm:$0xff] %vm4988_vm2, %v4930_v3  ;;  %v4931_v28 = vmul.f32 %v7260_v4, %v8612_v15  ;;  %7281 = vpow2.f32 %v4380_v58  ;;  %v8723_v43 = vadd.f32 %v8428_v25, %v6572_v48  ;;  %v6312_v47 = vpop.f32.mrb[88].mxu1 }
 0x21b   : > { %v7264_v17 = vpop.eup %7263  ;;  %5057 = vst.msk [vmem:[%s8174_s10 + $0x220] sm:$0xff] %vm4988_vm2, %v4928_v56  ;;  %v4549_v2 = vadd.f32 1.0, %v7262_v0  ;;  %7283 = vpow2.f32 %v4386_v26  ;;  %v4176_v54 = vsub.f32 0.0, %v8716_v60  ;;  %v4392_v13 = vmul.f32 1.442695, %v4178_v6  ;;  %v6444_v22 = vpop.f32.mrb[88].mxu0 }
 0x21c   : > { %v8729_v31 = vadd.f32 %v8428_v25, %v6573_v32  ;;  %v7266_v39 = vpop.eup %7265  ;;  %5060 = vst.msk [vmem:[%s8174_s10 + $0x238] sm:$0xff] %vm4988_vm2, %v4931_v28  ;;  %v4554_v15 = vadd.f32 1.0, %v7264_v17  ;;  %7285 = vpow2.f32 %v4382_v34  ;;  %v4179_v44 = vsub.f32 0.0, %v8723_v43  ;;  %v2468_v24 = vpop.f32.mrb[89].mxu1 }
 0x21d   : > { %v7268_v18 = vpop.eup %7267  ;;  %7287 = vrcp.f32 %v4549_v2  ;;  %v4552_v38 = vadd.f32 1.0, %v7266_v39  ;;  %v4388_v51 = vmul.f32 1.442695, %v4176_v54  ;;  %v6574_v40 = vadd.f32 %v6444_v22, %v6312_v47  ;;  %v3670_v49 = vpop.f32.mrb[89].mxu0 }
 0x21e   : > { %v4177_v45 = vsub.f32 0.0, %v8729_v31  ;;  %v7270_v7 = vpop.eup %7269  ;;  %7289 = vrcp.f32 %v4554_v15  ;;  %v4555_v25 = vadd.f32 1.0, %v7268_v18  ;;  %v4394_v21 = vmul.f32 1.442695, %v4179_v44  ;;  %v6313_v23 = vpop.f32.mrb[90].mxu1 }
 0x21f   : > { %v7272_v63 = vpop.eup %7271  ;;  %7291 = vrcp.f32 %v4552_v38  ;;  %v4553_v58 = vadd.f32 1.0, %v7270_v7  ;;  %v6575_v42 = vadd.f32 %v3670_v49, %v2468_v24  ;;  %v6445_v11 = vpop.f32.mrb[90].mxu0  ;;  %v8742_v29 = vadd.f32 %v8739_v14, %v6574_v40 }
 0x220   : > { %v4390_v9 = vmul.f32 1.442695, %v4177_v45  ;;  %v2471_v10 = vpop.f32.mrb[91].mxu1  ;;  %v7274_v8 = vpop.eup %7273  ;;  %v4929_v26 = vmul.f32 %v7272_v63, %v8616_v41  ;;  %7293 = vrcp.f32 %v4555_v25  ;;  %v6576_v35 = vadd.f32 %v6445_v11, %v6313_v23 }
 0x221   : > { %v3673_v52 = vpop.f32.mrb[91].mxu0  ;;  %v7276_v20 = vpop.eup %7275  ;;  %v4934_v34 = vmul.f32 %v7274_v8, %v8629_v61  ;;  %7295 = vrcp.f32 %v4553_v58  ;;  %v8746_v53 = vadd.f32 %v8739_v14, %v6575_v42  ;;  %v4182_v36 = vsub.f32 0.0, %v8742_v29 }
 0x222   : > { %v6577_v41 = vadd.f32 %v3673_v52, %v2471_v10  ;;  %v7278_v59 = vpop.eup %7277  ;;  %5058 = vst.msk [vmem:[%s8174_s10 + $0x228] sm:$0xff] %vm4988_vm2, %v4929_v26  ;;  %v4932_v30 = vmul.f32 %v7276_v20, %v8634_v55  ;;  %7297 = vpow2.f32 %v4392_v13  ;;  %v8753_v3 = vadd.f32 %v8739_v14, %v6576_v35  ;;  %v6316_v28 = vpop.f32.mrb[92].mxu1 }
 0x223   : > { %v7280_v48 = vpop.eup %7279  ;;  %5063 = vst.msk [vmem:[%s8174_s10 + $0x250] sm:$0xff] %vm4988_vm2, %v4934_v34  ;;  %v4935_v61 = vmul.f32 %v7278_v59, %v8640_v46  ;;  %7299 = vpow2.f32 %v4388_v51  ;;  %v4180_v5 = vsub.f32 0.0, %v8746_v53  ;;  %v4400_v32 = vmul.f32 1.442695, %v4182_v36  ;;  %v6448_v54 = vpop.f32.mrb[92].mxu0 }
 0x224   : > { %v8760_v4 = vadd.f32 %v8739_v14, %v6577_v41  ;;  %v7282_v56 = vpop.eup %7281  ;;  %5061 = vst.msk [vmem:[%s8174_s10 + $0x240] sm:$0xff] %vm4988_vm2, %v4932_v30  ;;  %v4558_v55 = vadd.f32 1.0, %v7280_v48  ;;  %7301 = vpow2.f32 %v4394_v21  ;;  %v4183_v0 = vsub.f32 0.0, %v8753_v3  ;;  %v2484_v39 = vpop.f32.mrb[93].mxu1 }
 0x225   : > { %v7284_v6 = vpop.eup %7283  ;;  %5064 = vst.msk [vmem:[%s8174_s10 + $0x258] sm:$0xff] %vm4988_vm2, %v4935_v61  ;;  %v4556_v17 = vadd.f32 1.0, %v7282_v56  ;;  %7303 = vpow2.f32 %v4390_v9  ;;  %v4396_v46 = vmul.f32 1.442695, %v4180_v5  ;;  %v6578_v47 = vadd.f32 %v6448_v54, %v6316_v28  ;;  %v3686_v18 = vpop.f32.mrb[93].mxu0 }
 0x226   : > { %v4181_v2 = vsub.f32 0.0, %v8760_v4  ;;  %v7286_v15 = vpop.eup %7285  ;;  %7305 = vrcp.f32 %v4558_v55  ;;  %v4559_v13 = vadd.f32 1.0, %v7284_v6  ;;  %v4402_v44 = vmul.f32 1.442695, %v4183_v0  ;;  %v6317_v38 = vpop.f32.mrb[94].mxu1 }
 0x227   : > { %v7288_v51 = vpop.eup %7287  ;;  %7307 = vrcp.f32 %v4556_v17  ;;  %v4557_v45 = vadd.f32 1.0, %v7286_v15  ;;  %v6579_v24 = vadd.f32 %v3686_v18, %v2484_v39  ;;  %v6449_v7 = vpop.f32.mrb[94].mxu0  ;;  %v8770_v49 = vadd.f32 %v8739_v14, %v6578_v47 }
 0x228   : > { %v4398_v22 = vmul.f32 1.442695, %v4181_v2  ;;  %v2487_v25 = vpop.f32.mrb[95].mxu1  ;;  %v7290_v21 = vpop.eup %7289  ;;  %v4933_v40 = vmul.f32 %v7288_v51, %v8644_v57  ;;  %7309 = vrcp.f32 %v4559_v13  ;;  %v6580_v23 = vadd.f32 %v6449_v7, %v6317_v38 }
 0x229   : > { %v3689_v63 = vpop.f32.mrb[95].mxu0  ;;  %v7292_v58 = vpop.eup %7291  ;;  %v4938_v9 = vmul.f32 %v7290_v21, %v8654_v12  ;;  %7311 = vrcp.f32 %v4557_v45  ;;  %v8774_v42 = vadd.f32 %v8739_v14, %v6579_v24  ;;  %v4186_v8 = vsub.f32 0.0, %v8770_v49 }
 0x22a   : > { %v6581_v11 = vadd.f32 %v3689_v63, %v2487_v25  ;;  %v7294_v10 = vpop.eup %7293  ;;  %5062 = vst.msk [vmem:[%s8174_s10 + $0x248] sm:$0xff] %vm4988_vm2, %v4933_v40  ;;  %v4936_v57 = vmul.f32 %v7292_v58, %v8660_v1  ;;  %7313 = vpow2.f32 %v4400_v32  ;;  %v8781_v26 = vadd.f32 %v8739_v14, %v6580_v23  ;;  %v6320_v30 = vpop.f32.mrb[96].mxu1 }
 0x22b   : > { %v7296_v35 = vpop.eup %7295  ;;  %5067 = vst.msk [vmem:[%s8174_s10 + $0x270] sm:$0xff] %vm4988_vm2, %v4938_v9  ;;  %v4939_v12 = vmul.f32 %v7294_v10, %v8666_v16  ;;  %7315 = vpow2.f32 %v4396_v46  ;;  %v4184_v52 = vsub.f32 0.0, %v8774_v42  ;;  %v4408_v41 = vmul.f32 1.442695, %v4186_v8  ;;  %v6452_v5 = vpop.f32.mrb[96].mxu0 }
 0x22c   : > { %v8788_v20 = vadd.f32 %v8739_v14, %v6581_v11  ;;  %v7298_v34 = vpop.eup %7297  ;;  %5065 = vst.msk [vmem:[%s8174_s10 + $0x260] sm:$0xff] %vm4988_vm2, %v4936_v57  ;;  %v4937_v1 = vmul.f32 %v7296_v35, %v8672_v33  ;;  %7317 = vpow2.f32 %v4402_v44  ;;  %v4187_v59 = vsub.f32 0.0, %v8781_v26  ;;  %v2500_v56 = vpop.f32.mrb[97].mxu1 }
 0x22d   : > { %v7300_v36 = vpop.eup %7299  ;;  %5068 = vst.msk [vmem:[%s8174_s10 + $0x278] sm:$0xff] %vm4988_vm2, %v4939_v12  ;;  %v4562_v16 = vadd.f32 1.0, %v7298_v34  ;;  %7319 = vpow2.f32 %v4398_v22  ;;  %v4404_v48 = vmul.f32 1.442695, %v4184_v52  ;;  %v6582_v0 = vadd.f32 %v6452_v5, %v6320_v30  ;;  %v3702_v28 = vpop.f32.mrb[97].mxu0 }
 0x22e   : > { %v4185_v61 = vsub.f32 0.0, %v8788_v20  ;;  %v7302_v55 = vpop.eup %7301  ;;  %5066 = vst.msk [vmem:[%s8174_s10 + $0x268] sm:$0xff] %vm4988_vm2, %v4937_v1  ;;  %v4560_v32 = vadd.f32 1.0, %v7300_v36  ;;  %7321 = vpow2.f32 %v4408_v41  ;;  %v4410_v33 = vmul.f32 1.442695, %v4187_v59  ;;  %v6321_v6 = vpop.f32.mrb[98].mxu1 }
 0x22f   : > { %v7304_v17 = vpop.eup %7303  ;;  %7323 = vrcp.f32 %v4562_v16  ;;  %v4563_v46 = vadd.f32 1.0, %v7302_v55  ;;  %v6583_v54 = vadd.f32 %v3702_v28, %v2500_v56  ;;  %v6453_v39 = vpop.f32.mrb[98].mxu0  ;;  %v8800_v47 = vadd.f32 %v8739_v14, %v6582_v0 }
 0x230   : > { %v4406_v2 = vmul.f32 1.442695, %v4185_v61  ;;  %v2503_v15 = vpop.f32.mrb[99].mxu1  ;;  %v7306_v13 = vpop.eup %7305  ;;  %7325 = vrcp.f32 %v4560_v32  ;;  %v4561_v44 = vadd.f32 1.0, %v7304_v17  ;;  %v6584_v18 = vadd.f32 %v6453_v39, %v6321_v6 }
 0x231   : > { %v3705_v38 = vpop.f32.mrb[99].mxu0  ;;  %v7308_v51 = vpop.eup %7307  ;;  %v4942_v45 = vmul.f32 %v7306_v13, %v8682_v50  ;;  %7327 = vrcp.f32 %v4563_v46  ;;  %v8804_v22 = vadd.f32 %v8739_v14, %v6583_v54  ;;  %v4190_v21 = vsub.f32 0.0, %v8800_v47 }
 0x232   : > { %v6585_v24 = vadd.f32 %v3705_v38, %v2503_v15  ;;  %v7310_v7 = vpop.eup %7309  ;;  %v4940_v25 = vmul.f32 %v7308_v51, %v8688_v27  ;;  %7329 = vrcp.f32 %v4561_v44  ;;  %v8809_v40 = vadd.f32 %v8739_v14, %v6584_v18  ;;  %v6324_v57 = vpop.f32.mrb[100].mxu1 }
 0x233   : > { %v7312_v23 = vpop.eup %7311  ;;  %5071 = vst.msk [vmem:[%s8174_s10 + $0x290] sm:$0xff] %vm4988_vm2, %v4942_v45  ;;  %v4943_v50 = vmul.f32 %v7310_v7, %v8695_v19  ;;  %7331 = vpow2.f32 %v4404_v48  ;;  %v4188_v63 = vsub.f32 0.0, %v8804_v22  ;;  %v4416_v11 = vmul.f32 1.442695, %v4190_v21  ;;  %v6456_v52 = vpop.f32.mrb[100].mxu0 }
 0x234   : > { %v8816_v58 = vadd.f32 %v8739_v14, %v6585_v24  ;;  %v7314_v9 = vpop.eup %7313  ;;  %5069 = vst.msk [vmem:[%s8174_s10 + $0x280] sm:$0xff] %vm4988_vm2, %v4940_v25  ;;  %v4941_v27 = vmul.f32 %v7312_v23, %v8701_v37  ;;  %7333 = vpow2.f32 %v4410_v33  ;;  %v4191_v10 = vsub.f32 0.0, %v8809_v40  ;;  %v2516_v34 = vpop.f32.mrb[101].mxu1 }
 0x235   : > { %v7316_v8 = vpop.eup %7315  ;;  %5072 = vst.msk [vmem:[%s8174_s10 + $0x298] sm:$0xff] %vm4988_vm2, %v4943_v50  ;;  %v4566_v19 = vadd.f32 1.0, %v7314_v9  ;;  %7335 = vpow2.f32 %v4406_v2  ;;  %v4412_v35 = vmul.f32 1.442695, %v4188_v63  ;;  %v6586_v59 = vadd.f32 %v6456_v52, %v6324_v57  ;;  %v3718_v30 = vpop.f32.mrb[101].mxu0 }
 0x236   : > { %v4189_v12 = vsub.f32 0.0, %v8816_v58  ;;  %v7318_v1 = vpop.eup %7317  ;;  %5070 = vst.msk [vmem:[%s8174_s10 + $0x288] sm:$0xff] %vm4988_vm2, %v4941_v27  ;;  %v4564_v41 = vadd.f32 1.0, %v7316_v8  ;;  %7337 = vpow2.f32 %v4416_v11  ;;  %v4418_v37 = vmul.f32 1.442695, %v4191_v10  ;;  %v6325_v36 = vpop.f32.mrb[102].mxu1 }
 0x237   : > { %v7320_v16 = vpop.eup %7319  ;;  %7339 = vrcp.f32 %v4566_v19  ;;  %v4567_v48 = vadd.f32 1.0, %v7318_v1  ;;  %v6587_v5 = vadd.f32 %v3718_v30, %v2516_v34  ;;  %v6457_v56 = vpop.f32.mrb[102].mxu0  ;;  %v8828_v0 = vadd.f32 %v8739_v14, %v6586_v59 }
 0x238   : > { %v4414_v61 = vmul.f32 1.442695, %v4189_v12  ;;  %v2519_v55 = vpop.f32.mrb[103].mxu1  ;;  %v7322_v32 = vpop.eup %7321  ;;  %7341 = vrcp.f32 %v4564_v41  ;;  %v4565_v33 = vadd.f32 1.0, %v7320_v16  ;;  %v6588_v28 = vadd.f32 %v6457_v56, %v6325_v36 }
 0x239   : > { %v3721_v6 = vpop.f32.mrb[103].mxu0  ;;  %v7324_v17 = vpop.eup %7323  ;;  %7343 = vrcp.f32 %v4567_v48  ;;  %v4570_v46 = vadd.f32 1.0, %v7322_v32  ;;  %v8831_v2 = vadd.f32 %v8739_v14, %v6587_v5  ;;  %v4194_v13 = vsub.f32 0.0, %v8828_v0 }
 0x23a   : > { %v6589_v54 = vadd.f32 %v3721_v6, %v2519_v55  ;;  %v7326_v39 = vpop.eup %7325  ;;  %v4946_v15 = vmul.f32 %v7324_v17, %v8710_v62  ;;  %7345 = vrcp.f32 %v4565_v33  ;;  %v8836_v44 = vadd.f32 %v8739_v14, %v6588_v28  ;;  %v6328_v21 = vpop.f32.mrb[104].mxu1 }
 0x23b   : > { %v7328_v18 = vpop.eup %7327  ;;  %v4944_v38 = vmul.f32 %v7326_v39, %v8716_v60  ;;  %7347 = vrcp.f32 %v4570_v46  ;;  %v4192_v51 = vsub.f32 0.0, %v8831_v2  ;;  %v4424_v7 = vmul.f32 1.442695, %v4194_v13  ;;  %v6460_v9 = vpop.f32.mrb[104].mxu0 }
 0x23c   : > { %v8841_v45 = vadd.f32 %v8739_v14, %v6589_v54  ;;  %v7330_v24 = vpop.eup %7329  ;;  %5075 = vst.msk [vmem:[%s8174_s10 + $0x2b0] sm:$0xff] %vm4988_vm2, %v4946_v15  ;;  %v4947_v62 = vmul.f32 %v7328_v18, %v8723_v43  ;;  %7349 = vpow2.f32 %v4412_v35  ;;  %v4195_v25 = vsub.f32 0.0, %v8836_v44  ;;  %v2532_v27 = vpop.f32.mrb[105].mxu1 }
 0x23d   : > { %v7332_v23 = vpop.eup %7331  ;;  %5073 = vst.msk [vmem:[%s8174_s10 + $0x2a0] sm:$0xff] %vm4988_vm2, %v4944_v38  ;;  %v4945_v60 = vmul.f32 %v7330_v24, %v8729_v31  ;;  %7351 = vpow2.f32 %v4418_v37  ;;  %v4420_v50 = vmul.f32 1.442695, %v4192_v51  ;;  %v6590_v57 = vadd.f32 %v6460_v9, %v6328_v21  ;;  %v3734_v8 = vpop.f32.mrb[105].mxu0 }
 0x23e   : > { %v4193_v63 = vsub.f32 0.0, %v8841_v45  ;;  %v7334_v11 = vpop.eup %7333  ;;  %5076 = vst.msk [vmem:[%s8174_s10 + $0x2b8] sm:$0xff] %vm4988_vm2, %v4947_v62  ;;  %v4568_v43 = vadd.f32 1.0, %v7332_v23  ;;  %7353 = vpow2.f32 %v4414_v61  ;;  %v4426_v10 = vmul.f32 1.442695, %v4195_v25  ;;  %v6329_v19 = vpop.f32.mrb[106].mxu1 }
 0x23f   : > { %v7336_v35 = vpop.eup %7335  ;;  %5074 = vst.msk [vmem:[%s8174_s10 + $0x2a8] sm:$0xff] %vm4988_vm2, %v4945_v60  ;;  %v4571_v12 = vadd.f32 1.0, %v7334_v11  ;;  %7355 = vpow2.f32 %v4424_v7  ;;  %v6591_v52 = vadd.f32 %v3734_v8, %v2532_v27  ;;  %v6461_v34 = vpop.f32.mrb[106].mxu0  ;;  %v8856_v59 = vadd.f32 %v8739_v14, %v6590_v57 }
 0x240   : > { %v4422_v31 = vmul.f32 1.442695, %v4193_v63  ;;  %v2535_v1 = vpop.f32.mrb[107].mxu1  ;;  %v7338_v41 = vpop.eup %7337  ;;  %7357 = vrcp.f32 %v4568_v43  ;;  %v4569_v37 = vadd.f32 1.0, %v7336_v35  ;;  %v6592_v30 = vadd.f32 %v6461_v34, %v6329_v19 }
 0x241   : > { %v3737_v36 = vpop.f32.mrb[107].mxu0  ;;  %v7340_v16 = vpop.eup %7339  ;;  %7359 = vrcp.f32 %v4571_v12  ;;  %v4574_v48 = vadd.f32 1.0, %v7338_v41  ;;  %v8859_v61 = vadd.f32 %v8739_v14, %v6591_v52  ;;  %v4198_v32 = vsub.f32 0.0, %v8856_v59 }
 0x242   : > { %v6593_v5 = vadd.f32 %v3737_v36, %v2535_v1  ;;  %v7342_v56 = vpop.eup %7341  ;;  %v4950_v55 = vmul.f32 %v7340_v16, %v8742_v29  ;;  %7361 = vrcp.f32 %v4569_v37  ;;  %v8864_v33 = vadd.f32 %v8739_v14, %v6592_v30  ;;  %v6332_v13 = vpop.f32.mrb[108].mxu1 }
 0x243   : > { %v7344_v28 = vpop.eup %7343  ;;  %v4948_v6 = vmul.f32 %v7342_v56, %v8746_v53  ;;  %7363 = vrcp.f32 %v4574_v48  ;;  %v4196_v17 = vsub.f32 0.0, %v8859_v61  ;;  %v4432_v39 = vmul.f32 1.442695, %v4198_v32  ;;  %v6464_v24 = vpop.f32.mrb[108].mxu0 }
 0x244   : > { %v8869_v46 = vadd.f32 %v8739_v14, %v6593_v5  ;;  %v7346_v54 = vpop.eup %7345  ;;  %5079 = vst.msk [vmem:[%s8174_s10 + $0x2d0] sm:$0xff] %vm4988_vm2, %v4950_v55  ;;  %v4951_v29 = vmul.f32 %v7344_v28, %v8753_v3  ;;  %7365 = vpow2.f32 %v4420_v50  ;;  %v4199_v15 = vsub.f32 0.0, %v8864_v33  ;;  %v2548_v62 = vpop.f32.mrb[109].mxu1 }
 0x245   : > { %v7348_v18 = vpop.eup %7347  ;;  %5077 = vst.msk [vmem:[%s8174_s10 + $0x2c0] sm:$0xff] %vm4988_vm2, %v4948_v6  ;;  %v4949_v53 = vmul.f32 %v7346_v54, %v8760_v4  ;;  %7367 = vpow2.f32 %v4426_v10  ;;  %v4428_v38 = vmul.f32 1.442695, %v4196_v17  ;;  %v6594_v21 = vadd.f32 %v6464_v24, %v6332_v13  ;;  %v3750_v23 = vpop.f32.mrb[109].mxu0 }
 0x246   : > { %v4197_v51 = vsub.f32 0.0, %v8869_v46  ;;  %v7350_v7 = vpop.eup %7349  ;;  %5080 = vst.msk [vmem:[%s8174_s10 + $0x2d8] sm:$0xff] %vm4988_vm2, %v4951_v29  ;;  %v4954_v3 = vmul.f32 %v7348_v18, %v8770_v49  ;;  %7369 = vpow2.f32 %v4422_v31  ;;  %v4434_v25 = vmul.f32 1.442695, %v4199_v15  ;;  %v6333_v60 = vpop.f32.mrb[110].mxu1 }
 0x247   : > { %v7352_v50 = vpop.eup %7351  ;;  %5078 = vst.msk [vmem:[%s8174_s10 + $0x2c8] sm:$0xff] %vm4988_vm2, %v4949_v53  ;;  %v4572_v4 = vadd.f32 1.0, %v7350_v7  ;;  %7371 = vpow2.f32 %v4432_v39  ;;  %v6595_v9 = vadd.f32 %v3750_v23, %v2548_v62  ;;  %v6465_v27 = vpop.f32.mrb[110].mxu0  ;;  %v8887_v49 = vadd.f32 %v8739_v14, %v6594_v21 }
 0x248   : > { %v4430_v63 = vmul.f32 1.442695, %v4197_v51  ;;  %v2551_v11 = vpop.f32.mrb[111].mxu1  ;;  %v7354_v43 = vpop.eup %7353  ;;  %5083 = vst.msk [vmem:[%s8174_s10 + $0x2f0] sm:$0xff] %vm4988_vm2, %v4954_v3  ;;  %v4575_v10 = vadd.f32 1.0, %v7352_v50  ;;  %7373 = vpow2.f32 %v4428_v38  ;;  %v6596_v57 = vadd.f32 %v6465_v27, %v6333_v60 }
 0x249   : > { %v3753_v8 = vpop.f32.mrb[111].mxu0  ;;  %v7356_v19 = vpop.eup %7355  ;;  %7375 = vrcp.f32 %v4572_v4  ;;  %v4573_v35 = vadd.f32 1.0, %v7354_v43  ;;  %v8890_v12 = vadd.f32 %v8739_v14, %v6595_v9  ;;  %v4202_v1 = vsub.f32 0.0, %v8887_v49 }
 0x24a   : > { %v6597_v31 = vadd.f32 %v3753_v8, %v2551_v11  ;;  %v7358_v52 = vpop.eup %7357  ;;  %7377 = vrcp.f32 %v4575_v10  ;;  %v4578_v34 = vadd.f32 1.0, %v7356_v19  ;;  %v8894_v41 = vadd.f32 %v8739_v14, %v6596_v57  ;;  %v6336_v32 = vpop.f32.mrb[112].mxu1 }
 0x24b   : > { %v7360_v37 = vpop.eup %7359  ;;  %v4952_v30 = vmul.f32 %v7358_v52, %v8774_v42  ;;  %7379 = vrcp.f32 %v4573_v35  ;;  %v4200_v36 = vsub.f32 0.0, %v8890_v12  ;;  %v4440_v56 = vmul.f32 1.442695, %v4202_v1  ;;  %v6468_v54 = vpop.f32.mrb[112].mxu0 }
 0x24c   : > { %v8899_v16 = vadd.f32 %v8739_v14, %v6597_v31  ;;  %v7362_v48 = vpop.eup %7361  ;;  %v4955_v5 = vmul.f32 %v7360_v37, %v8781_v26  ;;  %7381 = vrcp.f32 %v4578_v34  ;;  %v4203_v55 = vsub.f32 0.0, %v8894_v41  ;;  %v2564_v29 = vpop.f32.mrb[113].mxu1 }
 0x24d   : > { %v7364_v28 = vpop.eup %7363  ;;  %5081 = vst.msk [vmem:[%s8174_s10 + $0x2e0] sm:$0xff] %vm4988_vm2, %v4952_v30  ;;  %v4953_v42 = vmul.f32 %v7362_v48, %v8788_v20  ;;  %7383 = vpow2.f32 %v4434_v25  ;;  %v4436_v6 = vmul.f32 1.442695, %v4200_v36  ;;  %v6598_v13 = vadd.f32 %v6468_v54, %v6336_v32  ;;  %v3766_v18 = vpop.f32.mrb[113].mxu0 }
 0x24e   : > { %v4201_v17 = vsub.f32 0.0, %v8899_v16  ;;  %v7366_v39 = vpop.eup %7365  ;;  %5084 = vst.msk [vmem:[%s8174_s10 + $0x2f8] sm:$0xff] %vm4988_vm2, %v4955_v5  ;;  %v4958_v26 = vmul.f32 %v7364_v28, %v8800_v47  ;;  %7385 = vpow2.f32 %v4430_v63  ;;  %v4442_v15 = vmul.f32 1.442695, %v4203_v55  ;;  %v6337_v53 = vpop.f32.mrb[114].mxu1 }
 0x24f   : > { %v7368_v38 = vpop.eup %7367  ;;  %5082 = vst.msk [vmem:[%s8174_s10 + $0x2e8] sm:$0xff] %vm4988_vm2, %v4953_v42  ;;  %v4576_v20 = vadd.f32 1.0, %v7366_v39  ;;  %7387 = vpow2.f32 %v4440_v56  ;;  %v6599_v24 = vadd.f32 %v3766_v18, %v2564_v29  ;;  %v6469_v62 = vpop.f32.mrb[114].mxu0  ;;  %v8915_v47 = vadd.f32 %v8739_v14, %v6598_v13 }
 0x250   : > { %v4438_v51 = vmul.f32 1.442695, %v4201_v17  ;;  %v2567_v7 = vpop.f32.mrb[115].mxu1  ;;  %v7370_v3 = vpop.eup %7369  ;;  %5087 = vst.msk [vmem:[%s8174_s10 + $0x310] sm:$0xff] %vm4988_vm2, %v4958_v26  ;;  %v4579_v25 = vadd.f32 1.0, %v7368_v38  ;;  %7389 = vpow2.f32 %v4436_v6  ;;  %v6600_v21 = vadd.f32 %v6469_v62, %v6337_v53 }
 0x251   : > { %v3769_v23 = vpop.f32.mrb[115].mxu0  ;;  %v7372_v60 = vpop.eup %7371  ;;  %7391 = vrcp.f32 %v4576_v20  ;;  %v4577_v50 = vadd.f32 1.0, %v7370_v3  ;;  %v8918_v4 = vadd.f32 %v8739_v14, %v6599_v24  ;;  %v4206_v11 = vsub.f32 0.0, %v8915_v47 }
 0x252   : > { %v6601_v63 = vadd.f32 %v3769_v23, %v2567_v7  ;;  %v7374_v9 = vpop.eup %7373  ;;  %7393 = vrcp.f32 %v4579_v25  ;;  %v4582_v27 = vadd.f32 1.0, %v7372_v60  ;;  %v8922_v43 = vadd.f32 %v8739_v14, %v6600_v21  ;;  %v6340_v1 = vpop.f32.mrb[116].mxu1 }
 0x253   : > { %v7376_v10 = vpop.eup %7375  ;;  %7395 = vrcp.f32 %v4577_v50  ;;  %v4580_v57 = vadd.f32 1.0, %v7374_v9  ;;  %v4204_v8 = vsub.f32 0.0, %v8918_v4  ;;  %v4448_v52 = vmul.f32 1.442695, %v4206_v11  ;;  %v6472_v5 = vpop.f32.mrb[116].mxu0 }
 0x254   : > { %v8926_v19 = vadd.f32 %v8739_v14, %v6601_v63  ;;  %v7378_v35 = vpop.eup %7377  ;;  %v4956_v31 = vmul.f32 %v7376_v10, %v8804_v22  ;;  %7397 = vrcp.f32 %v4582_v27  ;;  %v4207_v34 = vsub.f32 0.0, %v8922_v43  ;;  %v2580_v56 = vpop.f32.mrb[117].mxu1 }
 0x255   : > { %v7380_v37 = vpop.eup %7379  ;;  %v4959_v30 = vmul.f32 %v7378_v35, %v8809_v40  ;;  %7399 = vrcp.f32 %v4580_v57  ;;  %v4444_v36 = vmul.f32 1.442695, %v4204_v8  ;;  %v6602_v28 = vadd.f32 %v6472_v5, %v6340_v1  ;;  %v3782_v42 = vpop.f32.mrb[117].mxu0 }
 0x256   : > { %v4205_v48 = vsub.f32 0.0, %v8926_v19  ;;  %v7382_v55 = vpop.eup %7381  ;;  %5085 = vst.msk [vmem:[%s8174_s10 + $0x300] sm:$0xff] %vm4988_vm2, %v4956_v31  ;;  %v4957_v22 = vmul.f32 %v7380_v37, %v8816_v58  ;;  %7401 = vpow2.f32 %v4442_v15  ;;  %v4450_v32 = vmul.f32 1.442695, %v4207_v34  ;;  %v6341_v6 = vpop.f32.mrb[118].mxu1 }
 0x257   : > { %v7384_v17 = vpop.eup %7383  ;;  %5088 = vst.msk [vmem:[%s8174_s10 + $0x318] sm:$0xff] %vm4988_vm2, %v4959_v30  ;;  %v4962_v40 = vmul.f32 %v7382_v55, %v8828_v0  ;;  %7403 = vpow2.f32 %v4438_v51  ;;  %v6603_v29 = vadd.f32 %v3782_v42, %v2580_v56  ;;  %v6473_v39 = vpop.f32.mrb[118].mxu0  ;;  %v8941_v15 = vadd.f32 %v8739_v14, %v6602_v28 }
 0x258   : > { %v4446_v54 = vmul.f32 1.442695, %v4205_v48  ;;  %v2583_v26 = vpop.f32.mrb[119].mxu1  ;;  %v7386_v13 = vpop.eup %7385  ;;  %5086 = vst.msk [vmem:[%s8174_s10 + $0x308] sm:$0xff] %vm4988_vm2, %v4957_v22  ;;  %v4583_v58 = vadd.f32 1.0, %v7384_v17  ;;  %7405 = vpow2.f32 %v4448_v52  ;;  %v6604_v18 = vadd.f32 %v6473_v39, %v6341_v6 }
 0x259   : > { %v3785_v53 = vpop.f32.mrb[119].mxu0  ;;  %v7388_v38 = vpop.eup %7387  ;;  %5091 = vst.msk [vmem:[%s8174_s10 + $0x330] sm:$0xff] %vm4988_vm2, %v4962_v40  ;;  %v4581_v20 = vadd.f32 1.0, %v7386_v13  ;;  %7407 = vpow2.f32 %v4444_v36  ;;  %v8946_v0 = vadd.f32 %v8739_v14, %v6603_v29  ;;  %v4210_v7 = vsub.f32 0.0, %v8941_v15 }
 0x25a   : > { %v6605_v51 = vadd.f32 %v3785_v53, %v2583_v26  ;;  %v7390_v24 = vpop.eup %7389  ;;  %7409 = vrcp.f32 %v4583_v58  ;;  %v4586_v62 = vadd.f32 1.0, %v7388_v38  ;;  %v8950_v3 = vadd.f32 %v8739_v14, %v6604_v18  ;;  %v6344_v11 = vpop.f32.mrb[120].mxu1 }
 0x25b   : > { %v7392_v25 = vpop.eup %7391  ;;  %7411 = vrcp.f32 %v4581_v20  ;;  %v4584_v21 = vadd.f32 1.0, %v7390_v24  ;;  %v4208_v23 = vsub.f32 0.0, %v8946_v0  ;;  %v4456_v9 = vmul.f32 1.442695, %v4210_v7  ;;  %v6476_v31 = vpop.f32.mrb[120].mxu0 }
 0x25c   : > { %v8954_v60 = vadd.f32 %v8739_v14, %v6605_v51  ;;  %v7394_v50 = vpop.eup %7393  ;;  %v4960_v63 = vmul.f32 %v7392_v25, %v8831_v2  ;;  %7413 = vrcp.f32 %v4586_v62  ;;  %v4211_v27 = vsub.f32 0.0, %v8950_v3  ;;  %v2596_v52 = vpop.f32.mrb[121].mxu1 }
 0x25d   : > { %v7396_v10 = vpop.eup %7395  ;;  %v4963_v57 = vmul.f32 %v7394_v50, %v8836_v44  ;;  %7415 = vrcp.f32 %v4584_v21  ;;  %v4452_v8 = vmul.f32 1.442695, %v4208_v23  ;;  %v6606_v37 = vadd.f32 %v6476_v31, %v6344_v11  ;;  %v3798_v30 = vpop.f32.mrb[121].mxu0 }
 0x25e   : > { %v4209_v35 = vsub.f32 0.0, %v8954_v60  ;;  %v7398_v34 = vpop.eup %7397  ;;  %5089 = vst.msk [vmem:[%s8174_s10 + $0x320] sm:$0xff] %vm4988_vm2, %v4960_v63  ;;  %v4961_v2 = vmul.f32 %v7396_v10, %v8841_v45  ;;  %7417 = vpow2.f32 %v4450_v32  ;;  %v4458_v1 = vmul.f32 1.442695, %v4211_v27  ;;  %v6345_v36 = vpop.f32.mrb[122].mxu1 }
 0x25f   : > { %v7400_v48 = vpop.eup %7399  ;;  %5092 = vst.msk [vmem:[%s8174_s10 + $0x338] sm:$0xff] %vm4988_vm2, %v4963_v57  ;;  %v4966_v44 = vmul.f32 %v7398_v34, %v8856_v59  ;;  %7419 = vpow2.f32 %v4446_v54  ;;  %v6607_v56 = vadd.f32 %v3798_v30, %v2596_v52  ;;  %v6477_v55 = vpop.f32.mrb[122].mxu0  ;;  %v8970_v32 = vadd.f32 %v8739_v14, %v6606_v37 }
 0x260   : > { %v4454_v5 = vmul.f32 1.442695, %v4209_v35  ;;  %v2599_v22 = vpop.f32.mrb[123].mxu1  ;;  %v7402_v28 = vpop.eup %7401  ;;  %5090 = vst.msk [vmem:[%s8174_s10 + $0x328] sm:$0xff] %vm4988_vm2, %v4961_v2  ;;  %v4964_v45 = vmul.f32 %v7400_v48, %v8859_v61  ;;  %7421 = vpow2.f32 %v4456_v9  ;;  %v6608_v42 = vadd.f32 %v6477_v55, %v6345_v36 }
 0x261   : > { %v3801_v6 = vpop.f32.mrb[123].mxu0  ;;  %v7404_v17 = vpop.eup %7403  ;;  %5095 = vst.msk [vmem:[%s8174_s10 + $0x350] sm:$0xff] %vm4988_vm2, %v4966_v44  ;;  %v4587_v59 = vadd.f32 1.0, %v7402_v28  ;;  %7423 = vpow2.f32 %v4452_v8  ;;  %v8975_v40 = vadd.f32 %v8739_v14, %v6607_v56  ;;  %v4214_v61 = vsub.f32 0.0, %v8970_v32 }
 0x262   : > { %v6609_v54 = vadd.f32 %v3801_v6, %v2599_v22  ;;  %v7406_v29 = vpop.eup %7405  ;;  %5093 = vst.msk [vmem:[%s8174_s10 + $0x340] sm:$0xff] %vm4988_vm2, %v4964_v45  ;;  %v4585_v39 = vadd.f32 1.0, %v7404_v17  ;;  %7425 = vpow2.f32 %v4458_v1  ;;  %v8981_v26 = vadd.f32 %v8739_v14, %v6608_v42  ;;  %v6348_v62 = vpop.f32.mrb[124].mxu1 }
 0x263   : > { %v7408_v13 = vpop.eup %7407  ;;  %7427 = vrcp.f32 %v4587_v59  ;;  %v4590_v58 = vadd.f32 1.0, %v7406_v29  ;;  %v4212_v18 = vsub.f32 0.0, %v8975_v40  ;;  %v4464_v51 = vmul.f32 1.442695, %v4214_v61  ;;  %v6480_v23 = vpop.f32.mrb[124].mxu0 }
 0x264   : > { %v8985_v53 = vadd.f32 %v8739_v14, %v6609_v54  ;;  %v7410_v38 = vpop.eup %7409  ;;  %7429 = vrcp.f32 %v4585_v39  ;;  %v4588_v20 = vadd.f32 1.0, %v7408_v13  ;;  %v4215_v24 = vsub.f32 0.0, %v8981_v26  ;;  %v2612_v50 = vpop.f32.mrb[125].mxu1 }
 0x265   : > { %v7412_v7 = vpop.eup %7411  ;;  %v4967_v25 = vmul.f32 %v7410_v38, %v8864_v33  ;;  %7431 = vrcp.f32 %v4590_v58  ;;  %v4460_v21 = vmul.f32 1.442695, %v4212_v18  ;;  %v6610_v11 = vadd.f32 %v6480_v23, %v6348_v62  ;;  %v3814_v10 = vpop.f32.mrb[125].mxu0 }
 0x266   : > { %v7414_v63 = vpop.eup %7413  ;;  %v4965_v9 = vmul.f32 %v7412_v7, %v8869_v46  ;;  %7433 = vrcp.f32 %v4588_v20  ;;  %v4466_v27 = vmul.f32 1.442695, %v4215_v24  ;;  %v6349_v57 = vpop.f32.mrb[126].mxu1  ;;  %v4213_v33 = vsub.f32 0.0, %v8985_v53 }
 0x267   : > { %v7416_v8 = vpop.eup %7415  ;;  %5096 = vst.msk [vmem:[%s8174_s10 + $0x358] sm:$0xff] %vm4988_vm2, %v4967_v25  ;;  %v4970_v35 = vmul.f32 %v7414_v63, %v8887_v49  ;;  %7435 = vpow2.f32 %v4454_v5  ;;  %v6611_v31 = vadd.f32 %v3814_v10, %v2612_v50  ;;  %v6481_v52 = vpop.f32.mrb[126].mxu0  ;;  %v8998_v1 = vadd.f32 %v8739_v14, %v6610_v11 }
 0x268   : > { %v2615_v34 = vpop.f32.mrb[127].mxu1  ;;  %v7418_v2 = vpop.eup %7417  ;;  %5094 = vst.msk [vmem:[%s8174_s10 + $0x348] sm:$0xff] %vm4988_vm2, %v4965_v9  ;;  %v4968_v46 = vmul.f32 %v7416_v8, %v8890_v12  ;;  %7437 = vpow2.f32 %v4464_v51  ;;  %v6612_v37 = vadd.f32 %v6481_v52, %v6349_v57  ;;  %v4462_v45 = vmul.f32 1.442695, %v4213_v33 }
 0x269   : > { %v3817_v30 = vpop.f32.mrb[127].mxu0  ;;  %v7420_v36 = vpop.eup %7419  ;;  %5099 = vst.msk [vmem:[%s8174_s10 + $0x370] sm:$0xff] %vm4988_vm2, %v4970_v35  ;;  %v4591_v49 = vadd.f32 1.0, %v7418_v2  ;;  %7439 = vpow2.f32 %v4460_v21  ;;  %v9003_v48 = vadd.f32 %v8739_v14, %v6611_v31  ;;  %v4218_v12 = vsub.f32 0.0, %v8998_v1 }
 0x26a   : > { %v6613_v44 = vadd.f32 %v3817_v30, %v2615_v34  ;;  %v7422_v5 = vpop.eup %7421  ;;  %5097 = vst.msk [vmem:[%s8174_s10 + $0x360] sm:$0xff] %vm4988_vm2, %v4968_v46  ;;  %v4589_v56 = vadd.f32 1.0, %v7420_v36  ;;  %7441 = vpow2.f32 %v4466_v27  ;;  %v9009_v55 = vadd.f32 %v8739_v14, %v6612_v37 }
 0x26b   : > { %v7424_v22 = vpop.eup %7423  ;;  %7443 = vrcp.f32 %v4591_v49  ;;  %v4594_v28 = vadd.f32 1.0, %v7422_v5  ;;  %v4216_v42 = vsub.f32 0.0, %v9003_v48  ;;  %v4472_v61 = vmul.f32 1.442695, %v4218_v12 }
 0x26c   : > { %v7426_v6 = vpop.eup %7425  ;;  %7445 = vrcp.f32 %v4589_v56  ;;  %v4592_v17 = vadd.f32 1.0, %v7424_v22  ;;  %v4219_v59 = vsub.f32 0.0, %v9009_v55  ;;  %v9014_v54 = vadd.f32 %v8739_v14, %v6613_v44 }
 0x26d   : > { %v7428_v29 = vpop.eup %7427  ;;  %7447 = vrcp.f32 %v4594_v28  ;;  %v4595_v39 = vadd.f32 1.0, %v7426_v6  ;;  %v4468_v18 = vmul.f32 1.442695, %v4216_v42 }
 0x26e   : > { %v7430_v13 = vpop.eup %7429  ;;  %v4971_v58 = vmul.f32 %v7428_v29, %v8894_v41  ;;  %7449 = vrcp.f32 %v4592_v17  ;;  %v4474_v51 = vmul.f32 1.442695, %v4219_v59  ;;  %v4217_v62 = vsub.f32 0.0, %v9014_v54 }
 0x26f   : > { %v7432_v38 = vpop.eup %7431  ;;  %v4969_v20 = vmul.f32 %v7430_v13, %v8899_v16  ;;  %7451 = vrcp.f32 %v4595_v39 }
 0x270   : > { %v7434_v24 = vpop.eup %7433  ;;  %5100 = vst.msk [vmem:[%s8174_s10 + $0x378] sm:$0xff] %vm4988_vm2, %v4971_v58  ;;  %v4974_v14 = vmul.f32 %v7432_v38, %v8915_v47  ;;  %7453 = vpow2.f32 %v4462_v45  ;;  %v4470_v63 = vmul.f32 1.442695, %v4217_v62 }
 0x271   : > { %v7436_v7 = vpop.eup %7435  ;;  %5098 = vst.msk [vmem:[%s8174_s10 + $0x368] sm:$0xff] %vm4988_vm2, %v4969_v20  ;;  %v4972_v41 = vmul.f32 %v7434_v24, %v8918_v4  ;;  %7455 = vpow2.f32 %v4472_v61 }
 0x272   : > { %v7438_v25 = vpop.eup %7437  ;;  %5103 = vst.msk [vmem:[%s8174_s10 + $0x390] sm:$0xff] %vm4988_vm2, %v4974_v14  ;;  %v4593_v16 = vadd.f32 1.0, %v7436_v7  ;;  %7457 = vpow2.f32 %v4468_v18 }
 0x273   : > { %v7440_v21 = vpop.eup %7439  ;;  %5101 = vst.msk [vmem:[%s8174_s10 + $0x380] sm:$0xff] %vm4988_vm2, %v4972_v41  ;;  %v4598_v23 = vadd.f32 1.0, %v7438_v25  ;;  %7459 = vpow2.f32 %v4474_v51 }
 0x274   : > { %v7442_v47 = vpop.eup %7441  ;;  %7461 = vrcp.f32 %v4593_v16  ;;  %v4596_v50 = vadd.f32 1.0, %v7440_v21 }
 0x275   : > { %v7444_v9 = vpop.eup %7443  ;;  %7463 = vrcp.f32 %v4598_v23  ;;  %v4599_v4 = vadd.f32 1.0, %v7442_v47 }
 0x276   : > { %v7446_v27 = vpop.eup %7445  ;;  %v4975_v11 = vmul.f32 %v7444_v9, %v8922_v43  ;;  %7465 = vrcp.f32 %v4596_v50 }
 0x277   : > { %v7448_v10 = vpop.eup %7447  ;;  %v4973_v57 = vmul.f32 %v7446_v27, %v8926_v19  ;;  %7467 = vrcp.f32 %v4599_v4 }
 0x278   : > { %v7450_v8 = vpop.eup %7449  ;;  %5104 = vst.msk [vmem:[%s8174_s10 + $0x398] sm:$0xff] %vm4988_vm2, %v4975_v11  ;;  %v4978_v35 = vmul.f32 %v7448_v10, %v8941_v15  ;;  %7469 = vpow2.f32 %v4470_v63 }
 0x279   : > { %v7452_v33 = vpop.eup %7451  ;;  %5102 = vst.msk [vmem:[%s8174_s10 + $0x388] sm:$0xff] %vm4988_vm2, %v4973_v57  ;;  %v4976_v31 = vmul.f32 %v7450_v8, %v8946_v0 }
 0x27a   : > { %v7454_v52 = vpop.eup %7453  ;;  %5107 = vst.msk [vmem:[%s8174_s10 + $0x3b0] sm:$0xff] %vm4988_vm2, %v4978_v35  ;;  %v4979_v43 = vmul.f32 %v7452_v33, %v8950_v3 }
 0x27b   : > { %v7456_v34 = vpop.eup %7455  ;;  %5105 = vst.msk [vmem:[%s8174_s10 + $0x3a0] sm:$0xff] %vm4988_vm2, %v4976_v31  ;;  %v4597_v19 = vadd.f32 1.0, %v7454_v52 }
 0x27c   : > { %v7458_v2 = vpop.eup %7457  ;;  %5108 = vst.msk [vmem:[%s8174_s10 + $0x3b8] sm:$0xff] %vm4988_vm2, %v4979_v43  ;;  %v4602_v15 = vadd.f32 1.0, %v7456_v34 }
 0x27d   : > { %v7460_v46 = vpop.eup %7459  ;;  %7471 = vrcp.f32 %v4597_v19  ;;  %v4600_v37 = vadd.f32 1.0, %v7458_v2 }
 0x27e   : > { %v7462_v0 = vpop.eup %7461  ;;  %7473 = vrcp.f32 %v4602_v15  ;;  %v4603_v30 = vadd.f32 1.0, %v7460_v46 }
 0x27f   : > { %v7464_v36 = vpop.eup %7463  ;;  %v4977_v3 = vmul.f32 %v7462_v0, %v8954_v60  ;;  %7475 = vrcp.f32 %v4600_v37 }
 0x280   : > { %v7466_v49 = vpop.eup %7465  ;;  %v4982_v44 = vmul.f32 %v7464_v36, %v8970_v32  ;;  %7477 = vrcp.f32 %v4603_v30 }
 0x281   : > { %v7468_v5 = vpop.eup %7467  ;;  %5106 = vst.msk [vmem:[%s8174_s10 + $0x3a8] sm:$0xff] %vm4988_vm2, %v4977_v3  ;;  %v4980_v56 = vmul.f32 %v7466_v49, %v8975_v40 }
 0x282   : > { %v7470_v12 = vpop.eup %7469  ;;  %5111 = vst.msk [vmem:[%s8174_s10 + $0x3d0] sm:$0xff] %vm4988_vm2, %v4982_v44  ;;  %v4983_v22 = vmul.f32 %v7468_v5, %v8981_v26 }
 0x283   : > { %5109 = vst.msk [vmem:[%s8174_s10 + $0x3c0] sm:$0xff] %vm4988_vm2, %v4980_v56  ;;  %v4601_v60 = vadd.f32 1.0, %v7470_v12 }
 0x284   : > { %5112 = vst.msk [vmem:[%s8174_s10 + $0x3d8] sm:$0xff] %vm4988_vm2, %v4983_v22 }
 0x285   : > { %7479 = vrcp.f32 %v4601_v60 }
 0x287   : > { %v7472_v32 = vpop.eup %7471 }
 0x288   : > { %v7474_v28 = vpop.eup %7473  ;;  %v4981_v45 = vmul.f32 %v7472_v32, %v8985_v53 }
 0x289   : > { %v7476_v40 = vpop.eup %7475  ;;  %v4986_v42 = vmul.f32 %v7474_v28, %v8998_v1 }
 0x28a   : > { %v7478_v6 = vpop.eup %7477  ;;  %5110 = vst.msk [vmem:[%s8174_s10 + $0x3c8] sm:$0xff] %vm4988_vm2, %v4981_v45  ;;  %v4984_v26 = vmul.f32 %v7476_v40, %v9003_v48 }
 0x28b   : > { %5115 = vst.msk [vmem:[%s8174_s10 + $0x3f0] sm:$0xff] %vm4988_vm2, %v4986_v42  ;;  %v4987_v17 = vmul.f32 %v7478_v6, %v9009_v55 }
 0x28c   : > { %5113 = vst.msk [vmem:[%s8174_s10 + $0x3e0] sm:$0xff] %vm4988_vm2, %v4984_v26 }
 0x28d   : > { %5116 = vst.msk [vmem:[%s8174_s10 + $0x3f8] sm:$0xff] %vm4988_vm2, %v4987_v17 }
 0x28f   : > { %v7480_v59 = vpop.eup %7479 }
 0x290   : > { %v4985_v29 = vmul.f32 %v7480_v59, %v9014_v54 }
 0x292   : > { %5114 = vst.msk [vmem:[%s8174_s10 + $0x3e8] sm:$0xff] %vm4988_vm2, %v4985_v29 }
 0x293 PF: > { %s13_s14 = sadd.s32 1, %s7505_s14   ;;  %s9126_s12 = smov %s7501_s13 }
 0x294   : > { %p10_p5 = scmp.ge.s32.totalorder %s13_s14, 4   ;;  %s9127_s13 = smov %s9129_s15 }
 0x296   :  { %12 = sbr.rel (!%p10_p5) target bundleno = 2 (0x2), region = 72 }

</bundles_post_ra>
